<compile_context>
chip_gen: v6e
topology: v6e:2x2x1
jax: 0.10.0
libtpu: 0.0.40
codegen_flags: <defaults>
</compile_context>

<pallas_src>
import functools

import numpy as np
import jax
import jax.numpy as jnp
from jax import lax
from jax.experimental import pallas as pl
from jax.experimental.pallas import tpu as pltpu

# ----------------------------- model hyper-params (small) -----------------------------
SEQ_LEN = 16
NUM_CLASSES = 4
VOCAB_SIZE = 32
EMB_SIZE = 32
FILTER_SIZES = (3, 4, 5)
NUM_FILTERS = 8
BATCH = 2

F_MAX = max(FILTER_SIZES)                      # 5  (shared tap window)
L_MAX = SEQ_LEN - min(FILTER_SIZES) + 1        # 14 (longest valid conv output length)
S_PAD_LEN = L_MAX + F_MAX - 1                  # 18 (token sequence padded with -1)
FEAT = NUM_FILTERS * len(FILTER_SIZES)         # 24 real feature channels
C_PAD = 128                                    # lane-dense channel/class padding
TILE_N = 8                                     # batch rows per grid step (one sublane tile)
M_TILE = TILE_N * L_MAX                        # 112 "im2col" rows per grid step


# ----------------------------------- Pallas kernel ------------------------------------
def _cnn_kernel(tok_ref, wfold_ref, bconv_ref, mask_ref, wc_ref, bc_ref, out_ref, *,
                tm, l_max, vocab, f_max, c_pad):
    """Fused forward for one batch tile.

    tok_ref   : (tm*l_max, f_max)  int32  token windows, rows ordered (l, n) l-major
    wfold_ref : (f_max*vocab, 128) f32    embedding-folded conv weights (all taps/branches)
    bconv_ref : (1, 128)           f32    conv bias (zero-padded)
    mask_ref  : (tm*l_max, 128)    f32    per-(time, channel) validity mask in {0, 1}
    wc_ref    : (128, 128)         f32    classifier weight (transposed, zero-padded)
    bc_ref    : (1, 128)           f32    classifier bias (zero-padded)
    out_ref   : (tm, 128)          f32    lane-dense logits (first NUM_CLASSES lanes real)
    """
    m = tm * l_max
    v_iota = lax.broadcasted_iota(jnp.int32, (m, vocab), 1)            # (M, V)

    # Embedding gather + conv fused: per-tap one-hot @ embedding-folded weights.
    # Padded tokens are -1 -> one-hot row of zeros -> contribute nothing.
    acc = jnp.zeros((m, c_pad), jnp.float32)
    for k in range(f_max):                                             # static, unrolled
        onehot_k = (v_iota == tok_ref[:, k:k + 1]).astype(jnp.float32)  # (M, V)
        acc = acc + jnp.dot(onehot_k, wfold_ref[k * vocab:(k + 1) * vocab, :],
                            preferred_element_type=jnp.float32,
                            precision=lax.Precision.HIGHEST)

    # bias + ReLU, then zero the invalid (time, channel) slots (exact since ReLU >= 0).
    conv = jnp.maximum(acc + bconv_ref[...], 0.0) * mask_ref[...]      # (M, 128)

    # Max-over-time: rows are l-major, so each time step is an 8-sublane-aligned slice.
    pooled = conv[0:tm, :]
    for l in range(1, l_max):
        pooled = jnp.maximum(pooled, conv[l * tm:(l + 1) * tm, :])     # (tm, 128)

    # Classifier head (dropout(p=0.5) is identity at inference).
    logits = jnp.dot(pooled, wc_ref[...], preferred_element_type=jnp.float32,
                     precision=lax.Precision.HIGHEST) + bc_ref[...]
    out_ref[...] = logits                                              # unmasked (8,128) vst


# ----------------------------------- JAX wrapper ---------------------------------------
def cnn_classifier_forward(tokens, params):
    """tokens: (N, SEQ_LEN) int32.  Returns logits (N, NUM_CLASSES) f32."""
    n = tokens.shape[0]
    n_pad = ((n + TILE_N - 1) // TILE_N) * TILE_N
    num_tiles = n_pad // TILE_N

    # int32 token windows; pad batch & sequence with -1 (one-hot of -1 is all-zero).
    tok = jnp.pad(tokens.astype(jnp.int32),
                  ((0, n_pad - n), (0, S_PAD_LEN - SEQ_LEN)), constant_values=-1)
    tok_win = jnp.stack([tok[:, k:k + L_MAX] for k in range(F_MAX)], axis=-1)  # (n_pad,L,F)
    # Rows ordered (tile, l, n-in-tile) so in-kernel pooling slices are sublane-aligned.
    tok_win = tok_win.reshape(num_tiles, TILE_N, L_MAX, F_MAX)
    tok_win = tok_win.transpose(0, 2, 1, 3).reshape(n_pad * L_MAX, F_MAX)

    kernel = functools.partial(_cnn_kernel, tm=TILE_N, l_max=L_MAX,
                               vocab=VOCAB_SIZE, f_max=F_MAX, c_pad=C_PAD)

    flops = num_tiles * (2 * M_TILE * VOCAB_SIZE * C_PAD * F_MAX
                         + 2 * TILE_N * C_PAD * C_PAD)
    bytes_accessed = 4 * (tok_win.size + params["w_fold"].size + params["b_conv"].size
                          + params["pool_mask"].size + params["wc_pad"].size
                          + params["bc_pad"].size + n_pad * C_PAD)

    out_padded = pl.pallas_call(
        kernel,
        out_shape=jax.ShapeDtypeStruct((n_pad, C_PAD), jnp.float32),
        grid=(num_tiles,),
        in_specs=[
            pl.BlockSpec((M_TILE, F_MAX), lambda i: (i, 0)),              # token windows
            pl.BlockSpec((F_MAX * VOCAB_SIZE, C_PAD), lambda i: (0, 0)),  # folded conv W (resident)
            pl.BlockSpec((1, C_PAD), lambda i: (0, 0)),                   # conv bias
            pl.BlockSpec((M_TILE, C_PAD), lambda i: (0, 0)),              # pooling mask (resident)
            pl.BlockSpec((C_PAD, C_PAD), lambda i: (0, 0)),               # classifier W
            pl.BlockSpec((1, C_PAD), lambda i: (0, 0)),                   # classifier bias
        ],
        out_specs=pl.BlockSpec((TILE_N, C_PAD), lambda i: (i, 0)),
        compiler_params=pltpu.CompilerParams(dimension_semantics=("parallel",)),
        cost_estimate=pl.CostEstimate(flops=flops, transcendentals=0,
                                      bytes_accessed=bytes_accessed),
    )(tok_win, params["w_fold"], params["b_conv"], params["pool_mask"],
      params["wc_pad"], params["bc_pad"])

    return out_padded[:n, :NUM_CLASSES]


# ------------------------------ deterministic param init -------------------------------
def _build_pool_mask():
    mask = np.zeros((L_MAX, C_PAD), np.float32)
    for j, f in enumerate(FILTER_SIZES):
        mask[:SEQ_LEN - f + 1, j * NUM_FILTERS:(j + 1) * NUM_FILTERS] = 1.0
    return jnp.asarray(np.repeat(mask, TILE_N, axis=0))        # (M_TILE, 128), l-major rows


def init_params(key):
    """PyTorch-default init, then embedding-folded / lane-padded packed layouts."""
    ks = jax.random.split(key, 9)
    params = {}

    # nn.Embedding default: N(0, 1)
    emb = jax.random.normal(ks[0], (VOCAB_SIZE, EMB_SIZE), jnp.float32)
    params["embedding"] = emb

    # Per-branch conv params; fold the embedding in:  rows [k*V,(k+1)*V) of w_fold hold
    # E @ W_j[:, k, :].T in columns [j*F,(j+1)*F); taps k >= f_j and channels >= 3F are zero.
    w_fold = jnp.zeros((F_MAX * VOCAB_SIZE, C_PAD), jnp.float32)
    b_conv = jnp.zeros((1, C_PAD), jnp.float32)
    conv_w, conv_b = [], []
    for j, f in enumerate(FILTER_SIZES):
        fan_in = 1 * f * EMB_SIZE
        bound = fan_in ** -0.5
        w = jax.random.uniform(ks[1 + 2 * j], (NUM_FILTERS, f, EMB_SIZE),
                               jnp.float32, -bound, bound)      # PyTorch (F, 1, f, E)
        b = jax.random.uniform(ks[2 + 2 * j], (NUM_FILTERS,), jnp.float32, -bound, bound)
        conv_w.append(w)
        conv_b.append(b)
        for k in range(f):
            w_vk = jnp.dot(emb, w[:, k, :].T, precision=lax.Precision.HIGHEST)  # (V, NF)
            w_fold = w_fold.at[k * VOCAB_SIZE:(k + 1) * VOCAB_SIZE,
                               j * NUM_FILTERS:(j + 1) * NUM_FILTERS].set(w_vk)
        b_conv = b_conv.at[0, j * NUM_FILTERS:(j + 1) * NUM_FILTERS].set(b)
    params["w_fold"] = w_fold
    params["b_conv"] = b_conv
    params["conv_w"] = conv_w                 # raw weights kept only for the JAX reference
    params["conv_b"] = conv_b

    # Linear(3F, C): PyTorch weight (C, 3F) -> stored transposed, zero-padded to (128, 128)
    bound = FEAT ** -0.5
    wc = jax.random.uniform(ks[7], (NUM_CLASSES, FEAT), jnp.float32, -bound, bound)
    bc = jax.random.uniform(ks[8], (NUM_CLASSES,), jnp.float32, -bound, bound)
    params["wc"] = wc
    params["bc"] = bc
    params["wc_pad"] = jnp.zeros((C_PAD, C_PAD), jnp.float32).at[:FEAT, :NUM_CLASSES].set(wc.T)
    params["bc_pad"] = jnp.zeros((1, C_PAD), jnp.float32).at[0, :NUM_CLASSES].set(bc)

    params["pool_mask"] = _build_pool_mask()
    return params


# --------------------------------- pure-JAX reference ----------------------------------
def _reference_forward(tokens, params):
    """Mirrors the PyTorch forward (dropout = identity in eval)."""
    x = params["embedding"][tokens]                                   # (N, S, E)
    feats = []
    for j, f in enumerate(FILTER_SIZES):
        w, b = params["conv_w"][j], params["conv_b"][j]               # (NF, f, E), (NF,)
        lj = SEQ_LEN - f + 1
        cols = jnp.stack([x[:, l:l + f, :] for l in range(lj)], axis=1)   # (N, lj, f, E)
        conv = jnp.einsum("nlfe,cfe->nlc", cols, w,
                          precision=lax.Precision.HIGHEST) + b
        feats.append(jnp.max(jax.nn.relu(conv), axis=1))              # (N, NF)
    feat = jnp.concatenate(feats, axis=-1)                            # (N, 3*NF)
    return jnp.dot(feat, params["wc"].T,
                   precision=lax.Precision.HIGHEST) + params["bc"]


if __name__ == "__main__":
    key = jax.random.PRNGKey(0)
    k_tok, k_par = jax.random.split(key)
    tokens = jax.random.randint(k_tok, (BATCH, SEQ_LEN), 0, VOCAB_SIZE, dtype=jnp.int32)
    params = init_params(k_par)

    logits = cnn_classifier_forward(tokens, params)
    jax.block_until_ready(logits)
    assert logits.shape == (BATCH, NUM_CLASSES)
    assert logits.dtype == jnp.float32

    ref = _reference_forward(tokens, params)
    assert jnp.allclose(logits, ref, atol=1e-3, rtol=1e-3), (logits, ref)
    print("KERNEL_OK")
</pallas_src>

<mosaic_0001>
module attributes {stable_mosaic.version = 11 : i64} {
  func.func @_cnn_kernel(%arg0: i32, %arg1: memref<112x5xi32, #tpu.memory_space<vmem>>, %arg2: memref<160x128xf32, #tpu.memory_space<vmem>>, %arg3: memref<1x128xf32, #tpu.memory_space<vmem>>, %arg4: memref<112x128xf32, #tpu.memory_space<vmem>>, %arg5: memref<128x128xf32, #tpu.memory_space<vmem>>, %arg6: memref<1x128xf32, #tpu.memory_space<vmem>>, %arg7: memref<8x128xf32, #tpu.memory_space<vmem>>) attributes {dimension_semantics = [#tpu.dimension_semantics<parallel>], iteration_bounds = array<i64: 1>, scalar_prefetch = 0 : i64, scratch_operands = 0 : i64, tpu.core_type = #tpu.core_type<tc>, window_params = [{transform_indices = @transform_0, window_bounds = array<i64: 112, 5>}, {pipeline_mode = #tpu.pipeline_mode<synchronous>, transform_indices = @transform_1, window_bounds = array<i64: 160, 128>}, {pipeline_mode = #tpu.pipeline_mode<synchronous>, transform_indices = @transform_2, window_bounds = array<i64: 1, 128>}, {pipeline_mode = #tpu.pipeline_mode<synchronous>, transform_indices = @transform_3, window_bounds = array<i64: 112, 128>}, {pipeline_mode = #tpu.pipeline_mode<synchronous>, transform_indices = @transform_4, window_bounds = array<i64: 128, 128>}, {pipeline_mode = #tpu.pipeline_mode<synchronous>, transform_indices = @transform_5, window_bounds = array<i64: 1, 128>}, {transform_indices = @transform_6, window_bounds = array<i64: 8, 128>}]} {
    %0 = tpu.iota {dimensions = array<i32: 1>} : vector<112x32xi32>
    %cst = arith.constant 0.000000e+00 : f32
    %1 = vector.broadcast %cst : f32 to vector<112x128xf32>
    %c0 = arith.constant 0 : index
    %c0_0 = arith.constant 0 : index
    %2 = vector.load %arg1[%c0, %c0_0] : memref<112x5xi32, #tpu.memory_space<vmem>>, vector<112x1xi32>
    %3 = vector.broadcast %2 : vector<112x1xi32> to vector<112x32xi32>
    %4 = arith.cmpi eq, %0, %3 : vector<112x32xi32>
    %5 = arith.extui %4 : vector<112x32xi1> to vector<112x32xi32>
    %6 = arith.sitofp %5 : vector<112x32xi32> to vector<112x32xf32>
    %c0_1 = arith.constant 0 : index
    %c0_2 = arith.constant 0 : index
    %7 = vector.load %arg2[%c0_1, %c0_2] : memref<160x128xf32, #tpu.memory_space<vmem>>, vector<32x128xf32>
    %cst_3 = arith.constant dense<0.000000e+00> : vector<112x128xf32>
    %8 = tpu.matmul %6, %7, %cst_3 {dimension_numbers = #tpu.dot_dimension_numbers<[1], [0], [0], [1], [0, 0, 1, 1], [], []>, precision = #tpu.contract_precision<fp32>} : vector<112x32xf32>, vector<32x128xf32>, vector<112x128xf32> -> vector<112x128xf32>
    %9 = arith.addf %1, %8 : vector<112x128xf32>
    %c0_4 = arith.constant 0 : index
    %c1 = arith.constant 1 : index
    %10 = vector.load %arg1[%c0_4, %c1] : memref<112x5xi32, #tpu.memory_space<vmem>>, vector<112x1xi32>
    %11 = vector.broadcast %10 : vector<112x1xi32> to vector<112x32xi32>
    %12 = arith.cmpi eq, %0, %11 : vector<112x32xi32>
    %13 = arith.extui %12 : vector<112x32xi1> to vector<112x32xi32>
    %14 = arith.sitofp %13 : vector<112x32xi32> to vector<112x32xf32>
    %c32 = arith.constant 32 : index
    %c0_5 = arith.constant 0 : index
    %15 = vector.load %arg2[%c32, %c0_5] : memref<160x128xf32, #tpu.memory_space<vmem>>, vector<32x128xf32>
    %cst_6 = arith.constant dense<0.000000e+00> : vector<112x128xf32>
    %16 = tpu.matmul %14, %15, %cst_6 {dimension_numbers = #tpu.dot_dimension_numbers<[1], [0], [0], [1], [0, 0, 1, 1], [], []>, precision = #tpu.contract_precision<fp32>} : vector<112x32xf32>, vector<32x128xf32>, vector<112x128xf32> -> vector<112x128xf32>
    %17 = arith.addf %9, %16 : vector<112x128xf32>
    %c0_7 = arith.constant 0 : index
    %c2 = arith.constant 2 : index
    %18 = vector.load %arg1[%c0_7, %c2] : memref<112x5xi32, #tpu.memory_space<vmem>>, vector<112x1xi32>
    %19 = vector.broadcast %18 : vector<112x1xi32> to vector<112x32xi32>
    %20 = arith.cmpi eq, %0, %19 : vector<112x32xi32>
    %21 = arith.extui %20 : vector<112x32xi1> to vector<112x32xi32>
    %22 = arith.sitofp %21 : vector<112x32xi32> to vector<112x32xf32>
    %c64 = arith.constant 64 : index
    %c0_8 = arith.constant 0 : index
    %23 = vector.load %arg2[%c64, %c0_8] : memref<160x128xf32, #tpu.memory_space<vmem>>, vector<32x128xf32>
    %cst_9 = arith.constant dense<0.000000e+00> : vector<112x128xf32>
    %24 = tpu.matmul %22, %23, %cst_9 {dimension_numbers = #tpu.dot_dimension_numbers<[1], [0], [0], [1], [0, 0, 1, 1], [], []>, precision = #tpu.contract_precision<fp32>} : vector<112x32xf32>, vector<32x128xf32>, vector<112x128xf32> -> vector<112x128xf32>
    %25 = arith.addf %17, %24 : vector<112x128xf32>
    %c0_10 = arith.constant 0 : index
    %c3 = arith.constant 3 : index
    %26 = vector.load %arg1[%c0_10, %c3] : memref<112x5xi32, #tpu.memory_space<vmem>>, vector<112x1xi32>
    %27 = vector.broadcast %26 : vector<112x1xi32> to vector<112x32xi32>
    %28 = arith.cmpi eq, %0, %27 : vector<112x32xi32>
    %29 = arith.extui %28 : vector<112x32xi1> to vector<112x32xi32>
    %30 = arith.sitofp %29 : vector<112x32xi32> to vector<112x32xf32>
    %c96 = arith.constant 96 : index
    %c0_11 = arith.constant 0 : index
    %31 = vector.load %arg2[%c96, %c0_11] : memref<160x128xf32, #tpu.memory_space<vmem>>, vector<32x128xf32>
    %cst_12 = arith.constant dense<0.000000e+00> : vector<112x128xf32>
    %32 = tpu.matmul %30, %31, %cst_12 {dimension_numbers = #tpu.dot_dimension_numbers<[1], [0], [0], [1], [0, 0, 1, 1], [], []>, precision = #tpu.contract_precision<fp32>} : vector<112x32xf32>, vector<32x128xf32>, vector<112x128xf32> -> vector<112x128xf32>
    %33 = arith.addf %25, %32 : vector<112x128xf32>
    %c0_13 = arith.constant 0 : index
    %c4 = arith.constant 4 : index
    %34 = vector.load %arg1[%c0_13, %c4] : memref<112x5xi32, #tpu.memory_space<vmem>>, vector<112x1xi32>
    %35 = vector.broadcast %34 : vector<112x1xi32> to vector<112x32xi32>
    %36 = arith.cmpi eq, %0, %35 : vector<112x32xi32>
    %37 = arith.extui %36 : vector<112x32xi1> to vector<112x32xi32>
    %38 = arith.sitofp %37 : vector<112x32xi32> to vector<112x32xf32>
    %c128 = arith.constant 128 : index
    %c0_14 = arith.constant 0 : index
    %39 = vector.load %arg2[%c128, %c0_14] : memref<160x128xf32, #tpu.memory_space<vmem>>, vector<32x128xf32>
    %cst_15 = arith.constant dense<0.000000e+00> : vector<112x128xf32>
    %40 = tpu.matmul %38, %39, %cst_15 {dimension_numbers = #tpu.dot_dimension_numbers<[1], [0], [0], [1], [0, 0, 1, 1], [], []>, precision = #tpu.contract_precision<fp32>} : vector<112x32xf32>, vector<32x128xf32>, vector<112x128xf32> -> vector<112x128xf32>
    %41 = arith.addf %33, %40 : vector<112x128xf32>
    %c0_16 = arith.constant 0 : index
    %c0_17 = arith.constant 0 : index
    %42 = vector.load %arg3[%c0_16, %c0_17] : memref<1x128xf32, #tpu.memory_space<vmem>>, vector<1x128xf32>
    %43 = vector.broadcast %42 : vector<1x128xf32> to vector<112x128xf32>
    %44 = arith.addf %41, %43 : vector<112x128xf32>
    %cst_18 = arith.constant 0.000000e+00 : f32
    %45 = vector.broadcast %cst_18 : f32 to vector<112x128xf32>
    %46 = arith.maximumf %44, %45 : vector<112x128xf32>
    %c0_19 = arith.constant 0 : index
    %c0_20 = arith.constant 0 : index
    %47 = vector.load %arg4[%c0_19, %c0_20] : memref<112x128xf32, #tpu.memory_space<vmem>>, vector<112x128xf32>
    %48 = arith.mulf %46, %47 : vector<112x128xf32>
    %49 = vector.extract_strided_slice %48 {offsets = [0, 0], sizes = [8, 128], strides = [1, 1]} : vector<112x128xf32> to vector<8x128xf32>
    %50 = vector.extract_strided_slice %48 {offsets = [8, 0], sizes = [8, 128], strides = [1, 1]} : vector<112x128xf32> to vector<8x128xf32>
    %51 = arith.maximumf %49, %50 : vector<8x128xf32>
    %52 = vector.extract_strided_slice %48 {offsets = [16, 0], sizes = [8, 128], strides = [1, 1]} : vector<112x128xf32> to vector<8x128xf32>
    %53 = arith.maximumf %51, %52 : vector<8x128xf32>
    %54 = vector.extract_strided_slice %48 {offsets = [24, 0], sizes = [8, 128], strides = [1, 1]} : vector<112x128xf32> to vector<8x128xf32>
    %55 = arith.maximumf %53, %54 : vector<8x128xf32>
    %56 = vector.extract_strided_slice %48 {offsets = [32, 0], sizes = [8, 128], strides = [1, 1]} : vector<112x128xf32> to vector<8x128xf32>
    %57 = arith.maximumf %55, %56 : vector<8x128xf32>
    %58 = vector.extract_strided_slice %48 {offsets = [40, 0], sizes = [8, 128], strides = [1, 1]} : vector<112x128xf32> to vector<8x128xf32>
    %59 = arith.maximumf %57, %58 : vector<8x128xf32>
    %60 = vector.extract_strided_slice %48 {offsets = [48, 0], sizes = [8, 128], strides = [1, 1]} : vector<112x128xf32> to vector<8x128xf32>
    %61 = arith.maximumf %59, %60 : vector<8x128xf32>
    %62 = vector.extract_strided_slice %48 {offsets = [56, 0], sizes = [8, 128], strides = [1, 1]} : vector<112x128xf32> to vector<8x128xf32>
    %63 = arith.maximumf %61, %62 : vector<8x128xf32>
    %64 = vector.extract_strided_slice %48 {offsets = [64, 0], sizes = [8, 128], strides = [1, 1]} : vector<112x128xf32> to vector<8x128xf32>
    %65 = arith.maximumf %63, %64 : vector<8x128xf32>
    %66 = vector.extract_strided_slice %48 {offsets = [72, 0], sizes = [8, 128], strides = [1, 1]} : vector<112x128xf32> to vector<8x128xf32>
    %67 = arith.maximumf %65, %66 : vector<8x128xf32>
    %68 = vector.extract_strided_slice %48 {offsets = [80, 0], sizes = [8, 128], strides = [1, 1]} : vector<112x128xf32> to vector<8x128xf32>
    %69 = arith.maximumf %67, %68 : vector<8x128xf32>
    %70 = vector.extract_strided_slice %48 {offsets = [88, 0], sizes = [8, 128], strides = [1, 1]} : vector<112x128xf32> to vector<8x128xf32>
    %71 = arith.maximumf %69, %70 : vector<8x128xf32>
    %72 = vector.extract_strided_slice %48 {offsets = [96, 0], sizes = [8, 128], strides = [1, 1]} : vector<112x128xf32> to vector<8x128xf32>
    %73 = arith.maximumf %71, %72 : vector<8x128xf32>
    %74 = vector.extract_strided_slice %48 {offsets = [104, 0], sizes = [8, 128], strides = [1, 1]} : vector<112x128xf32> to vector<8x128xf32>
    %75 = arith.maximumf %73, %74 : vector<8x128xf32>
    %c0_21 = arith.constant 0 : index
    %c0_22 = arith.constant 0 : index
    %76 = vector.load %arg5[%c0_21, %c0_22] : memref<128x128xf32, #tpu.memory_space<vmem>>, vector<128x128xf32>
    %cst_23 = arith.constant dense<0.000000e+00> : vector<8x128xf32>
    %77 = tpu.matmul %75, %76, %cst_23 {dimension_numbers = #tpu.dot_dimension_numbers<[1], [0], [0], [1], [0, 0, 1, 1], [], []>, precision = #tpu.contract_precision<fp32>} : vector<8x128xf32>, vector<128x128xf32>, vector<8x128xf32> -> vector<8x128xf32>
    %c0_24 = arith.constant 0 : index
    %c0_25 = arith.constant 0 : index
    %78 = vector.load %arg6[%c0_24, %c0_25] : memref<1x128xf32, #tpu.memory_space<vmem>>, vector<1x128xf32>
    %79 = vector.broadcast %78 : vector<1x128xf32> to vector<8x128xf32>
    %80 = arith.addf %77, %79 : vector<8x128xf32>
    %c0_26 = arith.constant 0 : index
    %c0_27 = arith.constant 0 : index
    %81 = vector.load %arg7[%c0_26, %c0_27] : memref<8x128xf32, #tpu.memory_space<vmem>>, vector<8x128xf32>
    tpu.vector_store %arg7[%c0_26, %c0_27], %80 {strides = array<i32>} : memref<8x128xf32, #tpu.memory_space<vmem>>, vector<8x128xf32>,
    return
  }
  func.func @transform_0(%arg0: i32) -> (i32, i32) {
    %c0_i32 = arith.constant 0 : i32
    %c0_i32_0 = arith.constant 0 : i32
    return %arg0, %c0_i32 : i32, i32
  }
  func.func @transform_1(%arg0: i32) -> (i32, i32) {
    %c0_i32 = arith.constant 0 : i32
    %c0_i32_0 = arith.constant 0 : i32
    %c0_i32_1 = arith.constant 0 : i32
    return %c0_i32, %c0_i32_0 : i32, i32
  }
  func.func @transform_2(%arg0: i32) -> (i32, i32) {
    %c0_i32 = arith.constant 0 : i32
    %c0_i32_0 = arith.constant 0 : i32
    %c0_i32_1 = arith.constant 0 : i32
    return %c0_i32, %c0_i32_0 : i32, i32
  }
  func.func @transform_3(%arg0: i32) -> (i32, i32) {
    %c0_i32 = arith.constant 0 : i32
    %c0_i32_0 = arith.constant 0 : i32
    %c0_i32_1 = arith.constant 0 : i32
    return %c0_i32, %c0_i32_0 : i32, i32
  }
  func.func @transform_4(%arg0: i32) -> (i32, i32) {
    %c0_i32 = arith.constant 0 : i32
    %c0_i32_0 = arith.constant 0 : i32
    %c0_i32_1 = arith.constant 0 : i32
    return %c0_i32, %c0_i32_0 : i32, i32
  }
  func.func @transform_5(%arg0: i32) -> (i32, i32) {
    %c0_i32 = arith.constant 0 : i32
    %c0_i32_0 = arith.constant 0 : i32
    %c0_i32_1 = arith.constant 0 : i32
    return %c0_i32, %c0_i32_0 : i32, i32
  }
  func.func @transform_6(%arg0: i32) -> (i32, i32) {
    %c0_i32 = arith.constant 0 : i32
    %c0_i32_0 = arith.constant 0 : i32
    return %arg0, %c0_i32 : i32, i32
  }
}

</mosaic_0001>

<bundles_post_ra>
// kernel: tpu_custom_call.1
= control target key start
LH: loop header
LB: loop body
LE: loop exit
PB: predicated region body
PF: predicated region fallthrough
CT: control target
= control target key end

     0   :  { %11 = vsyncpa [#allocation3], 0  ;;  %s12222_s0 = inlined_call_operand.vmem [shape: s32[112,5], index: 0, kind: input, shape index: {}]   ;;  %s12223_s1 = inlined_call_operand.hbm [shape: f32[160,128], index: 1, kind: input, shape index: {}]   ;;  %s12224_s2 = inlined_call_operand.vmem [shape: f32[1,128], index: 2, kind: input, shape index: {}]   ;;  %s12225_s3 = inlined_call_operand.vmem [shape: f32[112,128], index: 3, kind: input, shape index: {}]   ;;  %s12226_s4 = inlined_call_operand.hbm [shape: f32[128,128], index: 4, kind: input, shape index: {}]   ;;  %s12227_s5 = inlined_call_operand.vmem [shape: f32[1,128], index: 5, kind: input, shape index: {}]   ;;  %s12228_s6 = inlined_call_operand.hbm [shape: f32[8,128], index: 6, kind: output, shape index: {}]  }
   0x1   :  { %12 = vsyncpa [#allocation6], 0 }
   0x2   :  { %13 = vsyncpa [#allocation4], 0  ;;  %s8830_s21 = smov [#allocation2]  }
   0x3   :  { %s21_s22 = sshll.u32 %s8830_s21, 4  ;;  %s22_s22 = int_to_ptr.vmem [resolvable:$true] %s21_s22 }
   0x4   :  { %s8772_s23 = scalar_lea.vmem %s22_s22, 2560  ;;  %p8777_p1 = scmp.lt.s32.totalorder %s22_s22, %s22_s22 }
   0x5   :  { %p8773_p0 = scmp.ne.s32.totalorder %s22_s22, %s8772_s23  ;;  %p8778_p2 = scmp.lt.s32.totalorder %s8772_s23, %s8772_s23 }
   0x7   :  { %p8779_p3 = por %p8778_p2, %p8777_p1 }
   0x9   :  { %p8780_p4 = pnand %p8779_p3, %p8773_p0 }
   0xb   :  { %8783 = shalt.err (!%p8780_p4)
}
   0xc   :  { %s8831_s24 = smov 128   ;;  %s8832_s25 = smov 8  }
   0xd   :  { %27 = dma.hbm_to_vmem [thread:$0]  %s12223_s1, 2560, %s22_s22, [#allocation3], %s8831_s24, %s8831_s24, %s8832_s25  }
   0xe   :  { %s8833_s28 = smov [#allocation5]  }
   0xf   :  { %s37_s29 = sshll.u32 %s8833_s28, 4  ;;  %s38_s29 = int_to_ptr.vmem [resolvable:$true] %s37_s29 }
  0x10   :  { %s8792_s30 = scalar_lea.vmem %s38_s29, 2048  ;;  %p8797_p6 = scmp.lt.s32.totalorder %s38_s29, %s38_s29 }
  0x11   :  { %p8793_p5 = scmp.ne.s32.totalorder %s38_s29, %s8792_s30  ;;  %p8798_p7 = scmp.lt.s32.totalorder %s8792_s30, %s8792_s30 }
  0x13   :  { %p8799_p8 = por %p8798_p7, %p8797_p6 }
  0x15   :  { %p8800_p9 = pnand %p8799_p8, %p8793_p5 }
  0x17   :  { %8803 = shalt.err (!%p8800_p9)
}
  0x18   :  { %43 = dma.hbm_to_vmem [thread:$0]  %s12226_s4, 2048, %s38_s29, [#allocation6], %s8831_s24, %s8831_s24, %s8832_s25  }
  0x19   :  { %8824 = dma.done.wait [#allocation3], 2560  }
  0x1a   :  { %8825 = vsyncadd [#allocation3], 4294964736 }
  0x1b   :  { %8826 = dma.done.wait [#allocation6], 2048  }
  0x1c   :  { %8827 = vsyncadd [#allocation6], 4294965248  ;;  %v8834_v0 = vmov 1   ;;  %v8886_v1 = vld [vmem:[%s12222_s0 + $0x10] sm:$0xff]  ;;  %v8891_v2 = vld [vmem:[%s12222_s0] sm:$0xff]  ;;  %v8835_v39 = vmov 0   ;;  %v52_v42 = vlaneseq }
  0x1d   :  { %8755 = vset.pattern.permute.xlu1 %v8834_v0  ;;  %8754 = vset.pattern.permute.xlu0 %v8834_v0  ;;  %v8898_v3 = vld [vmem:[%s12222_s0 + $0x18] sm:$0xff]  ;;  %v8903_v4 = vld [vmem:[%s12222_s0 + $0x8] sm:$0xff]  ;;  %v242_v7 = vld [vmem:[#allocation2 + $0x30] sm:$0xff]  ;;  %v8836_v40 = vmov 2   ;;  %v8837_v41 = vmov 3   ;;  %vm244_vm0 = vcmask 261120  }
  0x1e   :  { %163 = vperm.xlu1 %8755, %v8886_v1   ;;  %157 = vperm.xlu0 %8754, %v8891_v2   ;;  %v243_v5 = vld [vmem:[#allocation2 + $0x38] sm:$0xff]  ;;  %v241_v8 = vld [vmem:[#allocation2 + $0x28] sm:$0xff]  ;;  %v240_v9 = vld [vmem:[#allocation2 + $0x20] sm:$0xff]  ;;  %v8919_v12 = vand.u32 4294901760, %v242_v7  ;;  %v9055_v43 = vand.u32 127, %v52_v42  ;;  %v12235_v46 = vmov 0.0  }
  0x1f   :  { %v8907_v6 = vand.u32 4294901760, %v243_v5  ;;  %v8912_v10 = vld [vmem:[%s12222_s0 + $0x28] sm:$0xff]  ;;  %v8917_v11 = vld [vmem:[%s12222_s0 + $0x20] sm:$0xff]  ;;  %v8921_v13 = vand.u32 4294901760, %v241_v8  ;;  %v8923_v14 = vand.u32 4294901760, %v240_v9  ;;  %v8947_v20 = vld [vmem:[%s12222_s0 + $0x38] sm:$0xff] }
  0x20   :  { %v8930_v16 = vsub.f32 %v242_v7, %v8919_v12  ;;  %v8952_v21 = vld [vmem:[%s12222_s0 + $0x30] sm:$0xff]  ;;  %v8977_v29 = vld [vmem:[%s12222_s0 + $0x48] sm:$0xff]  ;;  %v8982_v30 = vld [vmem:[%s12222_s0 + $0x40] sm:$0xff]  ;;  %s8841_s11 = smov [#allocation7]  }
  0x21   :  { %v8926_v15 = vsub.f32 %v243_v5, %v8907_v6  ;;  %7662 = vmatprep.subr.mxu0 %v8907_v6  ;;  %v8933_v17 = vsub.f32 %v241_v8, %v8921_v13  ;;  %v8936_v18 = vsub.f32 %v240_v9, %v8923_v14  ;;  %v8994_v34 = vld [vmem:[%s12222_s0 + $0x58] sm:$0xff]  ;;  %v8999_v35 = vld [vmem:[%s12222_s0 + $0x50] sm:$0xff]  ;;  %v9007_v37 = vld [vmem:[%s12222_s0 + $0x68] sm:$0xff]  ;;  %s6728_s4 = sshll.u32 %s8841_s11, 4  ;;  %s6729_s4 = int_to_ptr.vmem [resolvable:$true] %s6728_s4 }
  0x22   :  { %166 = vperm.xlu1 %8755, %v8898_v3   ;;  %160 = vperm.xlu0 %8754, %v8903_v4   ;;  %v8955_v22 = vand.u32 4294901760, %v8930_v16  ;;  %v9012_v38 = vld [vmem:[%s12222_s0 + $0x60] sm:$0xff]  ;;  %s8804_s12 = scalar_lea.vmem %s6729_s4, 128  ;;  %p8809_p11 = scmp.lt.s32.totalorder %s6729_s4, %s6729_s4 }
  0x23   :  { %7663 = vmatpush3.msra.mxu0 %v8907_v6  ;;  %v8942_v19 = vand.u32 4294901760, %v8926_v15  ;;  %v8958_v23 = vand.u32 4294901760, %v8933_v17  ;;  %v8964_v25 = vand.u32 4294901760, %v8936_v18  ;;  %p8805_p10 = scmp.ne.s32.totalorder %s6729_s4, %s8804_s12  ;;  %p8810_p12 = scmp.lt.s32.totalorder %s8804_s12, %s8804_s12 }
  0x24   :  { %7664 = vmatprep.subr.mxu0 %v8919_v12  ;;  %v531_v26 = vsub.f32 %v8930_v16, %v8955_v22 }
  0x25   :  { %v524_v24 = vsub.f32 %v8926_v15, %v8942_v19  ;;  %7665 = vmatpush3.msra.mxu0 %v8919_v12  ;;  %v538_v27 = vsub.f32 %v8933_v17, %v8958_v23  ;;  %v545_v32 = vsub.f32 %v8936_v18, %v8964_v25  ;;  %p8811_p13 = por %p8810_p12, %p8809_p11 }
  0x26   :  { %172 = vperm.xlu1 %8755, %v8912_v10   ;;  %169 = vperm.xlu0 %8754, %v8917_v11   ;;  %v532_v31 = vand.u32 4294901760, %v531_v26 }
  0x27   :  { %7666 = vmatprep.subr.mxu0 %v8921_v13  ;;  %v525_v28 = vand.u32 4294901760, %v524_v24  ;;  %v539_v33 = vand.u32 4294901760, %v538_v27  ;;  %v546_v36 = vand.u32 4294901760, %v545_v32  ;;  %p8812_p0 = pnand %p8811_p13, %p8805_p10 }
  0x28   :  { %7667 = vmatpush3.msra.mxu0 %v8921_v13 }
  0x29   :  { %7691 = vmatprep.subr.mxu1 %v525_v28  ;;  %7668 = vmatprep.subr.mxu0 %v8923_v14 }
  0x2a   :  { %178 = vperm.xlu1 %8755, %v8947_v20   ;;  %175 = vperm.xlu0 %8754, %v8952_v21  }
  0x2b   :  { %7692 = vmatpush3.msra.mxu1 %v525_v28  ;;  %7669 = vmatpush3.msra.mxu0 %v8923_v14 }
  0x2c   :  { %7693 = vmatprep.subr.mxu1 %v532_v31  ;;  %7720 = vmatprep.subr.mxu0 %v8926_v15 }
  0x2d   :  { %7694 = vmatpush3.msra.mxu1 %v532_v31 }
  0x2e   :  { %184 = vperm.xlu1 %8755, %v8977_v29   ;;  %181 = vperm.xlu0 %8754, %v8982_v30  }
  0x2f   :  { %7695 = vmatprep.subr.mxu1 %v539_v33 }
  0x30   :  { %7696 = vmatpush3.msra.mxu1 %v539_v33 }
  0x31   :  { %7697 = vmatprep.subr.mxu1 %v546_v36 }
  0x32   :  { %190 = vperm.xlu1 %8755, %v8994_v34   ;;  %187 = vperm.xlu0 %8754, %v8999_v35  }
  0x33   :  { %7698 = vmatpush3.msra.mxu1 %v546_v36 }
  0x34   :  { %7749 = vmatprep.subr.mxu1 %v8907_v6 }
  0x36   :  { %196 = vperm.xlu1 %8755, %v9007_v37   ;;  %193 = vperm.xlu0 %8754, %v9012_v38  }
  0x3a   :  { %8757 = vset.pattern.permute.xlu1 %v8835_v39  ;;  %8756 = vset.pattern.permute.xlu0 %v8835_v39 }
  0x3b   :  { %72 = vperm.xlu1 %8757, %v8903_v4   ;;  %69 = vperm.xlu0 %8756, %v8891_v2  }
  0x3f   :  { %75 = vperm.xlu1 %8757, %v8886_v1   ;;  %78 = vperm.xlu0 %8756, %v8898_v3  }
  0x43   :  { %81 = vperm.xlu1 %8757, %v8917_v11   ;;  %84 = vperm.xlu0 %8756, %v8912_v10  }
  0x47   :  { %87 = vperm.xlu1 %8757, %v8952_v21   ;;  %90 = vperm.xlu0 %8756, %v8947_v20  }
  0x4b   :  { %93 = vperm.xlu1 %8757, %v8982_v30   ;;  %96 = vperm.xlu0 %8756, %v8977_v29  }
  0x4f   :  { %99 = vperm.xlu1 %8757, %v8999_v35   ;;  %102 = vperm.xlu0 %8756, %v8994_v34  }
  0x53   :  { %105 = vperm.xlu1 %8757, %v9012_v38   ;;  %108 = vperm.xlu0 %8756, %v9007_v37  }
  0x57   :  { %8758 = vset.pattern.permute.xlu1 %v8836_v40  ;;  %8759 = vset.pattern.permute.xlu0 %v8836_v40 }
  0x58   :  { %2418 = vperm.xlu1 %8758, %v8891_v2   ;;  %2421 = vperm.xlu0 %8759, %v8903_v4  }
  0x5c   :  { %2424 = vperm.xlu1 %8758, %v8886_v1   ;;  %2430 = vperm.xlu0 %8759, %v8917_v11  }
  0x60   :  { %2427 = vperm.xlu1 %8758, %v8898_v3   ;;  %2436 = vperm.xlu0 %8759, %v8952_v21  }
  0x64   :  { %2433 = vperm.xlu1 %8758, %v8912_v10   ;;  %2442 = vperm.xlu0 %8759, %v8982_v30  }
  0x68   :  { %2439 = vperm.xlu1 %8758, %v8947_v20   ;;  %2448 = vperm.xlu0 %8759, %v8999_v35  }
  0x6c   :  { %2445 = vperm.xlu1 %8758, %v8977_v29   ;;  %2454 = vperm.xlu0 %8759, %v9012_v38  }
  0x70   :  { %2451 = vperm.xlu1 %8758, %v8994_v34   ;;  %8760 = vset.pattern.permute.xlu0 %v8837_v41 }
  0x71   :  { %3606 = vperm.xlu0 %8760, %v8891_v2  }
  0x74   :  { %2457 = vperm.xlu1 %8758, %v9007_v37  }
  0x75   :  { %3615 = vperm.xlu0 %8760, %v8898_v3  }
  0x78   :  { %8761 = vset.pattern.permute.xlu1 %v8837_v41 }
  0x79   :  { %3609 = vperm.xlu1 %8761, %v8903_v4   ;;  %3621 = vperm.xlu0 %8760, %v8912_v10  }
  0x7d   :  { %3612 = vperm.xlu1 %8761, %v8886_v1   ;;  %3627 = vperm.xlu0 %8760, %v8947_v20  }
  0x81   :  { %3618 = vperm.xlu1 %8761, %v8917_v11   ;;  %3633 = vperm.xlu0 %8760, %v8977_v29  }
  0x85   :  { %3624 = vperm.xlu1 %8761, %v8952_v21   ;;  %3639 = vperm.xlu0 %8760, %v8994_v34  }
  0x89   :  { %3630 = vperm.xlu1 %8761, %v8982_v30   ;;  %3645 = vperm.xlu0 %8760, %v9007_v37  }
  0x8d   :  { %3636 = vperm.xlu1 %8761, %v8999_v35  }
  0x91   :  { %3642 = vperm.xlu1 %8761, %v9012_v38  }
  0x99   :  { %v164_v44 = vpop.permute.xlu1 %163  ;;  %v158_v45 = vpop.permute.xlu0 %157 }
  0x9a   :  { %vm200_vm1 = vcmp.eq.s32.totalorder %v9055_v43, %v164_v44  ;;  %vm198_vm2 = vcmp.eq.s32.totalorder %v9055_v43, %v158_v45 }
  0x9b   :  { %v9062_v47 = vsel %vm200_vm1, 1.0, %v12235_v46  ;;  %v9065_v48 = vsel %vm198_vm2, 1.0, %v12235_v46 }
  0x9c   :  { %v252_v49 = vsel %vm244_vm0, %v9062_v47, 0  ;;  %7699 = vmatprep.mubr.msk.f32.mxu1 %vm244_vm0, %v9065_v48  ;;  %v246_v50 = vsel %vm244_vm0, %v9065_v48, 0 }
  0x9d   :  { %v9075_v51 = vsub.f32 %v252_v49, %v252_v49  ;;  %v167_v52 = vpop.permute.xlu1 %166  ;;  %v161_v53 = vpop.permute.xlu0 %160  ;;  %v9077_v54 = vsub.f32 %v246_v50, %v246_v50 }
  0x9e   :  { %vm201_vm3 = vcmp.eq.s32.totalorder %v9055_v43, %v167_v52  ;;  %vm199_vm4 = vcmp.eq.s32.totalorder %v9055_v43, %v161_v53 }
  0x9f   :  { %v9082_v55 = vsel %vm201_vm3, 1.0, %v12235_v46  ;;  %v9085_v56 = vsel %vm199_vm4, 1.0, %v12235_v46  ;;  %v358_v57 = vand.u32 4294901760, %v9077_v54  ;;  %v12238_v60 = vand.u32 4294901760, %v9075_v51 }
  0xa0   :  { %v255_v58 = vsel %vm244_vm0, %v9082_v55, 0  ;;  %v249_v59 = vsel %vm244_vm0, %v9085_v56, 0  ;;  %7700 = vmatmul.mubr.msk.f32.vlgmr.msra.gmra.mxu1 %vm244_vm0, %v9085_v56 }
  0xa1   :  { %v9095_v61 = vsub.f32 %v255_v58, %v255_v58  ;;  %v9097_v62 = vsub.f32 %v249_v59, %v249_v59  ;;  %v173_v63 = vpop.permute.xlu1 %172  ;;  %7702 = vmatprep.mubr.msk.f32.mxu1 %vm244_vm0, %v9062_v47  ;;  %v170_v0 = vpop.permute.xlu0 %169  ;;  %v359_v5 = vsub.f32 %v9077_v54, %v358_v57  ;;  %7750 = vmatpush3.msra.mxu1 %v8907_v6 }
  0xa2   :  { %vm203_vm5 = vcmp.eq.s32.totalorder %v9055_v43, %v173_v63  ;;  %vm202_vm6 = vcmp.eq.s32.totalorder %v9055_v43, %v170_v0  ;;  %7751 = vmatprep.subr.mxu1 %v8919_v12  ;;  %v379_v28 = vsub.f32 %v9075_v51, %v12238_v60 }
  0xa3   :  { %v9108_v7 = vsel %vm203_vm5, 1.0, %v12235_v46  ;;  %v9111_v8 = vsel %vm202_vm6, 1.0, %v12235_v46  ;;  %v360_v9 = vand.u32 4294901760, %v359_v5  ;;  %v368_v24 = vand.u32 4294901760, %v9097_v62  ;;  %7752 = vmatpush3.msra.mxu1 %v8919_v12 }
  0xa4   :  { %v261_v26 = vsel %vm244_vm0, %v9108_v7, 0  ;;  %v258_v27 = vsel %vm244_vm0, %v9111_v8, 0  ;;  %7703 = vmatmul.mubr.msk.f32.gmra.mxu1 %vm244_vm0, %v9082_v55  ;;  %v12233_v31 = vand.u32 4294901760, %v9095_v61  ;;  %7753 = vmatprep.subr.mxu1 %v8921_v13  ;;  %v380_v53 = vand.u32 4294901760, %v379_v28 }
  0xa5   :  { %v9125_v32 = vsub.f32 %v261_v26, %v261_v26  ;;  %v9127_v33 = vsub.f32 %v258_v27, %v258_v27  ;;  %v179_v36 = vpop.permute.xlu1 %178  ;;  %7670 = vmatprep.mubr.f32.mxu0 %v360_v9  ;;  %7705 = vmatprep.mubr.msk.f32.mxu1 %vm244_vm0, %v9111_v8  ;;  %v176_v39 = vpop.permute.xlu0 %175  ;;  %v369_v40 = vsub.f32 %v9097_v62, %v368_v24 }
  0xa6   :  { %vm205_vm7 = vcmp.eq.s32.totalorder %v9055_v43, %v179_v36  ;;  %vm204_vm8 = vcmp.eq.s32.totalorder %v9055_v43, %v176_v39  ;;  %v389_v41 = vsub.f32 %v9095_v61, %v12233_v31  ;;  %7754 = vmatpush3.msra.mxu1 %v8921_v13 }
  0xa7   :  { %v9141_v42 = vsel %vm205_vm7, 1.0, %v12235_v46  ;;  %v9144_v44 = vsel %vm204_vm8, 1.0, %v12235_v46  ;;  %v370_v45 = vand.u32 4294901760, %v369_v40  ;;  %v12232_v49 = vand.u32 4294901760, %v9127_v33  ;;  %7755 = vmatprep.subr.mxu1 %v8923_v14 }
  0xa8   :  { %v267_v50 = vsel %vm244_vm0, %v9141_v42, 0  ;;  %v264_v52 = vsel %vm244_vm0, %v9144_v44, 0  ;;  %7706 = vmatmul.mubr.msk.f32.gmra.mxu1 %vm244_vm0, %v9108_v7  ;;  %v12231_v58 = vand.u32 4294901760, %v9125_v32  ;;  %v390_v26 = vand.u32 4294901760, %v389_v41 }
  0xa9   :  { %v9155_v59 = vsub.f32 %v267_v50, %v267_v50  ;;  %v9157_v63 = vsub.f32 %v264_v52, %v264_v52  ;;  %v185_v0 = vpop.permute.xlu1 %184  ;;  %7671 = vmatmul.mubr.f32.vlgmr.msra.gmra.mxu0 %v370_v45  ;;  %7708 = vmatprep.mubr.msk.f32.mxu1 %vm244_vm0, %v9144_v44  ;;  %v182_v5 = vpop.permute.xlu0 %181  ;;  %v399_v9 = vsub.f32 %v9127_v33, %v12232_v49 }
  0xaa   :  { %vm207_vm9 = vcmp.eq.s32.totalorder %v9055_v43, %v185_v0  ;;  %7721 = vmatpush3.msra.mxu0 %v8926_v15  ;;  %vm206_vm10 = vcmp.eq.s32.totalorder %v9055_v43, %v182_v5  ;;  %7673 = vmatprep.mubr.f32.mxu0 %v380_v53  ;;  %v409_v27 = vsub.f32 %v9125_v32, %v12231_v58 }
  0xab   :  { %v9171_v28 = vsel %vm207_vm9, 1.0, %v12235_v46  ;;  %v9174_v36 = vsel %vm206_vm10, 1.0, %v12235_v46  ;;  %v400_v39 = vand.u32 4294901760, %v399_v9  ;;  %7722 = vmatprep.subr.mxu0 %v8930_v16  ;;  %v12229_v40 = vand.u32 4294901760, %v9157_v63  ;;  %7756 = vmatpush3.msra.mxu1 %v8923_v14 }
  0xac   :  { %v273_v15 = vsel %vm244_vm0, %v9171_v28, 0  ;;  %v270_v41 = vsel %vm244_vm0, %v9174_v36, 0  ;;  %7709 = vmatmul.mubr.msk.f32.gmra.mxu1 %vm244_vm0, %v9141_v42  ;;  %7723 = vmatpush3.msra.mxu0 %v8930_v16  ;;  %v12230_v45 = vand.u32 4294901760, %v9155_v59  ;;  %v410_v16 = vand.u32 4294901760, %v409_v27 }
  0xad   :  { %v9187_v50 = vsub.f32 %v273_v15, %v273_v15  ;;  %v9189_v52 = vsub.f32 %v270_v41, %v270_v41  ;;  %v191_v53 = vpop.permute.xlu1 %190  ;;  %7674 = vmatmul.mubr.f32.gmra.mxu0 %v390_v26  ;;  %7711 = vmatprep.mubr.msk.f32.mxu1 %vm244_vm0, %v9174_v36  ;;  %v188_v0 = vpop.permute.xlu0 %187  ;;  %v419_v5 = vsub.f32 %v9157_v63, %v12229_v40 }
  0xae   :  { %vm209_vm11 = vcmp.eq.s32.totalorder %v9055_v43, %v191_v53  ;;  %vm208_vm12 = vcmp.eq.s32.totalorder %v9055_v43, %v188_v0  ;;  %7676 = vmatprep.mubr.f32.mxu0 %v400_v39  ;;  %v429_v9 = vsub.f32 %v9155_v59, %v12230_v45  ;;  %7724 = vmatprep.subr.mxu0 %v8933_v17 }
  0xaf   :  { %v9203_v26 = vsel %vm209_vm11, 1.0, %v12235_v46  ;;  %v9206_v15 = vsel %vm208_vm12, 1.0, %v12235_v46  ;;  %v420_v41 = vand.u32 4294901760, %v419_v5  ;;  %v12234_v40 = vand.u32 4294901760, %v9189_v52  ;;  %7725 = vmatpush3.msra.mxu0 %v8933_v17  ;;  %7807 = vmatprep.subr.mxu1 %v8907_v6 }
  0xb0   :  { %v279_v27 = vsel %vm244_vm0, %v9203_v26, 0  ;;  %v276_v39 = vsel %vm244_vm0, %v9206_v15, 0  ;;  %7712 = vmatmul.mubr.msk.f32.gmra.mxu1 %vm244_vm0, %v9171_v28  ;;  %v12237_v53 = vand.u32 4294901760, %v9187_v50  ;;  %7726 = vmatprep.subr.mxu0 %v8936_v18  ;;  %v430_v49 = vand.u32 4294901760, %v429_v9 }
  0xb1   :  { %v9219_v0 = vsub.f32 %v279_v27, %v279_v27  ;;  %v9221_v5 = vsub.f32 %v276_v39, %v276_v39  ;;  %v197_v17 = vpop.permute.xlu1 %196  ;;  %7677 = vmatmul.mubr.f32.gmra.mxu0 %v410_v16  ;;  %7714 = vmatprep.mubr.msk.f32.mxu1 %vm244_vm0, %v9206_v15  ;;  %v194_v45 = vpop.permute.xlu0 %193  ;;  %v439_v58 = vsub.f32 %v9189_v52, %v12234_v40 }
  0xb2   :  { %vm211_vm13 = vcmp.eq.s32.totalorder %v9055_v43, %v197_v17  ;;  %vm210_vm14 = vcmp.eq.s32.totalorder %v9055_v43, %v194_v45  ;;  %7679 = vmatprep.mubr.f32.mxu0 %v420_v41  ;;  %v449_v27 = vsub.f32 %v9187_v50, %v12237_v53  ;;  %7727 = vmatpush3.msra.mxu0 %v8936_v18 }
  0xb3   :  { %v9235_v16 = vsel %vm211_vm13, 1.0, %v12235_v46  ;;  %v9238_v39 = vsel %vm210_vm14, 1.0, %v12235_v46  ;;  %v440_v31 = vand.u32 4294901760, %v439_v58  ;;  %v12240_v40 = vand.u32 4294901760, %v9221_v5  ;;  %7778 = vmatprep.subr.mxu0 %v8942_v19 }
  0xb4   :  { %v285_v45 = vsel %vm244_vm0, %v9235_v16, 0  ;;  %v282_v9 = vsel %vm244_vm0, %v9238_v39, 0  ;;  %7715 = vmatmul.mubr.msk.f32.gmra.mxu1 %vm244_vm0, %v9203_v26  ;;  %v12239_v41 = vand.u32 4294901760, %v9219_v0  ;;  %v450_v46 = vand.u32 4294901760, %v449_v27 }
  0xb5   :  { %v9251_v58 = vsub.f32 %v285_v45, %v285_v45  ;;  %v9253_v17 = vsub.f32 %v282_v9, %v282_v9  ;;  %7680 = vmatmul.mubr.f32.gmra.mxu0 %v430_v49  ;;  %7717 = vmatprep.mubr.msk.f32.mxu1 %vm244_vm0, %v9238_v39  ;;  %v459_v18 = vsub.f32 %v9221_v5, %v12240_v40  ;;  %v155_v49 = vld [vmem:[#allocation2 + $0x18] sm:$0xff] }
  0xb6   :  { %7682 = vmatprep.mubr.f32.mxu0 %v440_v31  ;;  %v469_v60 = vsub.f32 %v9219_v0, %v12239_v41  ;;  %v9273_v40 = vand.u32 4294901760, %v155_v49 }
  0xb7   :  { %v460_v53 = vand.u32 4294901760, %v459_v18  ;;  %v478_v45 = vand.u32 4294901760, %v9253_v17  ;;  %v488_v9 = vand.u32 4294901760, %v9251_v58 }
  0xb8   :  { %7718 = vmatmul.mubr.msk.f32.gmra.mxu1 %vm244_vm0, %v9235_v16  ;;  %v470_v27 = vand.u32 4294901760, %v469_v60  ;;  %v9282_v60 = vsub.f32 %v155_v49, %v9273_v40  ;;  %v12373_v49 = vand.u32 4294901760, %v9157_v63 }
  0xb9   :  { %7683 = vmatmul.mubr.f32.gmra.mxu0 %v450_v46  ;;  %7757 = vmatprep.mubr.f32.mxu1 %v358_v57  ;;  %v479_v31 = vsub.f32 %v9253_v17, %v478_v45  ;;  %v489_v41 = vsub.f32 %v9251_v58, %v488_v9  ;;  %v12369_v46 = vand.u32 4294901760, %v9075_v51 }
  0xba   :  { %7685 = vmatprep.mubr.f32.mxu0 %v460_v53  ;;  %v12370_v53 = vand.u32 4294901760, %v9095_v61 }
  0xbb   :  { %v480_v18 = vand.u32 4294901760, %v479_v31  ;;  %v490_v57 = vand.u32 4294901760, %v489_v41  ;;  %v12371_v31 = vand.u32 4294901760, %v9127_v33  ;;  %v154_v41 = vld [vmem:[#allocation2 + $0x10] sm:$0xff] }
  0xbc   :  { %7758 = vmatmul.mubr.f32.vlgmr.msra.gmra.mxu1 %v368_v24  ;;  %v12372_v24 = vand.u32 4294901760, %v9125_v32 }
  0xbd   :  { %7686 = vmatmul.mubr.f32.gmra.mxu0 %v470_v27  ;;  %7760 = vmatprep.mubr.f32.mxu1 %v12369_v46  ;;  %v12374_v27 = vand.u32 4294901760, %v9155_v59  ;;  %v12378_v46 = vand.u32 4294901760, %v9219_v0 }
  0xbe   :  { %7688 = vmatprep.mubr.f32.mxu0 %v480_v18  ;;  %7808 = vmatpush3.msra.mxu1 %v8907_v6  ;;  %v9292_v6 = vand.u32 4294901760, %v9282_v60 }
  0xbf   :  { %7809 = vmatprep.subr.mxu1 %v8919_v12 }
  0xc0   :  { %7761 = vmatmul.mubr.f32.gmra.mxu1 %v12370_v53  ;;  %v73_v53 = vpop.permute.xlu1 %72 }
  0xc1   :  { %7689 = vmatmul.mubr.f32.gmra.mxu0 %v490_v57  ;;  %7763 = vmatprep.mubr.f32.mxu1 %v12371_v31  ;;  %v8839_v57 = vmov 4   ;;  %vm111_vm1 = vcmp.eq.s32.totalorder %v9055_v43, %v73_v53 }
  0xc2   :  { %7728 = vmatprep.mubr.f32.mxu0 %v9077_v54  ;;  %7810 = vmatpush3.msra.mxu1 %v8919_v12  ;;  %v1610_v12 = vsub.f32 %v9282_v60, %v9292_v6  ;;  %v9305_v54 = vand.u32 4294901760, %v154_v41 }
  0xc3   :  { %7811 = vmatprep.subr.mxu1 %v8921_v13  ;;  %8762 = vset.pattern.permute.xlu1 %v8839_v57 }
  0xc4   :  { %7764 = vmatmul.mubr.f32.gmra.mxu1 %v12372_v24  ;;  %8763 = vset.pattern.permute.xlu0 %v8839_v57 }
  0xc5   :  { %7729 = vmatmul.mubr.f32.vlgmr.msra.gmra.mxu0 %v9097_v62  ;;  %7766 = vmatprep.mubr.f32.mxu1 %v12373_v49  ;;  %v153_v62 = vld [vmem:[#allocation2 + $0x8] sm:$0xff] }
  0xc6   :  { %7779 = vmatpush3.msra.mxu0 %v8942_v19  ;;  %7731 = vmatprep.mubr.f32.mxu0 %v9075_v51  ;;  %v12375_v19 = vand.u32 4294901760, %v9189_v52  ;;  %v9318_v51 = vsub.f32 %v154_v41, %v9305_v54  ;;  %v9320_v18 = vand.u32 4294901760, %v153_v62 }
  0xc7   :  { %7780 = vmatprep.subr.mxu0 %v8955_v22  ;;  %7812 = vmatpush3.msra.mxu1 %v8921_v13  ;;  %v1611_v13 = vand.u32 4294901760, %v1610_v12 }
  0xc8   :  { %7767 = vmatmul.mubr.f32.gmra.mxu1 %v12374_v27  ;;  %7781 = vmatpush3.msra.mxu0 %v8955_v22  ;;  %v12376_v22 = vand.u32 4294901760, %v9187_v50 }
  0xc9   :  { %7732 = vmatmul.mubr.f32.gmra.mxu0 %v9095_v61  ;;  %7769 = vmatprep.mubr.f32.mxu1 %v12375_v19  ;;  %v12377_v61 = vand.u32 4294901760, %v9221_v5 }
  0xca   :  { %7734 = vmatprep.mubr.f32.mxu0 %v9127_v33  ;;  %7782 = vmatprep.subr.mxu0 %v8958_v23  ;;  %v9335_v33 = vsub.f32 %v153_v62, %v9320_v18 }
  0xcb   :  { %7783 = vmatpush3.msra.mxu0 %v8958_v23  ;;  %7813 = vmatprep.subr.mxu1 %v8923_v14  ;;  %v9332_v23 = vand.u32 4294901760, %v9318_v51 }
  0xcc   :  { %7770 = vmatmul.mubr.f32.gmra.mxu1 %v12376_v22  ;;  %7784 = vmatprep.subr.mxu0 %v8964_v25 }
  0xcd   :  { %7735 = vmatmul.mubr.f32.gmra.mxu0 %v9125_v32  ;;  %7772 = vmatprep.mubr.f32.mxu1 %v12377_v61  ;;  %v152_v32 = vld [vmem:[#allocation2] sm:$0xff] }
  0xce   :  { %7737 = vmatprep.mubr.f32.mxu0 %v9157_v63  ;;  %7814 = vmatpush3.msra.mxu1 %v8923_v14  ;;  %v1617_v14 = vsub.f32 %v9318_v51, %v9332_v23  ;;  %v9347_v63 = vand.u32 4294901760, %v152_v32 }
  0xcf   :  { %7785 = vmatpush3.msra.mxu0 %v8964_v25  ;;  %7865 = vmatprep.subr.mxu1 %v1611_v13  ;;  %v9345_v25 = vand.u32 4294901760, %v9335_v33 }
  0xd0   :  { %7773 = vmatmul.mubr.f32.gmra.mxu1 %v12378_v46  ;;  %7836 = vmatprep.subr.mxu0 %v9273_v40  ;;  %v9360_v31 = vsub.f32 %v152_v32, %v9347_v63 }
  0xd1   :  { %7738 = vmatmul.mubr.f32.gmra.mxu0 %v9155_v59  ;;  %7775 = vmatprep.mubr.f32.mxu1 %v478_v45  ;;  %v70_v59 = vpop.permute.xlu0 %69  ;;  %v1624_v45 = vsub.f32 %v9335_v33, %v9345_v25 }
  0xd2   :  { %7740 = vmatprep.mubr.f32.mxu0 %v9189_v52  ;;  %4794 = vperm.xlu1 %8762, %v8891_v2   ;;  %v1618_v52 = vand.u32 4294901760, %v1617_v14  ;;  %v76_v2 = vpop.permute.xlu1 %75  ;;  %vm110_vm15 = vcmp.eq.s32.totalorder %v9055_v43, %v70_v59 }
  0xd3   :  { %4797 = vperm.xlu0 %8763, %v8903_v4   ;;  %v1625_v4 = vand.u32 4294901760, %v1624_v45  ;;  %vm112_vm2 = vcmp.eq.s32.totalorder %v9055_v43, %v76_v2 }
  0xd4   :  { %7776 = vmatmul.mubr.f32.gmra.mxu1 %v488_v9 }
  0xd5   :  { %7741 = vmatmul.mubr.f32.gmra.mxu0 %v9187_v50  ;;  %7815 = vmatprep.mubr.msk.f32.mxu1 %vm244_vm0, %v9065_v48  ;;  %v9370_v50 = vand.u32 4294901760, %v9360_v31 }
  0xd6   :  { %7743 = vmatprep.mubr.f32.mxu0 %v9221_v5  ;;  %4800 = vperm.xlu1 %8762, %v8886_v1   ;;  %v79_v1 = vpop.permute.xlu0 %78 }
  0xd7   :  { %4806 = vperm.xlu0 %8763, %v8917_v11   ;;  %v82_v11 = vpop.permute.xlu1 %81  ;;  %vm113_vm3 = vcmp.eq.s32.totalorder %v9055_v43, %v79_v1 }
  0xd8   :  { %7816 = vmatmul.mubr.msk.f32.vlgmr.msra.gmra.mxu1 %vm244_vm0, %v9085_v56  ;;  %vm114_vm4 = vcmp.eq.s32.totalorder %v9055_v43, %v82_v11 }
  0xd9   :  { %7744 = vmatmul.mubr.f32.gmra.mxu0 %v9219_v0  ;;  %7818 = vmatprep.mubr.msk.f32.mxu1 %vm244_vm0, %v9062_v47  ;;  %v1631_v0 = vsub.f32 %v9360_v31, %v9370_v50 }
  0xda   :  { %7746 = vmatprep.mubr.f32.mxu0 %v9253_v17  ;;  %7866 = vmatpush3.msra.mxu1 %v1611_v13 }
  0xdb   :  { %7867 = vmatprep.subr.mxu1 %v1618_v52  ;;  %4803 = vperm.xlu1 %8762, %v8898_v3   ;;  %v85_v3 = vpop.permute.xlu0 %84 }
  0xdc   :  { %7819 = vmatmul.mubr.msk.f32.gmra.mxu1 %vm244_vm0, %v9082_v55  ;;  %4812 = vperm.xlu0 %8763, %v8952_v21   ;;  %v12379_v21 = vmov 0.0   ;;  %vm115_vm5 = vcmp.eq.s32.totalorder %v9055_v43, %v85_v3 }
  0xdd   :  { %7747 = vmatmul.mubr.f32.gmra.mxu0 %v9251_v58  ;;  %7821 = vmatprep.mubr.msk.f32.mxu1 %vm244_vm0, %v9111_v8  ;;  %v9397_v5 = vsel %vm110_vm15, 1.0, %v12379_v21  ;;  %v9428_v9 = vsel %vm112_vm2, 1.0, %v12379_v21  ;;  %v9452_v49 = vsel %vm114_vm4, 1.0, %v12379_v21  ;;  %v9465_v19 = vsel %vm115_vm5, 1.0, %v12379_v21 }
  0xde   :  { %7786 = vmatprep.mubr.msk.f32.mxu0 %vm244_vm0, %v9065_v48  ;;  %7868 = vmatpush3.msra.mxu1 %v1618_v52  ;;  %v1632_v48 = vand.u32 4294901760, %v1631_v0  ;;  %v1332_v58 = vsel %vm244_vm0, %v9397_v5, 0  ;;  %v1338_v41 = vsel %vm244_vm0, %v9428_v9, 0  ;;  %v1344_v13 = vsel %vm244_vm0, %v9452_v49, 0 }
  0xdf   :  { %7869 = vmatprep.subr.mxu1 %v1625_v4  ;;  %v9425_v17 = vsub.f32 %v1332_v58, %v1332_v58  ;;  %4809 = vperm.xlu1 %8762, %v8912_v10   ;;  %v9460_v62 = vsub.f32 %v1338_v41, %v1338_v41  ;;  %v9492_v46 = vsub.f32 %v1344_v13, %v1344_v13 }
  0xe0   :  { %7822 = vmatmul.mubr.msk.f32.gmra.mxu1 %vm244_vm0, %v9108_v7  ;;  %4818 = vperm.xlu0 %8763, %v8982_v30  }
  0xe1   :  { %7787 = vmatmul.mubr.msk.f32.vlgmr.msra.gmra.mxu0 %vm244_vm0, %v9085_v56  ;;  %7824 = vmatprep.mubr.msk.f32.mxu1 %vm244_vm0, %v9144_v44  ;;  %v9410_v56 = vsel %vm111_vm1, 1.0, %v12379_v21  ;;  %v1444_v12 = vand.u32 4294901760, %v9425_v17  ;;  %v1464_v32 = vand.u32 4294901760, %v9460_v62 }
  0xe2   :  { %7837 = vmatpush3.msra.mxu0 %v9273_v40  ;;  %7789 = vmatprep.mubr.msk.f32.mxu0 %vm244_vm0, %v9062_v47  ;;  %v88_v47 = vpop.permute.xlu1 %87 }
  0xe3   :  { %7838 = vmatprep.subr.mxu0 %v9305_v54  ;;  %7870 = vmatpush3.msra.mxu1 %v1625_v4  ;;  %vm116_vm6 = vcmp.eq.s32.totalorder %v9055_v43, %v88_v47  ;;  %v1445_v22 = vsub.f32 %v9425_v17, %v1444_v12  ;;  %v1484_v4 = vand.u32 4294901760, %v9492_v46 }
  0xe4   :  { %7825 = vmatmul.mubr.msk.f32.gmra.mxu1 %vm244_vm0, %v9141_v42  ;;  %7839 = vmatpush3.msra.mxu0 %v9305_v54  ;;  %v9473_v10 = vsel %vm116_vm6, 1.0, %v12379_v21 }
  0xe5   :  { %7790 = vmatmul.mubr.msk.f32.gmra.mxu0 %vm244_vm0, %v9082_v55  ;;  %7827 = vmatprep.mubr.msk.f32.mxu1 %vm244_vm0, %v9174_v36  ;;  %v91_v55 = vpop.permute.xlu0 %90  ;;  %v1446_v59 = vand.u32 4294901760, %v1445_v22 }
  0xe6   :  { %7792 = vmatprep.mubr.msk.f32.mxu0 %vm244_vm0, %v9111_v8  ;;  %7840 = vmatprep.subr.mxu0 %v9320_v18  ;;  %v1335_v8 = vsel %vm244_vm0, %v9410_v56, 0  ;;  %vm117_vm7 = vcmp.eq.s32.totalorder %v9055_v43, %v91_v55 }
  0xe7   :  { %7841 = vmatpush3.msra.mxu0 %v9320_v18  ;;  %7871 = vmatprep.subr.mxu1 %v1632_v48  ;;  %v9439_v24 = vsub.f32 %v1335_v8, %v1335_v8  ;;  %v9503_v14 = vsel %vm117_vm7, 1.0, %v12379_v21 }
  0xe8   :  { %7828 = vmatmul.mubr.msk.f32.gmra.mxu1 %vm244_vm0, %v9171_v28  ;;  %7842 = vmatprep.subr.mxu0 %v9347_v63  ;;  %v1353_v45 = vsel %vm244_vm0, %v9503_v14, 0 }
  0xe9   :  { %7793 = vmatmul.mubr.msk.f32.gmra.mxu0 %vm244_vm0, %v9108_v7  ;;  %7830 = vmatprep.mubr.msk.f32.mxu1 %vm244_vm0, %v9206_v15  ;;  %v94_v7 = vpop.permute.xlu1 %93  ;;  %v97_v27 = vpop.permute.xlu0 %96  ;;  %v9550_v3 = vsub.f32 %v1353_v45, %v1353_v45 }
  0xea   :  { %7795 = vmatprep.mubr.msk.f32.mxu0 %vm244_vm0, %v9144_v44  ;;  %7872 = vmatpush3.msra.mxu1 %v1632_v48  ;;  %v9444_v44 = vsel %vm113_vm3, 1.0, %v12379_v21  ;;  %vm118_vm8 = vcmp.eq.s32.totalorder %v9055_v43, %v94_v7  ;;  %vm119_vm9 = vcmp.eq.s32.totalorder %v9055_v43, %v97_v27  ;;  %v1485_v7 = vsub.f32 %v9492_v46, %v1484_v4 }
  0xeb   :  { %7843 = vmatpush3.msra.mxu0 %v9347_v63  ;;  %7923 = vmatprep.subr.mxu1 %v9273_v40  ;;  %v9512_v53 = vsel %vm118_vm8, 1.0, %v12379_v21 }
  0xec   :  { %7831 = vmatmul.mubr.msk.f32.gmra.mxu1 %vm244_vm0, %v9203_v26  ;;  %7894 = vmatprep.subr.mxu0 %v9282_v60  ;;  %v1356_v1 = vsel %vm244_vm0, %v9512_v53, 0 }
  0xed   :  { %7796 = vmatmul.mubr.msk.f32.gmra.mxu0 %vm244_vm0, %v9141_v42  ;;  %7833 = vmatprep.mubr.msk.f32.mxu1 %vm244_vm0, %v9238_v39  ;;  %v1341_v42 = vsel %vm244_vm0, %v9444_v44, 0  ;;  %v100_v30 = vpop.permute.xlu1 %99  ;;  %v103_v57 = vpop.permute.xlu0 %102  ;;  %v9559_v58 = vsub.f32 %v1356_v1, %v1356_v1 }
  0xee   :  { %7798 = vmatprep.mubr.msk.f32.mxu0 %vm244_vm0, %v9174_v36  ;;  %v1454_v36 = vand.u32 4294901760, %v9439_v24  ;;  %4815 = vperm.xlu1 %8762, %v8947_v20   ;;  %v9486_v61 = vsub.f32 %v1341_v42, %v1341_v42  ;;  %vm120_vm10 = vcmp.eq.s32.totalorder %v9055_v43, %v100_v30  ;;  %vm121_vm11 = vcmp.eq.s32.totalorder %v9055_v43, %v103_v57 }
  0xef   :  { %4824 = vperm.xlu0 %8763, %v8999_v35   ;;  %v9545_v11 = vsel %vm120_vm10, 1.0, %v12379_v21  ;;  %v1524_v57 = vand.u32 4294901760, %v9559_v58 }
  0xf0   :  { %7834 = vmatmul.mubr.msk.f32.gmra.mxu1 %vm244_vm0, %v9235_v16  ;;  %v1455_v20 = vsub.f32 %v9439_v24, %v1454_v36  ;;  %v1362_v41 = vsel %vm244_vm0, %v9545_v11, 0 }
  0xf1   :  { %7799 = vmatmul.mubr.msk.f32.gmra.mxu0 %vm244_vm0, %v9171_v28  ;;  %7873 = vmatprep.mubr.msk.f32.mxu1 %vm244_vm0, %v9397_v5  ;;  %v1347_v28 = vsel %vm244_vm0, %v9465_v19, 0  ;;  %v106_v2 = vpop.permute.xlu1 %105  ;;  %v109_v48 = vpop.permute.xlu0 %108 }
  0xf2   :  { %7801 = vmatprep.mubr.msk.f32.mxu0 %vm244_vm0, %v9206_v15  ;;  %v1350_v15 = vsel %vm244_vm0, %v9473_v10, 0  ;;  %v9509_v35 = vsub.f32 %v1347_v28, %v1347_v28  ;;  %4821 = vperm.xlu1 %8762, %v8977_v29   ;;  %v9538_v29 = vsel %vm119_vm9, 1.0, %v12379_v21  ;;  %v1456_v0 = vand.u32 4294901760, %v1455_v20 }
  0xf3   :  { %v9518_v52 = vsub.f32 %v1350_v15, %v1350_v15  ;;  %4830 = vperm.xlu0 %8763, %v9012_v38   ;;  %vm122_vm12 = vcmp.eq.s32.totalorder %v9055_v43, %v106_v2  ;;  %v1359_v55 = vsel %vm244_vm0, %v9538_v29, 0  ;;  %vm123_vm13 = vcmp.eq.s32.totalorder %v9055_v43, %v109_v48 }
  0xf4   :  { %7874 = vmatmul.mubr.msk.f32.vlgmr.msra.gmra.mxu1 %vm244_vm0, %v9410_v56  ;;  %v1494_v38 = vand.u32 4294901760, %v9509_v35  ;;  %v9578_v27 = vsel %vm122_vm12, 1.0, %v12379_v21  ;;  %v9585_v13 = vsub.f32 %v1359_v55, %v1359_v55  ;;  %v1514_v28 = vand.u32 4294901760, %v9550_v3 }
  0xf5   :  { %7802 = vmatmul.mubr.msk.f32.gmra.mxu0 %vm244_vm0, %v9203_v26  ;;  %7876 = vmatprep.mubr.msk.f32.mxu1 %vm244_vm0, %v9428_v9  ;;  %v1474_v26 = vand.u32 4294901760, %v9486_v61  ;;  %v1504_v47 = vand.u32 4294901760, %v9518_v52  ;;  %v9593_v15 = vsub.f32 %v1362_v41, %v1362_v41  ;;  %v1486_v20 = vand.u32 4294901760, %v1485_v7 }
  0xf6   :  { %7804 = vmatprep.mubr.msk.f32.mxu0 %vm244_vm0, %v9238_v39  ;;  %7924 = vmatpush3.msra.mxu1 %v9273_v40  ;;  %v1465_v39 = vsub.f32 %v9460_v62, %v1464_v32  ;;  %v1495_v42 = vsub.f32 %v9509_v35, %v1494_v38  ;;  %v9606_v45 = vsel %vm123_vm13, 1.0, %v12379_v21  ;;  %v1515_v1 = vsub.f32 %v9550_v3, %v1514_v28 }
  0xf7   :  { %7925 = vmatprep.subr.mxu1 %v9305_v54  ;;  %4827 = vperm.xlu1 %8762, %v8994_v34   ;;  %v9573_v34 = vsel %vm121_vm11, 1.0, %v12379_v21  ;;  %v1505_v22 = vsub.f32 %v9518_v52, %v1504_v47  ;;  %v1525_v55 = vsub.f32 %v9559_v58, %v1524_v57 }
  0xf8   :  { %7877 = vmatmul.mubr.msk.f32.gmra.mxu1 %vm244_vm0, %v9444_v44  ;;  %v1466_v8 = vand.u32 4294901760, %v1465_v39  ;;  %v1496_v2 = vand.u32 4294901760, %v1495_v42  ;;  %v1516_v7 = vand.u32 4294901760, %v1515_v1  ;;  %v2504_v1 = vld [vmem:[#allocation2 + $0x58] sm:$0xff] }
  0xf9   :  { %7805 = vmatmul.mubr.msk.f32.gmra.mxu0 %vm244_vm0, %v9235_v16  ;;  %7879 = vmatprep.mubr.msk.f32.mxu1 %vm244_vm0, %v9452_v49  ;;  %v1475_v16 = vsub.f32 %v9486_v61, %v1474_v26 }
  0xfa   :  { %7844 = vmatprep.mubr.f32.mxu0 %v1446_v59  ;;  %7926 = vmatpush3.msra.mxu1 %v9305_v54  ;;  %v1368_v59 = vsel %vm244_vm0, %v9578_v27, 0 }
  0xfb   :  { %7927 = vmatprep.subr.mxu1 %v9320_v18  ;;  %v1476_v30 = vand.u32 4294901760, %v1475_v16  ;;  %v9619_v48 = vsub.f32 %v1368_v59, %v1368_v59  ;;  %v1371_v16 = vsel %vm244_vm0, %v9606_v45, 0  ;;  %4833 = vperm.xlu1 %8762, %v9007_v37  }
  0xfc   :  { %7880 = vmatmul.mubr.msk.f32.gmra.mxu1 %vm244_vm0, %v9465_v19 }
  0xfd   :  { %7845 = vmatmul.mubr.f32.vlgmr.msra.gmra.mxu0 %v1456_v0  ;;  %7882 = vmatprep.mubr.msk.f32.mxu1 %vm244_vm0, %v9473_v10  ;;  %v1534_v0 = vand.u32 4294901760, %v9585_v13 }
  0xfe   :  { %7895 = vmatpush3.msra.mxu0 %v9282_v60  ;;  %7847 = vmatprep.mubr.f32.mxu0 %v1466_v8  ;;  %v1365_v60 = vsel %vm244_vm0, %v9573_v34, 0  ;;  %v1544_v8 = vand.u32 4294901760, %v9593_v15 }
  0xff   :  { %7896 = vmatprep.subr.mxu0 %v9318_v51  ;;  %7928 = vmatpush3.msra.mxu1 %v9320_v18  ;;  %v9611_v39 = vsub.f32 %v1365_v60, %v1365_v60  ;;  %v1535_v41 = vsub.f32 %v9585_v13, %v1534_v0  ;;  %v1564_v60 = vand.u32 4294901760, %v9619_v48 }
 0x100   :  { %7883 = vmatmul.mubr.msk.f32.gmra.mxu1 %vm244_vm0, %v9503_v14  ;;  %7897 = vmatpush3.msra.mxu0 %v9318_v51  ;;  %v1506_v51 = vand.u32 4294901760, %v1505_v22  ;;  %v1545_v22 = vsub.f32 %v9593_v15, %v1544_v8 }
 0x101   :  { %7848 = vmatmul.mubr.f32.gmra.mxu0 %v1476_v30  ;;  %7885 = vmatprep.mubr.msk.f32.mxu1 %vm244_vm0, %v9512_v53  ;;  %v1554_v42 = vand.u32 4294901760, %v9611_v39  ;;  %v1526_v30 = vand.u32 4294901760, %v1525_v55  ;;  %v9665_v55 = vand.u32 4294901760, %v2504_v1 }
 0x102   :  { %7850 = vmatprep.mubr.f32.mxu0 %v1486_v20  ;;  %7898 = vmatprep.subr.mxu0 %v9335_v33 }
 0x103   :  { %7899 = vmatpush3.msra.mxu0 %v9335_v33  ;;  %7929 = vmatprep.subr.mxu1 %v9347_v63  ;;  %v9633_v33 = vsub.f32 %v1371_v16, %v1371_v16  ;;  %v1555_v20 = vsub.f32 %v9611_v39, %v1554_v42 }
 0x104   :  { %7886 = vmatmul.mubr.msk.f32.gmra.mxu1 %vm244_vm0, %v9538_v29  ;;  %7900 = vmatprep.subr.mxu0 %v9360_v31 }
 0x105   :  { %7851 = vmatmul.mubr.f32.gmra.mxu0 %v1496_v2  ;;  %7888 = vmatprep.mubr.msk.f32.mxu1 %vm244_vm0, %v9545_v11  ;;  %v1574_v59 = vand.u32 4294901760, %v9633_v33  ;;  %v1546_v2 = vand.u32 4294901760, %v1545_v22  ;;  %v1556_v37 = vand.u32 4294901760, %v1555_v20 }
 0x106   :  { %7853 = vmatprep.mubr.f32.mxu0 %v1506_v51  ;;  %7930 = vmatpush3.msra.mxu1 %v9347_v63  ;;  %v1565_v51 = vsub.f32 %v9619_v48, %v1564_v60 }
 0x107   :  { %7901 = vmatpush3.msra.mxu0 %v9360_v31  ;;  %7981 = vmatprep.subr.mxu1 %v9273_v40  ;;  %v1536_v31 = vand.u32 4294901760, %v1535_v41  ;;  %v1575_v16 = vsub.f32 %v9633_v33, %v1574_v59  ;;  %v9674_v41 = vsub.f32 %v2504_v1, %v9665_v55 }
 0x108   :  { %7889 = vmatmul.mubr.msk.f32.gmra.mxu1 %vm244_vm0, %v9573_v34  ;;  %7952 = vmatprep.subr.mxu0 %v9292_v6 }
 0x109   :  { %7854 = vmatmul.mubr.f32.gmra.mxu0 %v1516_v7  ;;  %7891 = vmatprep.mubr.msk.f32.mxu1 %vm244_vm0, %v9578_v27  ;;  %v1566_v7 = vand.u32 4294901760, %v1565_v51 }
 0x10a   :  { %7856 = vmatprep.mubr.f32.mxu0 %v1526_v30 }
 0x10c   :  { %7892 = vmatmul.mubr.msk.f32.gmra.mxu1 %vm244_vm0, %v9606_v45 }
 0x10d   :  { %7857 = vmatmul.mubr.f32.gmra.mxu0 %v1536_v31  ;;  %7931 = vmatprep.mubr.f32.mxu1 %v1444_v12  ;;  %v1576_v12 = vand.u32 4294901760, %v1575_v16 }
 0x10e   :  { %7859 = vmatprep.mubr.f32.mxu0 %v1546_v2 }
 0x110   :  { %7932 = vmatmul.mubr.f32.vlgmr.msra.gmra.mxu1 %v1454_v36  ;;  %v2503_v36 = vld [vmem:[#allocation2 + $0x50] sm:$0xff] }
 0x111   :  { %7860 = vmatmul.mubr.f32.gmra.mxu0 %v1556_v37  ;;  %7934 = vmatprep.mubr.f32.mxu1 %v1464_v32 }
 0x112   :  { %7862 = vmatprep.mubr.f32.mxu0 %v1566_v7  ;;  %7982 = vmatpush3.msra.mxu1 %v9273_v40  ;;  %v9684_v40 = vand.u32 4294901760, %v9674_v41 }
 0x113   :  { %7983 = vmatprep.subr.mxu1 %v9305_v54 }
 0x114   :  { %7935 = vmatmul.mubr.f32.gmra.mxu1 %v1474_v26 }
 0x115   :  { %7863 = vmatmul.mubr.f32.gmra.mxu0 %v1576_v12  ;;  %7937 = vmatprep.mubr.f32.mxu1 %v1484_v4 }
 0x116   :  { %7902 = vmatprep.mubr.f32.mxu0 %v9425_v17  ;;  %7984 = vmatpush3.msra.mxu1 %v9305_v54  ;;  %v2784_v54 = vsub.f32 %v9674_v41, %v9684_v40  ;;  %v9697_v17 = vand.u32 4294901760, %v2503_v36 }
 0x117   :  { %7985 = vmatprep.subr.mxu1 %v9320_v18 }
 0x118   :  { %7938 = vmatmul.mubr.f32.gmra.mxu1 %v1494_v38  ;;  %v2422_v38 = vpop.permute.xlu0 %2421 }
 0x119   :  { %7903 = vmatmul.mubr.f32.vlgmr.msra.gmra.mxu0 %v9439_v24  ;;  %7940 = vmatprep.mubr.f32.mxu1 %v1504_v47  ;;  %v2502_v24 = vld [vmem:[#allocation2 + $0x48] sm:$0xff]  ;;  %vm2460_vm15 = vcmp.eq.s32.totalorder %v9055_v43, %v2422_v38 }
 0x11a   :  { %7953 = vmatpush3.msra.mxu0 %v9292_v6  ;;  %7905 = vmatprep.mubr.f32.mxu0 %v9460_v62  ;;  %v2785_v6 = vand.u32 4294901760, %v2784_v54  ;;  %v9712_v62 = vand.u32 4294901760, %v2502_v24 }
 0x11b   :  { %7954 = vmatprep.subr.mxu0 %v9332_v23  ;;  %7986 = vmatpush3.msra.mxu1 %v9320_v18  ;;  %v9710_v18 = vsub.f32 %v2503_v36, %v9697_v17 }
 0x11c   :  { %7941 = vmatmul.mubr.f32.gmra.mxu1 %v1514_v28  ;;  %7955 = vmatpush3.msra.mxu0 %v9332_v23  ;;  %v2431_v28 = vpop.permute.xlu0 %2430 }
 0x11d   :  { %7906 = vmatmul.mubr.f32.gmra.mxu0 %v9486_v61  ;;  %7943 = vmatprep.mubr.f32.mxu1 %v1524_v57  ;;  %v9724_v23 = vand.u32 4294901760, %v9710_v18  ;;  %v2501_v61 = vld [vmem:[#allocation2 + $0x40] sm:$0xff]  ;;  %v9800_v57 = vsel %vm2460_vm15, 1.0, %v12379_v21  ;;  %vm2463_vm3 = vcmp.eq.s32.totalorder %v9055_v43, %v2431_v28 }
 0x11e   :  { %7908 = vmatprep.mubr.f32.mxu0 %v9492_v46  ;;  %7956 = vmatprep.subr.mxu0 %v9345_v25  ;;  %v2419_v46 = vpop.permute.xlu1 %2418  ;;  %v9741_v32 = vand.u32 4294901760, %v2501_v61 }
 0x11f   :  { %7957 = vmatpush3.msra.mxu0 %v9345_v25  ;;  %7987 = vmatprep.subr.mxu1 %v9347_v63  ;;  %v9727_v25 = vsub.f32 %v2502_v24, %v9712_v62  ;;  %vm2459_vm14 = vcmp.eq.s32.totalorder %v9055_v43, %v2419_v46 }
 0x120   :  { %7944 = vmatmul.mubr.f32.gmra.mxu1 %v1534_v0  ;;  %7958 = vmatprep.subr.mxu0 %v9370_v50  ;;  %v9752_v4 = vsub.f32 %v2501_v61, %v9741_v32  ;;  %v2509_v0 = vsel %vm244_vm0, %v9800_v57, 0 }
 0x121   :  { %7909 = vmatmul.mubr.f32.gmra.mxu0 %v9509_v35  ;;  %7946 = vmatprep.mubr.f32.mxu1 %v1544_v8 }
 0x122   :  { %7911 = vmatprep.mubr.f32.mxu0 %v9518_v52  ;;  %7988 = vmatpush3.msra.mxu1 %v9347_v63  ;;  %v2791_v63 = vsub.f32 %v9710_v18, %v9724_v23  ;;  %v2425_v35 = vpop.permute.xlu1 %2424  ;;  %v9761_v47 = vand.u32 4294901760, %v9752_v4 }
 0x123   :  { %7959 = vmatpush3.msra.mxu0 %v9370_v50  ;;  %8039 = vmatprep.subr.mxu1 %v2785_v6  ;;  %v9739_v50 = vand.u32 4294901760, %v9727_v25  ;;  %vm2461_vm1 = vcmp.eq.s32.totalorder %v9055_v43, %v2425_v35 }
 0x124   :  { %7947 = vmatmul.mubr.f32.gmra.mxu1 %v1554_v42  ;;  %8010 = vmatprep.subr.mxu0 %v9665_v55  ;;  %v2792_v52 = vand.u32 4294901760, %v2791_v63  ;;  %v9841_v42 = vsel %vm2463_vm3, 1.0, %v12379_v21 }
 0x125   :  { %7912 = vmatmul.mubr.f32.gmra.mxu0 %v9550_v3  ;;  %7949 = vmatprep.mubr.f32.mxu1 %v1564_v60  ;;  %v2798_v26 = vsub.f32 %v9727_v25, %v9739_v50 }
 0x126   :  { %7914 = vmatprep.mubr.f32.mxu0 %v9559_v58  ;;  %v2428_v58 = vpop.permute.xlu1 %2427 }
 0x127   :  { %v2799_v3 = vand.u32 4294901760, %v2798_v26  ;;  %vm2462_vm2 = vcmp.eq.s32.totalorder %v9055_v43, %v2428_v58 }
 0x128   :  { %7950 = vmatmul.mubr.f32.gmra.mxu1 %v1574_v59  ;;  %v9830_v8 = vsel %vm2462_vm2, 1.0, %v12379_v21 }
 0x129   :  { %7915 = vmatmul.mubr.f32.gmra.mxu0 %v9585_v13  ;;  %7989 = vmatprep.mubr.msk.f32.mxu1 %vm244_vm0, %v9397_v5  ;;  %v2805_v13 = vsub.f32 %v9752_v4, %v9761_v47  ;;  %v2515_v60 = vsel %vm244_vm0, %v9830_v8, 0 }
 0x12a   :  { %7917 = vmatprep.mubr.f32.mxu0 %v9593_v15  ;;  %v9868_v51 = vsub.f32 %v2515_v60, %v2515_v60 }
 0x12b   :  { %v2806_v15 = vand.u32 4294901760, %v2805_v13 }
 0x12c   :  { %7990 = vmatmul.mubr.msk.f32.vlgmr.msra.gmra.mxu1 %vm244_vm0, %v9410_v56 }
 0x12d   :  { %7918 = vmatmul.mubr.f32.gmra.mxu0 %v9611_v39  ;;  %7992 = vmatprep.mubr.msk.f32.mxu1 %vm244_vm0, %v9428_v9 }
 0x12e   :  { %7920 = vmatprep.mubr.f32.mxu0 %v9619_v48  ;;  %8040 = vmatpush3.msra.mxu1 %v2785_v6  ;;  %v2648_v6 = vand.u32 4294901760, %v9868_v51 }
 0x12f   :  { %8041 = vmatprep.subr.mxu1 %v2792_v52 }
 0x130   :  { %7993 = vmatmul.mubr.msk.f32.gmra.mxu1 %vm244_vm0, %v9444_v44 }
 0x131   :  { %7921 = vmatmul.mubr.f32.gmra.mxu0 %v9633_v33  ;;  %7995 = vmatprep.mubr.msk.f32.mxu1 %vm244_vm0, %v9452_v49  ;;  %v9838_v33 = vsub.f32 %v2509_v0, %v2509_v0 }
 0x132   :  { %7960 = vmatprep.mubr.msk.f32.mxu0 %vm244_vm0, %v9397_v5  ;;  %8042 = vmatpush3.msra.mxu1 %v2792_v52  ;;  %v2434_v5 = vpop.permute.xlu1 %2433 }
 0x133   :  { %8043 = vmatprep.subr.mxu1 %v2799_v3  ;;  %vm2464_vm5 = vcmp.eq.s32.totalorder %v9055_v43, %v2434_v5  ;;  %v2628_v59 = vand.u32 4294901760, %v9838_v33 }
 0x134   :  { %7996 = vmatmul.mubr.msk.f32.gmra.mxu1 %vm244_vm0, %v9465_v19  ;;  %v9856_v20 = vsel %vm2464_vm5, 1.0, %v12379_v21 }
 0x135   :  { %7961 = vmatmul.mubr.msk.f32.vlgmr.msra.gmra.mxu0 %vm244_vm0, %v9410_v56  ;;  %7998 = vmatprep.mubr.msk.f32.mxu1 %vm244_vm0, %v9473_v10  ;;  %v9792_v56 = vsel %vm2459_vm14, 1.0, %v12379_v21  ;;  %v2629_v36 = vsub.f32 %v9838_v33, %v2628_v59 }
 0x136   :  { %8011 = vmatpush3.msra.mxu0 %v9665_v55  ;;  %7963 = vmatprep.mubr.msk.f32.mxu0 %vm244_vm0, %v9428_v9  ;;  %v2437_v9 = vpop.permute.xlu0 %2436  ;;  %v2440_v39 = vpop.permute.xlu1 %2439 }
 0x137   :  { %8012 = vmatprep.subr.mxu0 %v9697_v17  ;;  %8044 = vmatpush3.msra.mxu1 %v2799_v3  ;;  %vm2465_vm4 = vcmp.eq.s32.totalorder %v9055_v43, %v2437_v9  ;;  %vm2466_vm6 = vcmp.eq.s32.totalorder %v9055_v43, %v2440_v39  ;;  %v2630_v38 = vand.u32 4294901760, %v2629_v36 }
 0x138   :  { %7999 = vmatmul.mubr.msk.f32.gmra.mxu1 %vm244_vm0, %v9503_v14  ;;  %8013 = vmatpush3.msra.mxu0 %v9697_v17  ;;  %v9884_v7 = vsel %vm2466_vm6, 1.0, %v12379_v21 }
 0x139   :  { %7964 = vmatmul.mubr.msk.f32.gmra.mxu0 %vm244_vm0, %v9444_v44  ;;  %8001 = vmatprep.mubr.msk.f32.mxu1 %vm244_vm0, %v9512_v53  ;;  %v2506_v44 = vsel %vm244_vm0, %v9792_v56, 0  ;;  %v2527_v61 = vsel %vm244_vm0, %v9884_v7, 0 }
 0x13a   :  { %7966 = vmatprep.mubr.msk.f32.mxu0 %vm244_vm0, %v9452_v49  ;;  %8014 = vmatprep.subr.mxu0 %v9712_v62  ;;  %v9812_v49 = vsel %vm2461_vm1, 1.0, %v12379_v21  ;;  %v2443_v48 = vpop.permute.xlu0 %2442  ;;  %v2446_v30 = vpop.permute.xlu1 %2445  ;;  %v9930_v13 = vsub.f32 %v2527_v61, %v2527_v61 }
 0x13b   :  { %8015 = vmatpush3.msra.mxu0 %v9712_v62  ;;  %8045 = vmatprep.subr.mxu1 %v2806_v15  ;;  %vm2467_vm7 = vcmp.eq.s32.totalorder %v9055_v43, %v2443_v48  ;;  %vm2468_vm8 = vcmp.eq.s32.totalorder %v9055_v43, %v2446_v30 }
 0x13c   :  { %8002 = vmatmul.mubr.msk.f32.gmra.mxu1 %vm244_vm0, %v9538_v29  ;;  %8016 = vmatprep.subr.mxu0 %v9741_v32  ;;  %v9897_v24 = vsel %vm2467_vm7, 1.0, %v12379_v21  ;;  %v9916_v52 = vsel %vm2468_vm8, 1.0, %v12379_v21 }
 0x13d   :  { %7967 = vmatmul.mubr.msk.f32.gmra.mxu0 %vm244_vm0, %v9465_v19  ;;  %8004 = vmatprep.mubr.msk.f32.mxu1 %vm244_vm0, %v9545_v11  ;;  %v9822_v19 = vsub.f32 %v2506_v44, %v2506_v44  ;;  %v2530_v26 = vsel %vm244_vm0, %v9897_v24, 0 }
 0x13e   :  { %7969 = vmatprep.mubr.msk.f32.mxu0 %vm244_vm0, %v9473_v10  ;;  %8046 = vmatpush3.msra.mxu1 %v2806_v15  ;;  %v2512_v10 = vsel %vm244_vm0, %v9812_v49, 0  ;;  %v2449_v2 = vpop.permute.xlu0 %2448  ;;  %v2452_v12 = vpop.permute.xlu1 %2451  ;;  %v2533_v15 = vsel %vm244_vm0, %v9916_v52, 0  ;;  %v9940_v9 = vsub.f32 %v2530_v26, %v2530_v26 }
 0x13f   :  { %8017 = vmatpush3.msra.mxu0 %v9741_v32  ;;  %8097 = vmatprep.subr.mxu1 %v9665_v55  ;;  %v9845_v22 = vsub.f32 %v2512_v10, %v2512_v10  ;;  %v2618_v31 = vand.u32 4294901760, %v9822_v19  ;;  %vm2469_vm9 = vcmp.eq.s32.totalorder %v9055_v43, %v2449_v2  ;;  %vm2470_vm10 = vcmp.eq.s32.totalorder %v9055_v43, %v2452_v12 }
 0x140   :  { %8005 = vmatmul.mubr.msk.f32.gmra.mxu1 %vm244_vm0, %v9573_v34  ;;  %8068 = vmatprep.subr.mxu0 %v9674_v41  ;;  %v9926_v3 = vsel %vm2469_vm9, 1.0, %v12379_v21  ;;  %v9950_v0 = vsel %vm2470_vm10, 1.0, %v12379_v21  ;;  %v9964_v60 = vsub.f32 %v2533_v15, %v2533_v15  ;;  %v2698_v12 = vand.u32 4294901760, %v9940_v9 }
 0x141   :  { %7970 = vmatmul.mubr.msk.f32.gmra.mxu0 %vm244_vm0, %v9503_v14  ;;  %8007 = vmatprep.mubr.msk.f32.mxu1 %vm244_vm0, %v9578_v27  ;;  %v9850_v14 = vsel %vm2465_vm4, 1.0, %v12379_v21  ;;  %v2619_v16 = vsub.f32 %v9822_v19, %v2618_v31  ;;  %v2536_v48 = vsel %vm244_vm0, %v9926_v3, 0 }
 0x142   :  { %7972 = vmatprep.mubr.msk.f32.mxu0 %vm244_vm0, %v9512_v53  ;;  %v2518_v53 = vsel %vm244_vm0, %v9841_v42, 0  ;;  %v2524_v1 = vsel %vm244_vm0, %v9850_v14, 0  ;;  %v2455_v46 = vpop.permute.xlu0 %2454  ;;  %v2458_v28 = vpop.permute.xlu1 %2457  ;;  %v2708_v26 = vand.u32 4294901760, %v9964_v60 }
 0x143   :  { %v9875_v37 = vsub.f32 %v2518_v53, %v2518_v53  ;;  %v9894_v54 = vsub.f32 %v2524_v1, %v2524_v1  ;;  %v2620_v63 = vand.u32 4294901760, %v2619_v16  ;;  %vm2471_vm11 = vcmp.eq.s32.totalorder %v9055_v43, %v2455_v46 }
 0x144   :  { %8008 = vmatmul.mubr.msk.f32.gmra.mxu1 %vm244_vm0, %v9606_v45  ;;  %vm2472_vm12 = vcmp.eq.s32.totalorder %v9055_v43, %v2458_v28  ;;  %v9958_v10 = vsel %vm2471_vm11, 1.0, %v12379_v21  ;;  %v2688_v1 = vand.u32 4294901760, %v9930_v13 }
 0x145   :  { %7973 = vmatmul.mubr.msk.f32.gmra.mxu0 %vm244_vm0, %v9538_v29  ;;  %8047 = vmatprep.mubr.msk.f32.mxu1 %vm244_vm0, %v9792_v56  ;;  %v2521_v29 = vsel %vm244_vm0, %v9856_v20, 0  ;;  %v2658_v35 = vand.u32 4294901760, %v9875_v37  ;;  %v2678_v58 = vand.u32 4294901760, %v9894_v54  ;;  %v9983_v36 = vsel %vm2472_vm12, 1.0, %v12379_v21 }
 0x146   :  { %7975 = vmatprep.mubr.msk.f32.mxu0 %vm244_vm0, %v9545_v11  ;;  %v2638_v11 = vand.u32 4294901760, %v9845_v22  ;;  %v2542_v61 = vsel %vm244_vm0, %v9958_v10, 0 }
 0x147   :  { %v2659_v39 = vsub.f32 %v9875_v37, %v2658_v35  ;;  %v2679_v30 = vsub.f32 %v9894_v54, %v2678_v58  ;;  %v10000_v28 = vsub.f32 %v2542_v61, %v2542_v61 }
 0x148   :  { %8048 = vmatmul.mubr.msk.f32.vlgmr.msra.gmra.mxu1 %vm244_vm0, %v9800_v57 }
 0x149   :  { %7976 = vmatmul.mubr.msk.f32.gmra.mxu0 %vm244_vm0, %v9573_v34  ;;  %8050 = vmatprep.mubr.msk.f32.mxu1 %vm244_vm0, %v9812_v49  ;;  %v9902_v34 = vsub.f32 %v2521_v29, %v2521_v29  ;;  %v9974_v29 = vsub.f32 %v2536_v48, %v2536_v48  ;;  %v2660_v16 = vand.u32 4294901760, %v2659_v39  ;;  %v2680_v46 = vand.u32 4294901760, %v2679_v30 }
 0x14a   :  { %7978 = vmatprep.mubr.msk.f32.mxu0 %vm244_vm0, %v9578_v27  ;;  %8098 = vmatpush3.msra.mxu1 %v9665_v55  ;;  %v2639_v27 = vsub.f32 %v9845_v22, %v2638_v11  ;;  %v2709_v39 = vsub.f32 %v9964_v60, %v2708_v26 }
 0x14b   :  { %8099 = vmatprep.subr.mxu1 %v9697_v17  ;;  %v2668_v5 = vand.u32 4294901760, %v9902_v34  ;;  %v2718_v15 = vand.u32 4294901760, %v9974_v29 }
 0x14c   :  { %8051 = vmatmul.mubr.msk.f32.gmra.mxu1 %vm244_vm0, %v9830_v8  ;;  %v2640_v44 = vand.u32 4294901760, %v2639_v27  ;;  %v2689_v27 = vsub.f32 %v9930_v13, %v2688_v1 }
 0x14d   :  { %7979 = vmatmul.mubr.msk.f32.gmra.mxu0 %vm244_vm0, %v9606_v45  ;;  %8053 = vmatprep.mubr.msk.f32.mxu1 %vm244_vm0, %v9841_v42  ;;  %v2649_v45 = vsub.f32 %v9868_v51, %v2648_v6  ;;  %v2669_v2 = vsub.f32 %v9902_v34, %v2668_v5 }
 0x14e   :  { %8018 = vmatprep.mubr.f32.mxu0 %v2620_v63  ;;  %8100 = vmatpush3.msra.mxu1 %v9697_v17 }
 0x14f   :  { %8101 = vmatprep.subr.mxu1 %v9712_v62  ;;  %v2650_v53 = vand.u32 4294901760, %v2649_v45  ;;  %v2699_v45 = vsub.f32 %v9940_v9, %v2698_v12 }
 0x150   :  { %8054 = vmatmul.mubr.msk.f32.gmra.mxu1 %vm244_vm0, %v9856_v20 }
 0x151   :  { %8019 = vmatmul.mubr.f32.vlgmr.msra.gmra.mxu0 %v2630_v38  ;;  %8056 = vmatprep.mubr.msk.f32.mxu1 %vm244_vm0, %v9850_v14  ;;  %v2545_v38 = vsel %vm244_vm0, %v9983_v36, 0  ;;  %v2700_v30 = vand.u32 4294901760, %v2699_v45 }
 0x152   :  { %8069 = vmatpush3.msra.mxu0 %v9674_v41  ;;  %8021 = vmatprep.mubr.f32.mxu0 %v2640_v44  ;;  %v2539_v41 = vsel %vm244_vm0, %v9950_v0, 0  ;;  %v2690_v44 = vand.u32 4294901760, %v2689_v27  ;;  %v3692_v27 = vld [vmem:[#allocation2 + $0x78] sm:$0xff] }
 0x153   :  { %8070 = vmatprep.subr.mxu0 %v9710_v18  ;;  %8102 = vmatpush3.msra.mxu1 %v9712_v62  ;;  %v9990_v63 = vsub.f32 %v2539_v41, %v2539_v41 }
 0x154   :  { %8057 = vmatmul.mubr.msk.f32.gmra.mxu1 %vm244_vm0, %v9884_v7  ;;  %8071 = vmatpush3.msra.mxu0 %v9710_v18  ;;  %v2670_v18 = vand.u32 4294901760, %v2669_v2  ;;  %v2738_v2 = vand.u32 4294901760, %v10000_v28 }
 0x155   :  { %8022 = vmatmul.mubr.f32.gmra.mxu0 %v2650_v53  ;;  %8059 = vmatprep.mubr.msk.f32.mxu1 %vm244_vm0, %v9897_v24  ;;  %v2728_v48 = vand.u32 4294901760, %v9990_v63  ;;  %v2719_v53 = vsub.f32 %v9974_v29, %v2718_v15 }
 0x156   :  { %8024 = vmatprep.mubr.f32.mxu0 %v2660_v16  ;;  %8072 = vmatprep.subr.mxu0 %v9727_v25 }
 0x157   :  { %8073 = vmatpush3.msra.mxu0 %v9727_v25  ;;  %8103 = vmatprep.subr.mxu1 %v9741_v32  ;;  %v10012_v25 = vsub.f32 %v2545_v38, %v2545_v38  ;;  %v2729_v41 = vsub.f32 %v9990_v63, %v2728_v48 }
 0x158   :  { %8060 = vmatmul.mubr.msk.f32.gmra.mxu1 %vm244_vm0, %v9916_v52  ;;  %8074 = vmatprep.subr.mxu0 %v9752_v4 }
 0x159   :  { %8025 = vmatmul.mubr.f32.gmra.mxu0 %v2670_v18  ;;  %8062 = vmatprep.mubr.msk.f32.mxu1 %vm244_vm0, %v9926_v3  ;;  %v2748_v16 = vand.u32 4294901760, %v10012_v25  ;;  %v2739_v18 = vsub.f32 %v10000_v28, %v2738_v2  ;;  %v2730_v45 = vand.u32 4294901760, %v2729_v41 }
 0x15a   :  { %8027 = vmatprep.mubr.f32.mxu0 %v2680_v46  ;;  %8104 = vmatpush3.msra.mxu1 %v9741_v32  ;;  %v2720_v46 = vand.u32 4294901760, %v2719_v53 }
 0x15b   :  { %8075 = vmatpush3.msra.mxu0 %v9752_v4  ;;  %8155 = vmatprep.subr.mxu1 %v9665_v55  ;;  %v2710_v4 = vand.u32 4294901760, %v2709_v39  ;;  %v10043_v39 = vand.u32 4294901760, %v3692_v27  ;;  %v2740_v53 = vand.u32 4294901760, %v2739_v18 }
 0x15c   :  { %8063 = vmatmul.mubr.msk.f32.gmra.mxu1 %vm244_vm0, %v9950_v0  ;;  %8126 = vmatprep.subr.mxu0 %v9684_v40 }
 0x15d   :  { %8028 = vmatmul.mubr.f32.gmra.mxu0 %v2690_v44  ;;  %8065 = vmatprep.mubr.msk.f32.mxu1 %vm244_vm0, %v9958_v10  ;;  %v2749_v44 = vsub.f32 %v10012_v25, %v2748_v16  ;;  %v10052_v41 = vsub.f32 %v3692_v27, %v10043_v39 }
 0x15e   :  { %8030 = vmatprep.mubr.f32.mxu0 %v2700_v30 }
 0x15f   :  { %v10064_v27 = vand.u32 4294901760, %v10052_v41 }
 0x160   :  { %v7701_v61 = vpop.f32.mrf.mxu1  ;;  %8066 = vmatmul.mubr.msk.f32.gmra.mxu1 %vm244_vm0, %v9983_v36 }
 0x161   :  { %8031 = vmatmul.mubr.f32.gmra.mxu0 %v2710_v4  ;;  %8105 = vmatprep.mubr.f32.mxu1 %v2618_v31  ;;  %v2750_v31 = vand.u32 4294901760, %v2749_v44 }
 0x162   :  { %v583_v38 = vpop.f32.mrf.mxu1  ;;  %8033 = vmatprep.mubr.f32.mxu0 %v2720_v46 }
 0x164   :  { %v7704_v30 = vpop.f32.mrf.mxu1  ;;  %8106 = vmatmul.mubr.f32.vlgmr.msra.gmra.mxu1 %v2628_v59 }
 0x165   :  { %8034 = vmatmul.mubr.f32.gmra.mxu0 %v2730_v45  ;;  %8108 = vmatprep.mubr.f32.mxu1 %v2638_v11 }
 0x166   :  { %v595_v4 = vpop.f32.mrf.mxu1  ;;  %8036 = vmatprep.mubr.f32.mxu0 %v2740_v53  ;;  %8156 = vmatpush3.msra.mxu1 %v9665_v55 }
 0x167   :  { %8157 = vmatprep.subr.mxu1 %v9697_v17 }
 0x168   :  { %v7707_v46 = vpop.f32.mrf.mxu1  ;;  %8109 = vmatmul.mubr.f32.gmra.mxu1 %v2648_v6 }
 0x169   :  { %v7672_v59 = vpop.f32.mrf.mxu0  ;;  %8037 = vmatmul.mubr.f32.gmra.mxu0 %v2750_v31  ;;  %8111 = vmatprep.mubr.f32.mxu1 %v2658_v35  ;;  %v3691_v35 = vld [vmem:[#allocation2 + $0x70] sm:$0xff] }
 0x16a   :  { %v10058_v11 = vadd.f32 %v7701_v61, %v7672_v59  ;;  %v607_v18 = vpop.f32.mrf.mxu1  ;;  %8076 = vmatprep.mubr.f32.mxu0 %v9822_v19  ;;  %8158 = vmatpush3.msra.mxu1 %v9697_v17  ;;  %v10081_v44 = vand.u32 4294901760, %v3691_v35 }
 0x16b   :  { %v362_v55 = vpop.f32.mrf.mxu0  ;;  %8159 = vmatprep.subr.mxu1 %v9712_v62 }
 0x16c   :  { %v10066_v45 = vadd.f32 %v583_v38, %v362_v55  ;;  %v7710_v6 = vpop.f32.mrf.mxu1  ;;  %8112 = vmatmul.mubr.f32.gmra.mxu1 %v2668_v5  ;;  %v3972_v5 = vsub.f32 %v10052_v41, %v10064_v27 }
 0x16d   :  { %v7675_v61 = vpop.f32.mrf.mxu0  ;;  %8077 = vmatmul.mubr.f32.vlgmr.msra.gmra.mxu0 %v9838_v33  ;;  %8114 = vmatprep.mubr.f32.mxu1 %v2678_v58 }
 0x16e   :  { %v10073_v17 = vadd.f32 %v7704_v30, %v7675_v61  ;;  %8127 = vmatpush3.msra.mxu0 %v9684_v40  ;;  %v619_v19 = vpop.f32.mrf.mxu1  ;;  %8079 = vmatprep.mubr.f32.mxu0 %v9845_v22  ;;  %v3690_v40 = vld [vmem:[#allocation2 + $0x68] sm:$0xff] }
 0x16f   :  { %v382_v38 = vpop.f32.mrf.mxu0  ;;  %8128 = vmatprep.subr.mxu0 %v9724_v23  ;;  %8160 = vmatpush3.msra.mxu1 %v9712_v62 }
 0x170   :  { %v10083_v33 = vadd.f32 %v595_v4, %v382_v38  ;;  %v7713_v58 = vpop.f32.mrf.mxu1  ;;  %8115 = vmatmul.mubr.f32.gmra.mxu1 %v2688_v1  ;;  %8129 = vmatpush3.msra.mxu0 %v9724_v23  ;;  %v3973_v23 = vand.u32 4294901760, %v3972_v5  ;;  %v10098_v1 = vsub.f32 %v3691_v35, %v10081_v44  ;;  %v10134_v35 = vpop.permute.xlu0 %3606 }
 0x171   :  { %v7678_v22 = vpop.f32.mrf.mxu0  ;;  %8080 = vmatmul.mubr.f32.gmra.mxu0 %v9868_v51  ;;  %8117 = vmatprep.mubr.f32.mxu1 %v2698_v12  ;;  %v10100_v51 = vand.u32 4294901760, %v3690_v40  ;;  %vm3647_vm14 = vcmp.eq.s32.totalorder %v9055_v43, %v10134_v35 }
 0x172   :  { %v10091_v62 = vadd.f32 %v7707_v46, %v7678_v22  ;;  %v631_v30 = vpop.f32.mrf.mxu1  ;;  %8082 = vmatprep.mubr.f32.mxu0 %v9875_v37  ;;  %8130 = vmatprep.subr.mxu0 %v9739_v50 }
 0x173   :  { %v402_v53 = vpop.f32.mrf.mxu0  ;;  %8131 = vmatpush3.msra.mxu0 %v9739_v50  ;;  %8161 = vmatprep.subr.mxu1 %v9741_v32  ;;  %v10119_v59 = vsub.f32 %v3690_v40, %v10100_v51 }
 0x174   :  { %v10102_v4 = vadd.f32 %v607_v18, %v402_v53  ;;  %v7716_v12 = vpop.f32.mrf.mxu1  ;;  %8118 = vmatmul.mubr.f32.gmra.mxu1 %v2708_v26  ;;  %8132 = vmatprep.subr.mxu0 %v9761_v47  ;;  %v10116_v26 = vand.u32 4294901760, %v10098_v1  ;;  %v10125_v18 = vpop.permute.xlu1 %3609 }
 0x175   :  { %v7681_v37 = vpop.f32.mrf.mxu0  ;;  %8083 = vmatmul.mubr.f32.gmra.mxu0 %v9902_v34  ;;  %8120 = vmatprep.mubr.f32.mxu1 %v2718_v15  ;;  %v10139_v61 = vand.u32 4294901760, %v10119_v59  ;;  %vm3648_vm13 = vcmp.eq.s32.totalorder %v9055_v43, %v10125_v18 }
 0x176   :  { %v10110_v50 = vadd.f32 %v7710_v6, %v7681_v37  ;;  %v643_v31 = vpop.f32.mrf.mxu1  ;;  %8085 = vmatprep.mubr.f32.mxu0 %v9894_v54  ;;  %8162 = vmatpush3.msra.mxu1 %v9741_v32  ;;  %12380 = vst [vmem:[#allocation11_spill] sm:$0xff] %v10116_v26  ;;  %v3689_v32 = vld [vmem:[#allocation2 + $0x60] sm:$0xff] }
 0x177   :  { %v422_v46 = vpop.f32.mrf.mxu0  ;;  %8133 = vmatpush3.msra.mxu0 %v9761_v47  ;;  %8213 = vmatprep.subr.mxu1 %v3973_v23  ;;  %12381 = vst [vmem:[#allocation12_spill] sm:$0xff] %v10139_v61 }
 0x178   :  { %v10121_v34 = vadd.f32 %v619_v19, %v422_v46  ;;  %v7719_v15 = vpop.f32.mrf.mxu1  ;;  %8121 = vmatmul.mubr.f32.gmra.mxu1 %v2728_v48  ;;  %8184 = vmatprep.subr.mxu0 %v10043_v39  ;;  %v3979_v48 = vsub.f32 %v10098_v1, %v10116_v26  ;;  %v10141_v19 = vand.u32 4294901760, %v3689_v32 }
 0x179   :  { %v7684_v54 = vpop.f32.mrf.mxu0  ;;  %8086 = vmatmul.mubr.f32.gmra.mxu0 %v9930_v13  ;;  %8123 = vmatprep.mubr.f32.mxu1 %v2738_v2 }
 0x17a   :  { %v10131_v47 = vadd.f32 %v7713_v58, %v7684_v54  ;;  %v655_v55 = vpop.f32.mrf.mxu1  ;;  %8088 = vmatprep.mubr.f32.mxu0 %v9940_v9  ;;  %v10153_v58 = vpop.permute.xlu1 %3612  ;;  %v3980_v22 = vand.u32 4294901760, %v3979_v48 }
 0x17b   :  { %v442_v6 = vpop.f32.mrf.mxu0  ;;  %vm3649_vm15 = vcmp.eq.s32.totalorder %v9055_v43, %v10153_v58 }
 0x17c   :  { %v10143_v13 = vadd.f32 %v631_v30, %v442_v6  ;;  %v7759_v38 = vpop.f32.mrf.mxu1  ;;  %8124 = vmatmul.mubr.f32.gmra.mxu1 %v2748_v16  ;;  %v3986_v30 = vsub.f32 %v10119_v59, %v10139_v61  ;;  %v10158_v16 = vsub.f32 %v3689_v32, %v10141_v19 }
 0x17d   :  { %v7687_v2 = vpop.f32.mrf.mxu0  ;;  %8089 = vmatmul.mubr.f32.gmra.mxu0 %v9964_v60  ;;  %8163 = vmatprep.mubr.msk.f32.mxu1 %vm244_vm0, %v9792_v56 }
 0x17e   :  { %v10150_v9 = vadd.f32 %v7716_v12, %v7687_v2  ;;  %v909_v5 = vpop.f32.mrf.mxu1  ;;  %8091 = vmatprep.mubr.f32.mxu0 %v9974_v29  ;;  %v10167_v29 = vpop.permute.xlu0 %3615  ;;  %v3987_v32 = vand.u32 4294901760, %v3986_v30  ;;  %v10173_v54 = vand.u32 4294901760, %v10158_v16 }
 0x17f   :  { %v462_v40 = vpop.f32.mrf.mxu0  ;;  %v10179_v48 = vpop.permute.xlu1 %3618  ;;  %vm3650_vm1 = vcmp.eq.s32.totalorder %v9055_v43, %v10167_v29 }
 0x180   :  { %v10160_v53 = vadd.f32 %v643_v31, %v462_v40  ;;  %v7762_v60 = vpop.f32.mrf.mxu1  ;;  %8164 = vmatmul.mubr.msk.f32.vlgmr.msra.gmra.mxu1 %vm244_vm0, %v9800_v57  ;;  %12382 = vst [vmem:[#allocation13_spill] sm:$0xff] %v10173_v54  ;;  %vm3651_vm2 = vcmp.eq.s32.totalorder %v9055_v43, %v10179_v48 }
 0x181   :  { %v7690_v12 = vpop.f32.mrf.mxu0  ;;  %8092 = vmatmul.mubr.f32.gmra.mxu0 %v9990_v63  ;;  %8166 = vmatprep.mubr.msk.f32.mxu1 %vm244_vm0, %v9812_v49 }
 0x182   :  { %v10169_v37 = vadd.f32 %v7719_v15, %v7690_v12  ;;  %v925_v46 = vpop.f32.mrf.mxu1  ;;  %8094 = vmatprep.mubr.f32.mxu0 %v10000_v28  ;;  %8214 = vmatpush3.msra.mxu1 %v3973_v23  ;;  %v10222_v12 = vsel %vm3647_vm14, 1.0, %v12379_v21 }
 0x183   :  { %v482_v31 = vpop.f32.mrf.mxu0  ;;  %8215 = vmatprep.subr.mxu1 %v3980_v22  ;;  %12384 = vst [vmem:[#allocation15_spill] sm:$0xff] %v10222_v12 }
 0x184   :  { %v10175_v6 = vadd.f32 %v655_v55, %v482_v31  ;;  %v7765_v63 = vpop.f32.mrf.mxu1  ;;  %8167 = vmatmul.mubr.msk.f32.gmra.mxu1 %vm244_vm0, %v9830_v8  ;;  %v10191_v55 = vpop.permute.xlu0 %3621 }
 0x185   :  { %v7730_v15 = vpop.f32.mrf.mxu0  ;;  %8095 = vmatmul.mubr.f32.gmra.mxu0 %v10012_v25  ;;  %8169 = vmatprep.mubr.msk.f32.mxu1 %vm244_vm0, %v9841_v42  ;;  %v3993_v25 = vsub.f32 %v10158_v16, %v10173_v54  ;;  %vm3652_vm3 = vcmp.eq.s32.totalorder %v9055_v43, %v10191_v55 }
 0x186   :  { %v749_v28 = vadd.f32 %v7730_v15, %v10058_v11  ;;  %v10187_v23 = vpop.f32.mrf.mxu1  ;;  %8134 = vmatprep.mubr.msk.f32.mxu0 %vm244_vm0, %v9792_v56  ;;  %8216 = vmatpush3.msra.mxu1 %v3980_v22  ;;  %v10205_v56 = vsel %vm3648_vm13, 1.0, %v12379_v21 }
 0x187   :  { %v741_v2 = vpop.f32.mrf.mxu0  ;;  %8217 = vmatprep.subr.mxu1 %v3987_v32  ;;  %12383 = vst [vmem:[#allocation14_spill] sm:$0xff] %v10205_v56  ;;  %v3994_v31 = vand.u32 4294901760, %v3993_v25 }
 0x188   :  { %v742_v18 = vadd.f32 %v741_v2, %v10066_v45  ;;  %v10198_v40 = vpop.f32.mrf.mxu1  ;;  %8170 = vmatmul.mubr.msk.f32.gmra.mxu1 %vm244_vm0, %v9856_v20  ;;  %v10202_v11 = vadd.f32 %v7759_v38, %v749_v28  ;;  %v10213_v45 = vpop.permute.xlu1 %3624 }
 0x189   :  { %v7733_v22 = vpop.f32.mrf.mxu0  ;;  %8135 = vmatmul.mubr.msk.f32.vlgmr.msra.gmra.mxu0 %vm244_vm0, %v9800_v57  ;;  %8172 = vmatprep.mubr.msk.f32.mxu1 %vm244_vm0, %v9850_v14  ;;  %vm3653_vm4 = vcmp.eq.s32.totalorder %v9055_v43, %v10213_v45 }
 0x18a   :  { %v763_v35 = vadd.f32 %v7733_v22, %v10073_v17  ;;  %8185 = vmatpush3.msra.mxu0 %v10043_v39  ;;  %v10215_v30 = vpop.f32.mrf.mxu1  ;;  %8137 = vmatprep.mubr.msk.f32.mxu0 %vm244_vm0, %v9812_v49  ;;  %v10219_v38 = vadd.f32 %v909_v5, %v742_v18  ;;  %v3697_v17 = vsel %vm244_vm0, %v10205_v56, 0  ;;  %v10235_v5 = vpop.permute.xlu0 %3627 }
 0x18b   :  { %v755_v57 = vpop.f32.mrf.mxu0  ;;  %8186 = vmatprep.subr.mxu0 %v10081_v44  ;;  %8218 = vmatpush3.msra.mxu1 %v3987_v32  ;;  %vm3654_vm5 = vcmp.eq.s32.totalorder %v9055_v43, %v10235_v5 }
 0x18c   :  { %v756_v15 = vadd.f32 %v755_v57, %v10083_v33  ;;  %v10228_v28 = vpop.f32.mrf.mxu1  ;;  %8173 = vmatmul.mubr.msk.f32.gmra.mxu1 %vm244_vm0, %v9884_v7  ;;  %8187 = vmatpush3.msra.mxu0 %v10081_v44  ;;  %v10233_v49 = vadd.f32 %v7762_v60, %v763_v35  ;;  %v3694_v33 = vsel %vm244_vm0, %v10222_v12, 0  ;;  %v10256_v22 = vpop.permute.xlu1 %3630  ;;  %v10272_v57 = vsel %vm3649_vm15, 1.0, %v12379_v21 }
 0x18d   :  { %v7736_v2 = vpop.f32.mrf.mxu0  ;;  %8138 = vmatmul.mubr.msk.f32.gmra.mxu0 %vm244_vm0, %v9830_v8  ;;  %8175 = vmatprep.mubr.msk.f32.mxu1 %vm244_vm0, %v9897_v24  ;;  %v10253_v8 = vsub.f32 %v3697_v17, %v3697_v17  ;;  %12385 = vst [vmem:[#allocation16_spill] sm:$0xff] %v10272_v57  ;;  %vm3655_vm6 = vcmp.eq.s32.totalorder %v9055_v43, %v10256_v22  ;;  %v10376_v45 = vsel %vm3654_vm5, 1.0, %v12379_v21 }
 0x18e   :  { %v777_v32 = vadd.f32 %v7736_v2, %v10091_v62  ;;  %v10246_v25 = vpop.f32.mrf.mxu1  ;;  %8140 = vmatprep.mubr.msk.f32.mxu0 %vm244_vm0, %v9841_v42  ;;  %8188 = vmatprep.subr.mxu0 %v10100_v51  ;;  %v10251_v60 = vadd.f32 %v925_v46, %v756_v15  ;;  %v10266_v46 = vsub.f32 %v3694_v33, %v3694_v33 }
 0x18f   :  { %v769_v18 = vpop.f32.mrf.mxu0  ;;  %8189 = vmatpush3.msra.mxu0 %v10100_v51  ;;  %8219 = vmatprep.subr.mxu1 %v3994_v31  ;;  %v12241_v15 = vand.u32 4294901760, %v10253_v8 }
 0x190   :  { %v770_v35 = vadd.f32 %v769_v18, %v10102_v4  ;;  %v10259_v62 = vpop.f32.mrf.mxu1  ;;  %8176 = vmatmul.mubr.msk.f32.gmra.mxu1 %vm244_vm0, %v9916_v52  ;;  %8190 = vmatprep.subr.mxu0 %v10141_v19  ;;  %v10264_v42 = vadd.f32 %v7765_v63, %v777_v32  ;;  %v10318_v32 = vsel %vm3651_vm2, 1.0, %v12379_v21  ;;  %v3637_v48 = vpop.permute.xlu1 %3636  ;;  %v12250_v55 = vand.u32 4294901760, %v10266_v46 }
 0x191   :  { %v7739_v4 = vpop.f32.mrf.mxu0  ;;  %8141 = vmatmul.mubr.msk.f32.gmra.mxu0 %vm244_vm0, %v9856_v20  ;;  %8178 = vmatprep.mubr.msk.f32.mxu1 %vm244_vm0, %v9926_v3  ;;  %v10293_v20 = vpop.permute.xlu0 %3633  ;;  %12387 = vst [vmem:[#allocation18_spill] sm:$0xff] %v10318_v32  ;;  %vm3657_vm8 = vcmp.eq.s32.totalorder %v9055_v43, %v3637_v48 }
 0x192   :  { %v791_v58 = vadd.f32 %v7739_v4, %v10110_v50  ;;  %v10285_v63 = vpop.f32.mrf.mxu1  ;;  %8143 = vmatprep.mubr.msk.f32.mxu0 %vm244_vm0, %v9850_v14  ;;  %8220 = vmatpush3.msra.mxu1 %v3994_v31  ;;  %v10290_v17 = vadd.f32 %v10187_v23, %v770_v35  ;;  %v3700_v50 = vsel %vm244_vm0, %v10272_v57, 0  ;;  %v10303_v14 = vsel %vm3650_vm1, 1.0, %v12379_v21 }
 0x193   :  { %v783_v2 = vpop.f32.mrf.mxu0  ;;  %8191 = vmatpush3.msra.mxu0 %v10141_v19  ;;  %8271 = vmatprep.subr.mxu1 %v10043_v39  ;;  %12386 = vst [vmem:[#allocation17_spill] sm:$0xff] %v10303_v14  ;;  %v10348_v4 = vsub.f32 %v3700_v50, %v3700_v50  ;;  %vm3656_vm7 = vcmp.eq.s32.totalorder %v9055_v43, %v10293_v20 }
 0x194   :  { %v784_v23 = vadd.f32 %v783_v2, %v10121_v34  ;;  %v10306_v31 = vpop.f32.mrf.mxu1  ;;  %8179 = vmatmul.mubr.msk.f32.gmra.mxu1 %vm244_vm0, %v9950_v0  ;;  %8242 = vmatprep.subr.mxu0 %v10052_v41  ;;  %v10312_v33 = vadd.f32 %v10198_v40, %v791_v58  ;;  %v10324_v34 = vsel %vm3652_vm3, 1.0, %v12379_v21  ;;  %v3807_v5 = vsub.f32 %v10266_v46, %v12250_v55 }
 0x195   :  { %v7742_v29 = vpop.f32.mrf.mxu0  ;;  %8144 = vmatmul.mubr.msk.f32.gmra.mxu0 %vm244_vm0, %v9884_v7  ;;  %8181 = vmatprep.mubr.msk.f32.mxu1 %vm244_vm0, %v9958_v10  ;;  %v10346_v7 = vsub.f32 %v10253_v8, %v12241_v15  ;;  %v3709_v22 = vsel %vm244_vm0, %v10324_v34, 0 }
 0x196   :  { %v805_v40 = vadd.f32 %v7742_v29, %v10131_v47  ;;  %v10335_v18 = vpop.f32.mrf.mxu1  ;;  %8146 = vmatprep.mubr.msk.f32.mxu0 %vm244_vm0, %v9897_v24  ;;  %v10341_v35 = vadd.f32 %v10215_v30, %v784_v23  ;;  %v3703_v47 = vsel %vm244_vm0, %v10303_v14, 0  ;;  %v3706_v24 = vsel %vm244_vm0, %v10318_v32, 0 }
 0x197   :  { %v797_v58 = vpop.f32.mrf.mxu0  ;;  %v10360_v30 = vsel %vm3653_vm4, 1.0, %v12379_v21  ;;  %v10401_v54 = vsub.f32 %v3706_v24, %v3706_v24  ;;  %v10415_v24 = vsub.f32 %v3709_v22, %v3709_v22 }
 0x198   :  { %v798_v2 = vadd.f32 %v797_v58, %v10143_v13  ;;  %v10363_v50 = vpop.f32.mrf.mxu1  ;;  %8182 = vmatmul.mubr.msk.f32.gmra.mxu1 %vm244_vm0, %v9983_v36  ;;  %v10368_v23 = vadd.f32 %v10228_v28, %v805_v40  ;;  %v3640_v13 = vpop.permute.xlu0 %3639  ;;  %v10385_v28 = vsel %vm3655_vm6, 1.0, %v12379_v21 }
 0x199   :  { %v7745_v29 = vpop.f32.mrf.mxu0  ;;  %8147 = vmatmul.mubr.msk.f32.gmra.mxu0 %vm244_vm0, %v9916_v52  ;;  %8221 = vmatprep.mubr.msk.f32.mxu1 %vm244_vm0, %v10222_v12  ;;  %v10399_v12 = vsub.f32 %v3703_v47, %v3703_v47  ;;  %v3718_v55 = vsel %vm244_vm0, %v10385_v28, 0  ;;  %vm3658_vm9 = vcmp.eq.s32.totalorder %v9055_v43, %v3640_v13 }
 0x19a   :  { %v819_v40 = vadd.f32 %v7745_v29, %v10150_v9  ;;  %v10388_v58 = vpop.f32.mrf.mxu1  ;;  %8149 = vmatprep.mubr.msk.f32.mxu0 %vm244_vm0, %v9926_v3  ;;  %v10396_v15 = vadd.f32 %v10246_v25, %v798_v2  ;;  %v3712_v9 = vsel %vm244_vm0, %v10360_v30, 0  ;;  %v3643_v3 = vpop.permute.xlu1 %3642  ;;  %v3715_v2 = vsel %vm244_vm0, %v10376_v45, 0 }
 0x19b   :  { %v811_v29 = vpop.f32.mrf.mxu0  ;;  %v10441_v52 = vsub.f32 %v3712_v9, %v3712_v9  ;;  %vm3659_vm10 = vcmp.eq.s32.totalorder %v9055_v43, %v3643_v3  ;;  %v10465_v25 = vsub.f32 %v3718_v55, %v3718_v55 }
 0x19c   :  { %v812_v61 = vadd.f32 %v811_v29, %v10160_v53  ;;  %v10407_v26 = vpop.f32.mrf.mxu1  ;;  %8222 = vmatmul.mubr.msk.f32.vlgmr.msra.gmra.mxu1 %vm244_vm0, %v10205_v56  ;;  %v10413_v47 = vadd.f32 %v10259_v62, %v819_v40  ;;  %v10425_v53 = vsel %vm3656_vm7, 1.0, %v12379_v21  ;;  %v3808_v40 = vand.u32 4294901760, %v3807_v5 }
 0x19d   :  { %v7748_v29 = vpop.f32.mrf.mxu0  ;;  %8150 = vmatmul.mubr.msk.f32.gmra.mxu0 %vm244_vm0, %v9950_v0  ;;  %8224 = vmatprep.mubr.msk.f32.mxu1 %vm244_vm0, %v10272_v57  ;;  %v10446_v0 = vsel %vm3657_vm8, 1.0, %v12379_v21  ;;  %v10463_v57 = vsub.f32 %v3715_v2, %v3715_v2  ;;  %v12391_v56 = vand.u32 4294901760, %v10346_v7 }
 0x19e   :  { %v833_v62 = vadd.f32 %v7748_v29, %v10169_v37  ;;  %v10433_v22 = vpop.f32.mrf.mxu1  ;;  %8152 = vmatprep.mubr.msk.f32.mxu0 %vm244_vm0, %v9958_v10  ;;  %8272 = vmatpush3.msra.mxu1 %v10043_v39  ;;  %v10439_v20 = vadd.f32 %v10285_v63, %v812_v61  ;;  %v3646_v37 = vpop.permute.xlu0 %3645  ;;  %v12388_v61 = vand.u32 4294901760, %v10348_v4 }
 0x19f   :  { %v825_v29 = vpop.f32.mrf.mxu0  ;;  %8273 = vmatprep.subr.mxu1 %v10081_v44  ;;  %vm3660_vm11 = vcmp.eq.s32.totalorder %v9055_v43, %v3646_v37 }
 0x1a0   :  { %v826_v10 = vadd.f32 %v825_v29, %v10175_v6  ;;  %v10452_v5 = vpop.f32.mrf.mxu1  ;;  %8225 = vmatmul.mubr.msk.f32.gmra.mxu1 %vm244_vm0, %v10303_v14  ;;  %v3827_v63 = vsub.f32 %v10348_v4, %v12388_v61  ;;  %v10461_v9 = vadd.f32 %v10306_v31, %v833_v62  ;;  %v3721_v6 = vsel %vm244_vm0, %v10425_v53, 0 }
 0x1a1   :  { %v10472_v29 = vsel %vm3658_vm9, 1.0, %v12379_v21  ;;  %v7788_v14 = vpop.f32.mrf.mxu0  ;;  %8153 = vmatmul.mubr.msk.f32.gmra.mxu0 %vm244_vm0, %v9983_v36  ;;  %8227 = vmatprep.mubr.msk.f32.mxu1 %vm244_vm0, %v10318_v32  ;;  %v3724_v31 = vsel %vm244_vm0, %v10446_v0, 0  ;;  %v10491_v36 = vsel %vm3659_vm10, 1.0, %v12379_v21  ;;  %v12389_v61 = vand.u32 4294901760, %v10399_v12 }
 0x1a2   :  { %v1103_v55 = vadd.f32 %v7788_v14, %v10202_v11  ;;  %v10482_v2 = vpop.f32.mrf.mxu1  ;;  %8192 = vmatprep.mubr.f32.mxu0 %v3808_v40  ;;  %8274 = vmatpush3.msra.mxu1 %v10081_v44  ;;  %v10486_v13 = vadd.f32 %v10335_v18, %v826_v10  ;;  %v3828_v3 = vand.u32 4294901760, %v3827_v63  ;;  %v12390_v10 = vand.u32 4294901760, %v10401_v54 }
 0x1a3   :  { %v1096_v62 = vpop.f32.mrf.mxu0  ;;  %v3837_v48 = vsub.f32 %v10399_v12, %v12389_v61  ;;  %8275 = vmatprep.subr.mxu1 %v10100_v51  ;;  %v10510_v11 = vsub.f32 %v3721_v6, %v3721_v6  ;;  %v10512_v14 = vsub.f32 %v3724_v31, %v3724_v31  ;;  %v3730_v63 = vsel %vm244_vm0, %v10491_v36, 0 }
 0x1a4   :  { %v1097_v40 = vadd.f32 %v1096_v62, %v10219_v38  ;;  %v10500_v18 = vpop.f32.mrf.mxu1  ;;  %8228 = vmatmul.mubr.msk.f32.gmra.mxu1 %vm244_vm0, %v10324_v34  ;;  %v3847_v32 = vsub.f32 %v10401_v54, %v12390_v10  ;;  %v10508_v61 = vadd.f32 %v10363_v50, %v1103_v55  ;;  %v3727_v38 = vsel %vm244_vm0, %v10472_v29, 0 }
 0x1a5   :  { %v7791_v62 = vpop.f32.mrf.mxu0  ;;  %8193 = vmatmul.mubr.f32.vlgmr.msra.gmra.mxu0 %v12391_v56  ;;  %8230 = vmatprep.mubr.msk.f32.mxu1 %vm244_vm0, %v10360_v30  ;;  %v10525_v50 = vsel %vm3660_vm11, 1.0, %v12379_v21  ;;  %v3838_v55 = vand.u32 4294901760, %v3837_v48  ;;  %v12393_v10 = vand.u32 4294901760, %v10415_v24  ;;  %v12260_v21 = vand.u32 4294901760, %v10463_v57 }
 0x1a6   :  { %12392 = vst [vmem:[#allocation19_spill] sm:$0xff] %v10525_v50  ;;  %v1115_v6 = vadd.f32 %v7791_v62, %v10233_v49  ;;  %8243 = vmatpush3.msra.mxu0 %v10052_v41  ;;  %v10529_v31 = vpop.f32.mrf.mxu1  ;;  %8195 = vmatprep.mubr.f32.mxu0 %v3828_v3  ;;  %v10532_v56 = vadd.f32 %v10388_v58, %v1097_v40  ;;  %v3848_v58 = vand.u32 4294901760, %v3847_v32  ;;  %v12394_v48 = vand.u32 4294901760, %v10441_v52 }
 0x1a7   :  { %v1108_v7 = vpop.f32.mrf.mxu0  ;;  %8244 = vmatprep.subr.mxu0 %v10098_v1  ;;  %v3857_v37 = vsub.f32 %v10415_v24, %v12393_v10  ;;  %8276 = vmatpush3.msra.mxu1 %v10100_v51  ;;  %v10553_v10 = vsub.f32 %v3727_v38, %v3727_v38  ;;  %v3733_v32 = vsel %vm244_vm0, %v10525_v50, 0 }
 0x1a8   :  { %v1109_v41 = vadd.f32 %v1108_v7, %v10251_v60  ;;  %v10542_v3 = vpop.f32.mrf.mxu1  ;;  %8231 = vmatmul.mubr.msk.f32.gmra.mxu1 %vm244_vm0, %v10376_v45  ;;  %8245 = vmatpush3.msra.mxu0 %v10098_v1  ;;  %v3867_v40 = vsub.f32 %v10441_v52, %v12394_v48  ;;  %v10551_v62 = vadd.f32 %v10407_v26, %v1115_v6 }
 0x1a9   :  { %v7794_v49 = vpop.f32.mrf.mxu0  ;;  %8196 = vmatmul.mubr.f32.gmra.mxu0 %v3838_v55  ;;  %8233 = vmatprep.mubr.msk.f32.mxu1 %vm244_vm0, %v10385_v28  ;;  %v10557_v60 = vsub.f32 %v3730_v63, %v3730_v63  ;;  %v3858_v6 = vand.u32 4294901760, %v3857_v37  ;;  %v3877_v63 = vsub.f32 %v10463_v57, %v12260_v21  ;;  %v12261_v55 = vand.u32 4294901760, %v10510_v11 }
 0x1aa   :  { %v1127_v1 = vadd.f32 %v7794_v49, %v10264_v42  ;;  %v10562_v7 = vpop.f32.mrf.mxu1  ;;  %8198 = vmatprep.mubr.f32.mxu0 %v3848_v58  ;;  %8246 = vmatprep.subr.mxu0 %v10119_v59  ;;  %v10566_v26 = vadd.f32 %v10433_v22, %v1109_v41  ;;  %v3868_v22 = vand.u32 4294901760, %v3867_v40  ;;  %v12395_v37 = vand.u32 4294901760, %v10465_v25 }
 0x1ab   :  { %v1120_v38 = vpop.f32.mrf.mxu0  ;;  %8247 = vmatpush3.msra.mxu0 %v10119_v59  ;;  %8277 = vmatprep.subr.mxu1 %v10141_v19  ;;  %v3878_v42 = vand.u32 4294901760, %v3877_v63 }
 0x1ac   :  { %v1121_v49 = vadd.f32 %v1120_v38, %v10290_v17  ;;  %v7832_v58 = vpop.f32.mrf.mxu1  ;;  %8234 = vmatmul.mubr.msk.f32.gmra.mxu1 %vm244_vm0, %v10425_v53  ;;  %v3887_v41 = vsub.f32 %v10465_v25, %v12395_v37  ;;  %8248 = vmatprep.subr.mxu0 %v10158_v16  ;;  %v10583_v59 = vadd.f32 %v10452_v5, %v1127_v1  ;;  %v12396_v1 = vand.u32 4294901760, %v10512_v14 }
 0x1ad   :  { %v7797_v48 = vpop.f32.mrf.mxu0  ;;  %8199 = vmatmul.mubr.f32.gmra.mxu0 %v3858_v6  ;;  %8236 = vmatprep.mubr.msk.f32.mxu1 %vm244_vm0, %v10446_v0  ;;  %v10587_v17 = vsub.f32 %v3733_v32, %v3733_v32  ;;  %v3897_v5 = vsub.f32 %v10510_v11, %v12261_v55  ;;  %v12262_v6 = vand.u32 4294901760, %v10553_v10 }
 0x1ae   :  { %v1139_v38 = vadd.f32 %v7797_v48, %v10312_v33  ;;  %v1309_v21 = vpop.f32.mrf.mxu1  ;;  %8201 = vmatprep.mubr.f32.mxu0 %v3868_v22  ;;  %8278 = vmatpush3.msra.mxu1 %v10141_v19  ;;  %v10592_v40 = vadd.f32 %v10482_v2, %v1121_v49  ;;  %v3907_v32 = vsub.f32 %v10512_v14, %v12396_v1  ;;  %v3888_v63 = vand.u32 4294901760, %v3887_v41 }
 0x1af   :  { %v1132_v37 = vpop.f32.mrf.mxu0  ;;  %8249 = vmatpush3.msra.mxu0 %v10158_v16  ;;  %8329 = vmatprep.subr.mxu1 %v10043_v39  ;;  %v12263_v49 = vand.u32 4294901760, %v10557_v60  ;;  %v3898_v1 = vand.u32 4294901760, %v3897_v5  ;;  %v3917_v55 = vsub.f32 %v10553_v10, %v12262_v6  ;;  %v4880_v5 = vld [vmem:[#allocation2 + $0x98] sm:$0xff] }
 0x1b0   :  { %v1133_v33 = vadd.f32 %v1132_v37, %v10341_v35  ;;  %v7835_v2 = vpop.f32.mrf.mxu1  ;;  %8237 = vmatmul.mubr.msk.f32.gmra.mxu1 %vm244_vm0, %v10472_v29  ;;  %8300 = vmatprep.subr.mxu0 %v10064_v27  ;;  %v10609_v22 = vadd.f32 %v10500_v18, %v1139_v38 }
 0x1b1   :  { %v7800_v48 = vpop.f32.mrf.mxu0  ;;  %8202 = vmatmul.mubr.f32.gmra.mxu0 %v3878_v42  ;;  %8239 = vmatprep.mubr.msk.f32.mxu1 %vm244_vm0, %v10491_v36  ;;  %v3918_v18 = vand.u32 4294901760, %v3917_v55 }
 0x1b2   :  { %v1151_v16 = vadd.f32 %v7800_v48, %v10368_v23  ;;  %v1321_v35 = vpop.f32.mrf.mxu1  ;;  %8204 = vmatprep.mubr.f32.mxu0 %v3888_v63  ;;  %v10615_v37 = vadd.f32 %v10529_v31, %v1133_v33  ;;  %v3908_v23 = vand.u32 4294901760, %v3907_v32  ;;  %v3927_v31 = vsub.f32 %v10557_v60, %v12263_v49 }
 0x1b3   :  { %v1144_v41 = vpop.f32.mrf.mxu0  ;;  %v12397_v48 = vand.u32 4294901760, %v10266_v46  ;;  %v12398_v49 = vand.u32 4294901760, %v10587_v17 }
 0x1b4   :  { %v1145_v42 = vadd.f32 %v1144_v41, %v10396_v15  ;;  %v7875_v38 = vpop.f32.mrf.mxu1  ;;  %8240 = vmatmul.mubr.msk.f32.gmra.mxu1 %vm244_vm0, %v10525_v50  ;;  %v10628_v33 = vadd.f32 %v10542_v3, %v1151_v16  ;;  %v10639_v16 = vand.u32 4294901760, %v4880_v5 }
 0x1b5   :  { %v7803_v63 = vpop.f32.mrf.mxu0  ;;  %8205 = vmatmul.mubr.f32.gmra.mxu0 %v3898_v1  ;;  %8279 = vmatprep.mubr.f32.mxu1 %v12397_v48  ;;  %v3937_v3 = vsub.f32 %v10587_v17, %v12398_v49  ;;  %v12399_v48 = vand.u32 4294901760, %v10253_v8 }
 0x1b6   :  { %v1163_v15 = vadd.f32 %v7803_v63, %v10413_v47  ;;  %v1669_v41 = vpop.f32.mrf.mxu1  ;;  %8207 = vmatprep.mubr.f32.mxu0 %v3908_v23  ;;  %v10634_v6 = vadd.f32 %v10562_v7, %v1145_v42  ;;  %v3928_v47 = vand.u32 4294901760, %v3927_v31  ;;  %v12400_v7 = vand.u32 4294901760, %v10348_v4 }
 0x1b7   :  { %v1156_v32 = vpop.f32.mrf.mxu0 }
 0x1b8   :  { %v1157_v1 = vadd.f32 %v1156_v32, %v10439_v20  ;;  %v7878_v50 = vpop.f32.mrf.mxu1  ;;  %8280 = vmatmul.mubr.f32.vlgmr.msra.gmra.mxu1 %v12399_v48  ;;  %v10644_v63 = vadd.f32 %v7832_v58, %v1163_v15  ;;  %v3938_v32 = vand.u32 4294901760, %v3937_v3  ;;  %v10654_v58 = vsub.f32 %v4880_v5, %v10639_v16 }
 0x1b9   :  { %v7806_v23 = vpop.f32.mrf.mxu0  ;;  %8208 = vmatmul.mubr.f32.gmra.mxu0 %v3918_v18  ;;  %8282 = vmatprep.mubr.f32.mxu1 %v12400_v7  ;;  %v12401_v15 = vand.u32 4294901760, %v10399_v12  ;;  %v4879_v7 = vld [vmem:[#allocation2 + $0x90] sm:$0xff] }
 0x1ba   :  { %v1175_v55 = vadd.f32 %v7806_v23, %v10461_v9  ;;  %v1681_v42 = vpop.f32.mrf.mxu1  ;;  %8210 = vmatprep.mubr.f32.mxu0 %v3928_v47  ;;  %8330 = vmatpush3.msra.mxu1 %v10043_v39  ;;  %v10650_v49 = vadd.f32 %v1309_v21, %v1157_v1  ;;  %v12402_v21 = vand.u32 4294901760, %v10401_v54  ;;  %v12403_v23 = vand.u32 4294901760, %v10415_v24 }
 0x1bb   :  { %v1168_v20 = vpop.f32.mrf.mxu0  ;;  %8331 = vmatprep.subr.mxu1 %v10081_v44 }
 0x1bc   :  { %v1169_v18 = vadd.f32 %v1168_v20, %v10486_v13  ;;  %v7881_v31 = vpop.f32.mrf.mxu1  ;;  %8283 = vmatmul.mubr.f32.gmra.mxu1 %v12401_v15  ;;  %v10659_v9 = vadd.f32 %v7835_v2, %v1175_v55  ;;  %v10670_v2 = vand.u32 4294901760, %v10654_v58 }
 0x1bd   :  { %v7846_v48 = vpop.f32.mrf.mxu0  ;;  %8211 = vmatmul.mubr.f32.gmra.mxu0 %v3938_v32  ;;  %8285 = vmatprep.mubr.f32.mxu1 %v12402_v21  ;;  %v12405_v32 = vld [vmem:[#allocation11_spill] sm:$0xff] }
 0x1be   :  { %v1459_v39 = vadd.f32 %v7846_v48, %v10508_v61  ;;  %v1693_v3 = vpop.f32.mrf.mxu1  ;;  %8250 = vmatprep.mubr.f32.mxu0 %v10266_v46  ;;  %8332 = vmatpush3.msra.mxu1 %v10081_v44  ;;  %v10666_v5 = vadd.f32 %v1321_v35, %v1169_v18  ;;  %v12404_v44 = vand.u32 4294901760, %v10441_v52 }
 0x1bf   :  { %v1448_v13 = vpop.f32.mrf.mxu0  ;;  %8333 = vmatprep.subr.mxu1 %v10100_v51 }
 0x1c0   :  { %v1449_v1 = vadd.f32 %v1448_v13, %v10532_v56  ;;  %v7884_v47 = vpop.f32.mrf.mxu1  ;;  %8286 = vmatmul.mubr.f32.gmra.mxu1 %v12403_v23  ;;  %v10675_v61 = vadd.f32 %v7875_v38, %v1459_v39  ;;  %v10689_v38 = vand.u32 4294901760, %v4879_v7 }
 0x1c1   :  { %v7849_v46 = vpop.f32.mrf.mxu0  ;;  %8251 = vmatmul.mubr.f32.vlgmr.msra.gmra.mxu0 %v10253_v8  ;;  %8288 = vmatprep.mubr.f32.mxu1 %v12404_v44  ;;  %v5160_v8 = vsub.f32 %v10654_v58, %v10670_v2 }
 0x1c2   :  { %v1479_v35 = vadd.f32 %v7849_v46, %v10551_v62  ;;  %8301 = vmatpush3.msra.mxu0 %v10064_v27  ;;  %v1705_v55 = vpop.f32.mrf.mxu1  ;;  %8253 = vmatprep.mubr.f32.mxu0 %v10348_v4  ;;  %v10683_v56 = vadd.f32 %v1669_v41, %v1449_v1  ;;  %v12406_v27 = vand.u32 4294901760, %v10463_v57  ;;  %v4878_v41 = vld [vmem:[#allocation2 + $0x88] sm:$0xff] }
 0x1c3   :  { %v1468_v20 = vpop.f32.mrf.mxu0  ;;  %8302 = vmatprep.subr.mxu0 %v12405_v32  ;;  %8334 = vmatpush3.msra.mxu1 %v10100_v51  ;;  %v12407_v51 = vand.u32 4294901760, %v10465_v25  ;;  %v10712_v1 = vand.u32 4294901760, %v4878_v41 }
 0x1c4   :  { %v1469_v18 = vadd.f32 %v1468_v20, %v10566_v26  ;;  %v7887_v62 = vpop.f32.mrf.mxu1  ;;  %8289 = vmatmul.mubr.f32.gmra.mxu1 %v12406_v27  ;;  %8303 = vmatpush3.msra.mxu0 %v12405_v32  ;;  %v10695_v4 = vadd.f32 %v7878_v50, %v1479_v35  ;;  %v12408_v26 = vld [vmem:[#allocation12_spill] sm:$0xff]  ;;  %v10707_v50 = vand.u32 4294901760, %v5160_v8  ;;  %v12411_v35 = vand.u32 4294901760, %v10512_v14 }
 0x1c5   :  { %v7852_v15 = vpop.f32.mrf.mxu0  ;;  %8254 = vmatmul.mubr.f32.gmra.mxu0 %v10399_v12  ;;  %8291 = vmatprep.mubr.f32.mxu1 %v12407_v51  ;;  %v10710_v12 = vsub.f32 %v4879_v7, %v10689_v38 }
 0x1c6   :  { %v1499_v48 = vadd.f32 %v7852_v15, %v10583_v59  ;;  %v1717_v21 = vpop.f32.mrf.mxu1  ;;  %8256 = vmatprep.mubr.f32.mxu0 %v10401_v54  ;;  %8304 = vmatprep.subr.mxu0 %v12408_v26  ;;  %v10703_v39 = vadd.f32 %v1681_v42, %v1469_v18  ;;  %v12409_v54 = vand.u32 4294901760, %v10510_v11  ;;  %v12410_v42 = vld [vmem:[#allocation13_spill] sm:$0xff]  ;;  %v10742_v18 = vpop.permute.xlu1 %4794  ;;  %v12414_v15 = vand.u32 4294901760, %v10557_v60 }
 0x1c7   :  { %v1488_v13 = vpop.f32.mrf.mxu0  ;;  %8305 = vmatpush3.msra.mxu0 %v12408_v26  ;;  %8335 = vmatprep.subr.mxu1 %v10141_v19  ;;  %vm4835_vm13 = vcmp.eq.s32.totalorder %v9055_v43, %v10742_v18 }
 0x1c8   :  { %v1489_v59 = vadd.f32 %v1488_v13, %v10592_v40  ;;  %v7890_v23 = vpop.f32.mrf.mxu1  ;;  %8292 = vmatmul.mubr.f32.gmra.mxu1 %v12409_v54  ;;  %8306 = vmatprep.subr.mxu0 %v12410_v42  ;;  %v10718_v46 = vadd.f32 %v7881_v31, %v1499_v48  ;;  %v10731_v31 = vand.u32 4294901760, %v10710_v12  ;;  %v12416_v54 = vand.u32 4294901760, %v10587_v17 }
 0x1c9   :  { %v7855_v44 = vpop.f32.mrf.mxu0  ;;  %8257 = vmatmul.mubr.f32.gmra.mxu0 %v10415_v24  ;;  %8294 = vmatprep.mubr.f32.mxu1 %v12411_v35  ;;  %v10734_v24 = vsub.f32 %v4878_v41, %v10712_v1  ;;  %v4798_v35 = vpop.permute.xlu0 %4797 }
 0x1ca   :  { %v1519_v7 = vadd.f32 %v7855_v44, %v10609_v22  ;;  %v1729_v20 = vpop.f32.mrf.mxu1  ;;  %8259 = vmatprep.mubr.f32.mxu0 %v10441_v52  ;;  %8336 = vmatpush3.msra.mxu1 %v10141_v19  ;;  %v10726_v40 = vadd.f32 %v1693_v3, %v1489_v59  ;;  %12412 = vst [vmem:[#allocation11_spill] sm:$0xff] %v10731_v31  ;;  %v12413_v52 = vand.u32 4294901760, %v10553_v10  ;;  %v4877_v3 = vld [vmem:[#allocation2 + $0x80] sm:$0xff] }
 0x1cb   :  { %v1508_v32 = vpop.f32.mrf.mxu0  ;;  %8307 = vmatpush3.msra.mxu0 %v12410_v42  ;;  %8387 = vmatprep.subr.mxu1 %v10707_v50  ;;  %v10754_v26 = vand.u32 4294901760, %v10734_v24  ;;  %v10756_v13 = vand.u32 4294901760, %v4877_v3  ;;  %vm4836_vm12 = vcmp.eq.s32.totalorder %v9055_v43, %v4798_v35 }
 0x1cc   :  { %v1509_v22 = vadd.f32 %v1508_v32, %v10615_v37  ;;  %v7893_v8 = vpop.f32.mrf.mxu1  ;;  %8295 = vmatmul.mubr.f32.gmra.mxu1 %v12413_v52  ;;  %8358 = vmatprep.subr.mxu0 %v10639_v16  ;;  %v10740_v19 = vadd.f32 %v7884_v47, %v1519_v7  ;;  %v5167_v47 = vsub.f32 %v10710_v12, %v10731_v31 }
 0x1cd   :  { %v7858_v27 = vpop.f32.mrf.mxu0  ;;  %8260 = vmatmul.mubr.f32.gmra.mxu0 %v10463_v57  ;;  %8297 = vmatprep.mubr.f32.mxu1 %v12414_v15  ;;  %12415 = vst [vmem:[#allocation12_spill] sm:$0xff] %v10754_v26  ;;  %v12419_v15 = vld [vmem:[#allocation16_spill] sm:$0xff] }
 0x1ce   :  { %v1539_v41 = vadd.f32 %v7858_v27, %v10628_v33  ;;  %v1741_v37 = vpop.f32.mrf.mxu1  ;;  %8262 = vmatprep.mubr.f32.mxu0 %v10465_v25  ;;  %v10749_v51 = vadd.f32 %v1705_v55, %v1509_v22  ;;  %v12417_v55 = vld [vmem:[#allocation15_spill] sm:$0xff]  ;;  %v5168_v22 = vand.u32 4294901760, %v5167_v47 }
 0x1cf   :  { %v1528_v48 = vpop.f32.mrf.mxu0 }
 0x1d0   :  { %v1529_v57 = vadd.f32 %v1528_v48, %v10634_v6  ;;  %v7933_v59 = vpop.f32.mrf.mxu1  ;;  %8298 = vmatmul.mubr.f32.gmra.mxu1 %v12416_v54  ;;  %v10761_v33 = vadd.f32 %v7887_v62, %v1539_v41  ;;  %v10770_v6 = vpop.permute.xlu1 %4800  ;;  %v5174_v62 = vsub.f32 %v10734_v24, %v10754_v26  ;;  %v12421_v54 = vld [vmem:[#allocation17_spill] sm:$0xff] }
 0x1d1   :  { %v7861_v25 = vpop.f32.mrf.mxu0  ;;  %8263 = vmatmul.mubr.f32.gmra.mxu0 %v10510_v11  ;;  %8337 = vmatprep.mubr.msk.f32.mxu1 %vm244_vm0, %v12417_v55  ;;  %v10775_v11 = vsub.f32 %v4877_v3, %v10756_v13  ;;  %vm4837_vm14 = vcmp.eq.s32.totalorder %v9055_v43, %v10770_v6 }
 0x1d2   :  { %v1559_v42 = vadd.f32 %v7861_v25, %v10644_v63  ;;  %v1995_v44 = vpop.f32.mrf.mxu1  ;;  %8265 = vmatprep.mubr.f32.mxu0 %v10512_v14  ;;  %v10768_v7 = vadd.f32 %v1717_v21, %v1529_v57  ;;  %v12418_v63 = vld [vmem:[#allocation14_spill] sm:$0xff]  ;;  %v5175_v47 = vand.u32 4294901760, %v5174_v62 }
 0x1d3   :  { %v1548_v32 = vpop.f32.mrf.mxu0  ;;  %v12422_v25 = vld [vmem:[#allocation18_spill] sm:$0xff] }
 0x1d4   :  { %v1549_v52 = vadd.f32 %v1548_v32, %v10650_v49  ;;  %v7936_v27 = vpop.f32.mrf.mxu1  ;;  %8338 = vmatmul.mubr.msk.f32.vlgmr.msra.gmra.mxu1 %vm244_vm0, %v12418_v63  ;;  %v10780_v14 = vadd.f32 %v7890_v23, %v1559_v42  ;;  %v10791_v23 = vand.u32 4294901760, %v10775_v11 }
 0x1d5   :  { %v7864_v21 = vpop.f32.mrf.mxu0  ;;  %8266 = vmatmul.mubr.f32.gmra.mxu0 %v10553_v10  ;;  %8340 = vmatprep.mubr.msk.f32.mxu1 %vm244_vm0, %v12419_v15 }
 0x1d6   :  { %v1579_v41 = vadd.f32 %v7864_v21, %v10659_v9  ;;  %v2011_v48 = vpop.f32.mrf.mxu1  ;;  %8268 = vmatprep.mubr.f32.mxu0 %v10557_v60  ;;  %8388 = vmatpush3.msra.mxu1 %v10707_v50  ;;  %v10788_v49 = vadd.f32 %v1729_v20, %v1549_v52  ;;  %12420 = vst [vmem:[#allocation13_spill] sm:$0xff] %v10791_v23  ;;  %v10798_v9 = vpop.permute.xlu0 %4806 }
 0x1d7   :  { %v1568_v3 = vpop.f32.mrf.mxu0  ;;  %8389 = vmatprep.subr.mxu1 %v5168_v22  ;;  %v10802_v50 = vpop.permute.xlu1 %4803  ;;  %v5181_v62 = vsub.f32 %v10775_v11, %v10791_v23  ;;  %vm4839_vm1 = vcmp.eq.s32.totalorder %v9055_v43, %v10798_v9 }
 0x1d8   :  { %v1569_v10 = vadd.f32 %v1568_v3, %v10666_v5  ;;  %v10794_v57 = vpop.f32.mrf.mxu1  ;;  %8341 = vmatmul.mubr.msk.f32.gmra.mxu1 %vm244_vm0, %v12421_v54  ;;  %v10800_v60 = vadd.f32 %v7893_v8, %v1579_v41  ;;  %v12423_v41 = vmov 0.0   ;;  %vm4838_vm15 = vcmp.eq.s32.totalorder %v9055_v43, %v10802_v50 }
 0x1d9   :  { %v7904_v20 = vpop.f32.mrf.mxu0  ;;  %8269 = vmatmul.mubr.f32.gmra.mxu0 %v10587_v17  ;;  %8343 = vmatprep.mubr.msk.f32.mxu1 %vm244_vm0, %v12422_v25 }
 0x1da   :  { %v1835_v42 = vadd.f32 %v7904_v20, %v10675_v61  ;;  %v10808_v5 = vpop.f32.mrf.mxu1  ;;  %8308 = vmatprep.mubr.msk.f32.mxu0 %vm244_vm0, %v12417_v55  ;;  %8390 = vmatpush3.msra.mxu1 %v5168_v22  ;;  %v10812_v32 = vadd.f32 %v1741_v37, %v1569_v10 }
 0x1db   :  { %v1827_v8 = vpop.f32.mrf.mxu0  ;;  %8391 = vmatprep.subr.mxu1 %v5175_v47  ;;  %v10840_v21 = vpop.permute.xlu1 %4809 }
 0x1dc   :  { %v1828_v17 = vadd.f32 %v1827_v8, %v10683_v56  ;;  %v10818_v52 = vpop.f32.mrf.mxu1  ;;  %8344 = vmatmul.mubr.msk.f32.gmra.mxu1 %vm244_vm0, %v10324_v34  ;;  %v10822_v61 = vadd.f32 %v7933_v59, %v1835_v42  ;;  %v10836_v59 = vpop.permute.xlu0 %4812  ;;  %v10882_v42 = vsel %vm4837_vm14, 1.0, %v12423_v41  ;;  %vm4840_vm3 = vcmp.eq.s32.totalorder %v9055_v43, %v10840_v21 }
 0x1dd   :  { %v7907_v37 = vpop.f32.mrf.mxu0  ;;  %8309 = vmatmul.mubr.msk.f32.vlgmr.msra.gmra.mxu0 %vm244_vm0, %v12418_v63  ;;  %8346 = vmatprep.mubr.msk.f32.mxu1 %vm244_vm0, %v10360_v30  ;;  %v10845_v63 = vsel %vm4836_vm12, 1.0, %v12423_v41  ;;  %12426 = vst [vmem:[#allocation16_spill] sm:$0xff] %v10882_v42  ;;  %vm4841_vm2 = vcmp.eq.s32.totalorder %v9055_v43, %v10836_v59  ;;  %v10971_v59 = vsel %vm4840_vm3, 1.0, %v12423_v41 }
 0x1de   :  { %v1849_v55 = vadd.f32 %v7907_v37, %v10695_v4  ;;  %8359 = vmatpush3.msra.mxu0 %v10639_v16  ;;  %v10832_v56 = vpop.f32.mrf.mxu1  ;;  %8311 = vmatprep.mubr.msk.f32.mxu0 %vm244_vm0, %v12419_v15  ;;  %v10838_v22 = vadd.f32 %v1995_v44, %v1828_v17  ;;  %12424 = vst [vmem:[#allocation15_spill] sm:$0xff] %v10845_v63  ;;  %v5182_v4 = vand.u32 4294901760, %v5181_v62  ;;  %v10852_v15 = vsel %vm4835_vm13, 1.0, %v12423_v41 }
 0x1df   :  { %v1841_v3 = vpop.f32.mrf.mxu0  ;;  %8360 = vmatprep.subr.mxu0 %v10689_v38  ;;  %8392 = vmatpush3.msra.mxu1 %v5175_v47  ;;  %12425 = vst [vmem:[#allocation14_spill] sm:$0xff] %v10852_v15  ;;  %v4816_v17 = vpop.permute.xlu1 %4815  ;;  %v10955_v9 = vsel %vm4841_vm2, 1.0, %v12423_v41 }
 0x1e0   :  { %v1842_v44 = vadd.f32 %v1841_v3, %v10703_v39  ;;  %v10855_v10 = vpop.f32.mrf.mxu1  ;;  %8347 = vmatmul.mubr.msk.f32.gmra.mxu1 %vm244_vm0, %v10376_v45  ;;  %8361 = vmatpush3.msra.mxu0 %v10689_v38  ;;  %v10860_v35 = vadd.f32 %v7936_v27, %v1849_v55  ;;  %v4885_v39 = vsel %vm244_vm0, %v10845_v63, 0  ;;  %v4882_v27 = vsel %vm244_vm0, %v10852_v15, 0  ;;  %12429 = vst [vmem:[#allocation20_spill] sm:$0xff] %v10955_v9 }
 0x1e1   :  { %v7910_v47 = vpop.f32.mrf.mxu0  ;;  %8312 = vmatmul.mubr.msk.f32.gmra.mxu0 %vm244_vm0, %v12421_v54  ;;  %8349 = vmatprep.mubr.msk.f32.mxu1 %vm244_vm0, %v10385_v28  ;;  %v10897_v62 = vsub.f32 %v4885_v39, %v4885_v39  ;;  %v10913_v3 = vsub.f32 %v4882_v27, %v4882_v27  ;;  %vm4842_vm4 = vcmp.eq.s32.totalorder %v9055_v43, %v4816_v17 }
 0x1e2   :  { %v1863_v18 = vadd.f32 %v7910_v47, %v10718_v46  ;;  %v10871_v20 = vpop.f32.mrf.mxu1  ;;  %8314 = vmatprep.mubr.msk.f32.mxu0 %vm244_vm0, %v12422_v25  ;;  %8362 = vmatprep.subr.mxu0 %v10712_v1  ;;  %v10876_v6 = vadd.f32 %v2011_v48, %v1842_v44  ;;  %v10887_v25 = vpop.permute.xlu0 %4818  ;;  %v4888_v44 = vsel %vm244_vm0, %v10882_v42, 0 }
 0x1e3   :  { %v1855_v54 = vpop.f32.mrf.mxu0  ;;  %8363 = vmatpush3.msra.mxu0 %v10712_v1  ;;  %8393 = vmatprep.subr.mxu1 %v5182_v4  ;;  %v12266_v47 = vand.u32 4294901760, %v10897_v62  ;;  %vm4843_vm5 = vcmp.eq.s32.totalorder %v9055_v43, %v10887_v25 }
 0x1e4   :  { %v1856_v46 = vadd.f32 %v1855_v54, %v10726_v40  ;;  %v10889_v8 = vpop.f32.mrf.mxu1  ;;  %8350 = vmatmul.mubr.msk.f32.gmra.mxu1 %vm244_vm0, %v10425_v53  ;;  %8364 = vmatprep.subr.mxu0 %v10756_v13  ;;  %v10895_v48 = vadd.f32 %v10794_v57, %v1863_v18  ;;  %v10965_v54 = vsub.f32 %v4888_v44, %v4888_v44 }
 0x1e5   :  { %v7913_v37 = vpop.f32.mrf.mxu0  ;;  %8315 = vmatmul.mubr.msk.f32.gmra.mxu0 %vm244_vm0, %v10324_v34  ;;  %8352 = vmatprep.mubr.msk.f32.mxu1 %vm244_vm0, %v10446_v0  ;;  %v10921_v34 = vsel %vm4838_vm15, 1.0, %v12423_v41 }
 0x1e6   :  { %v1877_v40 = vadd.f32 %v7913_v37, %v10740_v19  ;;  %v10906_v55 = vpop.f32.mrf.mxu1  ;;  %8317 = vmatprep.mubr.msk.f32.mxu0 %vm244_vm0, %v10360_v30  ;;  %8394 = vmatpush3.msra.mxu1 %v5182_v4  ;;  %v10911_v57 = vadd.f32 %v10808_v5, %v1856_v46  ;;  %12427 = vst [vmem:[#allocation17_spill] sm:$0xff] %v10921_v34  ;;  %v10933_v30 = vsel %vm4839_vm1, 1.0, %v12423_v41 }
 0x1e7   :  { %v1869_v19 = vpop.f32.mrf.mxu0  ;;  %8365 = vmatpush3.msra.mxu0 %v10756_v13  ;;  %8445 = vmatprep.subr.mxu1 %v10639_v16  ;;  %12428 = vst [vmem:[#allocation18_spill] sm:$0xff] %v10933_v30  ;;  %v4894_v46 = vsel %vm244_vm0, %v10933_v30, 0 }
 0x1e8   :  { %v1870_v50 = vadd.f32 %v1869_v19, %v10749_v51  ;;  %v10936_v5 = vpop.f32.mrf.mxu1  ;;  %8353 = vmatmul.mubr.msk.f32.gmra.mxu1 %vm244_vm0, %v10472_v29  ;;  %8416 = vmatprep.subr.mxu0 %v10654_v58  ;;  %v10942_v4 = vadd.f32 %v10818_v52, %v1877_v40  ;;  %v4891_v51 = vsel %vm244_vm0, %v10921_v34, 0  ;;  %v4825_v52 = vpop.permute.xlu0 %4824 }
 0x1e9   :  { %v7916_v39 = vpop.f32.mrf.mxu0  ;;  %8318 = vmatmul.mubr.msk.f32.gmra.mxu0 %vm244_vm0, %v10376_v45  ;;  %8355 = vmatprep.mubr.msk.f32.mxu1 %vm244_vm0, %v10491_v36  ;;  %v10985_v19 = vsub.f32 %v4891_v51, %v4891_v51  ;;  %vm4845_vm6 = vcmp.eq.s32.totalorder %v9055_v43, %v4825_v52 }
 0x1ea   :  { %v1891_v18 = vadd.f32 %v7916_v39, %v10761_v33  ;;  %v10958_v27 = vpop.f32.mrf.mxu1  ;;  %8320 = vmatprep.mubr.msk.f32.mxu0 %vm244_vm0, %v10385_v28  ;;  %v10963_v45 = vadd.f32 %v10832_v56, %v1870_v50  ;;  %v4822_v33 = vpop.permute.xlu1 %4821  ;;  %v12430_v56 = vld [vmem:[#allocation19_spill] sm:$0xff]  ;;  %v10990_v50 = vsub.f32 %v10897_v62, %v12266_v47  ;;  %v11015_v47 = vsub.f32 %v4894_v46, %v4894_v46 }
 0x1eb   :  { %v1883_v37 = vpop.f32.mrf.mxu0  ;;  %vm4844_vm7 = vcmp.eq.s32.totalorder %v9055_v43, %v4822_v33 }
 0x1ec   :  { %v1884_v28 = vadd.f32 %v1883_v37, %v10768_v7  ;;  %v10977_v40 = vpop.f32.mrf.mxu1  ;;  %8356 = vmatmul.mubr.msk.f32.gmra.mxu1 %vm244_vm0, %v12430_v56  ;;  %v10983_v21 = vadd.f32 %v10855_v10, %v1891_v18  ;;  %v4900_v7 = vsel %vm244_vm0, %v10955_v9, 0  ;;  %v4897_v10 = vsel %vm244_vm0, %v10971_v59, 0 }
 0x1ed   :  { %v7919_v39 = vpop.f32.mrf.mxu0  ;;  %8321 = vmatmul.mubr.msk.f32.gmra.mxu0 %vm244_vm0, %v10425_v53  ;;  %8395 = vmatprep.mubr.msk.f32.mxu1 %vm244_vm0, %v10852_v15  ;;  %v11013_v53 = vsel %vm4842_vm4, 1.0, %v12423_v41  ;;  %v11034_v23 = vsub.f32 %v4900_v7, %v4900_v7 }
 0x1ee   :  { %v1905_v51 = vadd.f32 %v7919_v39, %v10780_v14  ;;  %v11003_v18 = vpop.f32.mrf.mxu1  ;;  %8323 = vmatprep.mubr.msk.f32.mxu0 %vm244_vm0, %v10446_v0  ;;  %v11008_v37 = vadd.f32 %v10871_v20, %v1884_v28  ;;  %v4831_v39 = vpop.permute.xlu0 %4830  ;;  %v12431_v20 = vand.u32 4294901760, %v10913_v3  ;;  %v11031_v28 = vsub.f32 %v4897_v10, %v4897_v10 }
 0x1ef   :  { %v1897_v44 = vpop.f32.mrf.mxu0  ;;  %v5006_v14 = vand.u32 4294901760, %v10990_v50  ;;  %v4828_v26 = vpop.permute.xlu1 %4827  ;;  %v11051_v50 = vsel %vm4845_vm6, 1.0, %v12423_v41  ;;  %v11065_v10 = vsel %vm4844_vm7, 1.0, %v12423_v41  ;;  %vm4847_vm8 = vcmp.eq.s32.totalorder %v9055_v43, %v4831_v39 }
 0x1f0   :  { %v1898_v0 = vadd.f32 %v1897_v44, %v10788_v49  ;;  %v11021_v15 = vpop.f32.mrf.mxu1  ;;  %8396 = vmatmul.mubr.msk.f32.vlgmr.msra.gmra.mxu1 %vm244_vm0, %v10845_v63  ;;  %v4995_v17 = vsub.f32 %v10913_v3, %v12431_v20  ;;  %v11029_v46 = vadd.f32 %v10889_v8, %v1905_v51  ;;  %v11040_v49 = vsel %vm4843_vm5, 1.0, %v12423_v41 }
 0x1f1   :  { %v7922_v44 = vpop.f32.mrf.mxu0  ;;  %8324 = vmatmul.mubr.msk.f32.gmra.mxu0 %vm244_vm0, %v10472_v29  ;;  %8398 = vmatprep.mubr.msk.f32.mxu1 %vm244_vm0, %v10882_v42  ;;  %v4903_v8 = vsel %vm244_vm0, %v11013_v53, 0  ;;  %v12432_v51 = vand.u32 4294901760, %v10965_v54  ;;  %v4912_v20 = vsel %vm244_vm0, %v11051_v50, 0  ;;  %vm4846_vm9 = vcmp.eq.s32.totalorder %v9055_v43, %v4828_v26 }
 0x1f2   :  { %v1919_v7 = vadd.f32 %v7922_v44, %v10800_v60  ;;  %v11054_v25 = vpop.f32.mrf.mxu1  ;;  %8326 = vmatprep.mubr.msk.f32.mxu0 %vm244_vm0, %v10491_v36  ;;  %8446 = vmatpush3.msra.mxu1 %v10639_v16  ;;  %v11060_v29 = vadd.f32 %v10906_v55, %v1898_v0  ;;  %v4996_v33 = vand.u32 4294901760, %v4995_v17  ;;  %v4906_v44 = vsel %vm244_vm0, %v11040_v49, 0 }
 0x1f3   :  { %v1911_v52 = vpop.f32.mrf.mxu0  ;;  %v5015_v60 = vsub.f32 %v10965_v54, %v12432_v51  ;;  %8447 = vmatprep.subr.mxu1 %v10689_v38  ;;  %v11082_v51 = vsub.f32 %v4903_v8, %v4903_v8 }
 0x1f4   :  { %v1912_v36 = vadd.f32 %v1911_v52, %v10812_v32  ;;  %v11075_v55 = vpop.f32.mrf.mxu1  ;;  %8399 = vmatmul.mubr.msk.f32.gmra.mxu1 %vm244_vm0, %v10921_v34  ;;  %v11080_v0 = vadd.f32 %v10936_v5, %v1919_v7  ;;  %v4909_v5 = vsel %vm244_vm0, %v11065_v10, 0  ;;  %v11106_v52 = vsel %vm4847_vm8, 1.0, %v12423_v41 }
 0x1f5   :  { %v7962_v42 = vpop.f32.mrf.mxu0  ;;  %8327 = vmatmul.mubr.msk.f32.gmra.mxu0 %vm244_vm0, %v12430_v56  ;;  %8401 = vmatprep.mubr.msk.f32.mxu1 %vm244_vm0, %v10933_v30  ;;  %v4834_v56 = vpop.permute.xlu1 %4833  ;;  %v12433_v30 = vand.u32 4294901760, %v10985_v19  ;;  %v11126_v31 = vsub.f32 %v4909_v5, %v4909_v5 }
 0x1f6   :  { %v2189_v17 = vadd.f32 %v7962_v42, %v10822_v61  ;;  %v11097_v8 = vpop.f32.mrf.mxu1  ;;  %8366 = vmatprep.mubr.f32.mxu0 %v4996_v33  ;;  %8448 = vmatpush3.msra.mxu1 %v10689_v38  ;;  %v11101_v7 = vadd.f32 %v10958_v27, %v1912_v36  ;;  %v12434_v61 = vand.u32 4294901760, %v11015_v47  ;;  %v11116_v27 = vsub.f32 %v4906_v44, %v4906_v44 }
 0x1f7   :  { %v2182_v32 = vpop.f32.mrf.mxu0  ;;  %v5025_v34 = vsub.f32 %v10985_v19, %v12433_v30  ;;  %8449 = vmatprep.subr.mxu1 %v10712_v1  ;;  %v5016_v30 = vand.u32 4294901760, %v5015_v60  ;;  %v11133_v44 = vsub.f32 %v4912_v20, %v4912_v20  ;;  %vm4848_vm10 = vcmp.eq.s32.totalorder %v9055_v43, %v4834_v56 }
 0x1f8   :  { %v5035_v42 = vsub.f32 %v11015_v47, %v12434_v61  ;;  %v11119_v36 = vadd.f32 %v10977_v40, %v2189_v17  ;;  %v2183_v39 = vadd.f32 %v2182_v32, %v10838_v22  ;;  %v11122_v63 = vpop.f32.mrf.mxu1  ;;  %8402 = vmatmul.mubr.msk.f32.gmra.mxu1 %vm244_vm0, %v10971_v59  ;;  %v11131_v61 = vsel %vm4846_vm9, 1.0, %v12423_v41 }
 0x1f9   :  { %v7965_v33 = vpop.f32.mrf.mxu0  ;;  %8367 = vmatmul.mubr.f32.vlgmr.msra.gmra.mxu0 %v5006_v14  ;;  %8404 = vmatprep.mubr.msk.f32.mxu1 %vm244_vm0, %v10955_v9  ;;  %v12436_v22 = vand.u32 4294901760, %v11031_v28  ;;  %v4918_v60 = vsel %vm244_vm0, %v11106_v52, 0  ;;  %v5026_v5 = vand.u32 4294901760, %v5025_v34  ;;  %v5064_v9 = vand.u32 4294901760, %v11082_v51 }
 0x1fa   :  { %12435 = vst [vmem:[#allocation19_spill] sm:$0xff] %v11119_v36  ;;  %v11144_v26 = vadd.f32 %v11003_v18, %v2183_v39  ;;  %v2201_v20 = vadd.f32 %v7965_v33, %v10860_v35  ;;  %8417 = vmatpush3.msra.mxu0 %v10654_v58  ;;  %v11148_v14 = vpop.f32.mrf.mxu1  ;;  %8369 = vmatprep.mubr.f32.mxu0 %v5016_v30  ;;  %v5036_v17 = vand.u32 4294901760, %v5035_v42  ;;  %v4915_v35 = vsel %vm244_vm0, %v11131_v61, 0 }
 0x1fb   :  { %v5045_v40 = vsub.f32 %v11031_v28, %v12436_v22  ;;  %v2194_v32 = vpop.f32.mrf.mxu0  ;;  %8418 = vmatprep.subr.mxu0 %v10710_v12  ;;  %v12437_v22 = vand.u32 4294901760, %v11034_v23  ;;  %8450 = vmatpush3.msra.mxu1 %v10712_v1  ;;  %v12287_v42 = vand.u32 4294901760, %v11116_v27  ;;  %v11171_v33 = vsel %vm4848_vm10, 1.0, %v12423_v41 }
 0x1fc   :  { %v11159_v58 = vadd.f32 %v11021_v15, %v2201_v20  ;;  %v2195_v18 = vadd.f32 %v2194_v32, %v10876_v6  ;;  %v11162_v34 = vpop.f32.mrf.mxu1  ;;  %8405 = vmatmul.mubr.msk.f32.gmra.mxu1 %vm244_vm0, %v11013_v53  ;;  %8419 = vmatpush3.msra.mxu0 %v10710_v12  ;;  %v11173_v39 = vsub.f32 %v4918_v60, %v4918_v60  ;;  %v12286_v43 = vand.u32 4294901760, %v11126_v31 }
 0x1fd   :  { %v5055_v36 = vsub.f32 %v11034_v23, %v12437_v22  ;;  %v7968_v15 = vpop.f32.mrf.mxu0  ;;  %8370 = vmatmul.mubr.f32.gmra.mxu0 %v5026_v5  ;;  %8407 = vmatprep.mubr.msk.f32.mxu1 %vm244_vm0, %v11040_v49  ;;  %v5046_v20 = vand.u32 4294901760, %v5045_v40  ;;  %v11183_v56 = vsub.f32 %v4915_v35, %v4915_v35  ;;  %v5065_v5 = vsub.f32 %v11082_v51, %v5064_v9 }
 0x1fe   :  { %v11178_v6 = vadd.f32 %v11054_v25, %v2195_v18  ;;  %v2213_v30 = vadd.f32 %v7968_v15, %v10895_v48  ;;  %v2383_v12 = vpop.f32.mrf.mxu1  ;;  %8372 = vmatprep.mubr.f32.mxu0 %v5036_v17  ;;  %8420 = vmatprep.subr.mxu0 %v10734_v24  ;;  %v12285_v25 = vand.u32 4294901760, %v11133_v44  ;;  %v4921_v48 = vsel %vm244_vm0, %v11171_v33, 0 }
 0x1ff   :  { %v2206_v60 = vpop.f32.mrf.mxu0  ;;  %v5056_v32 = vand.u32 4294901760, %v5055_v36  ;;  %8421 = vmatpush3.msra.mxu0 %v10734_v24  ;;  %8451 = vmatprep.subr.mxu1 %v10756_v13  ;;  %v5075_v24 = vsub.f32 %v11116_v27, %v12287_v42  ;;  %v5085_v18 = vsub.f32 %v11126_v31, %v12286_v43  ;;  %v11213_v15 = vsub.f32 %v4921_v48, %v4921_v48 }
 0x200   :  { %v11194_v40 = vadd.f32 %v11075_v55, %v2213_v30  ;;  %v2207_v17 = vadd.f32 %v2206_v60, %v10911_v57  ;;  %v8006_v22 = vpop.f32.mrf.mxu1  ;;  %8408 = vmatmul.mubr.msk.f32.gmra.mxu1 %vm244_vm0, %v11065_v10  ;;  %8422 = vmatprep.subr.mxu0 %v10775_v11  ;;  %v5095_v60 = vsub.f32 %v11133_v44, %v12285_v25  ;;  %v12288_v48 = vand.u32 4294901760, %v11173_v39 }
 0x201   :  { %v7971_v36 = vpop.f32.mrf.mxu0  ;;  %8373 = vmatmul.mubr.f32.gmra.mxu0 %v5046_v20  ;;  %8410 = vmatprep.mubr.msk.f32.mxu1 %vm244_vm0, %v11051_v50  ;;  %v5066_v20 = vand.u32 4294901760, %v5065_v5  ;;  %v5076_v5 = vand.u32 4294901760, %v5075_v24  ;;  %v5124_v25 = vand.u32 4294901760, %v11213_v15 }
 0x202   :  { %v11206_v55 = vadd.f32 %v11097_v8, %v2207_v17  ;;  %v2225_v57 = vadd.f32 %v7971_v36, %v10942_v4  ;;  %v2395_v35 = vpop.f32.mrf.mxu1  ;;  %8375 = vmatprep.mubr.f32.mxu0 %v5056_v32  ;;  %8452 = vmatpush3.msra.mxu1 %v10756_v13  ;;  %v12289_v8 = vand.u32 4294901760, %v11183_v56 }
 0x203   :  { %v2218_v30 = vpop.f32.mrf.mxu0  ;;  %8423 = vmatpush3.msra.mxu0 %v10775_v11  ;;  %8503 = vmatprep.subr.mxu1 %v10639_v16 }
 0x204   :  { %v11222_v4 = vadd.f32 %v11122_v63, %v2225_v57  ;;  %v2219_v32 = vadd.f32 %v2218_v30, %v10963_v45  ;;  %v8009_v17 = vpop.f32.mrf.mxu1  ;;  %8411 = vmatmul.mubr.msk.f32.gmra.mxu1 %vm244_vm0, %v11131_v61  ;;  %8474 = vmatprep.subr.mxu0 %v10670_v2  ;;  %v5086_v30 = vand.u32 4294901760, %v5085_v18  ;;  %v5105_v24 = vsub.f32 %v11183_v56, %v12289_v8 }
 0x205   :  { %v7974_v36 = vpop.f32.mrf.mxu0  ;;  %8376 = vmatmul.mubr.f32.gmra.mxu0 %v5066_v20  ;;  %8413 = vmatprep.mubr.msk.f32.mxu1 %vm244_vm0, %v11106_v52  ;;  %v12439_v8 = vand.u32 4294901760, %v10897_v62 }
 0x206   :  { %v11232_v11 = vadd.f32 %v11148_v14, %v2219_v32  ;;  %v2237_v63 = vadd.f32 %v7974_v36, %v10983_v21  ;;  %v2407_v45 = vpop.f32.mrf.mxu1  ;;  %8378 = vmatprep.mubr.f32.mxu0 %v5076_v5  ;;  %v5096_v21 = vand.u32 4294901760, %v5095_v60  ;;  %v5115_v14 = vsub.f32 %v11173_v39, %v12288_v48 }
 0x207   :  { %v2230_v57 = vpop.f32.mrf.mxu0  ;;  %v12438_v32 = vand.u32 4294901760, %v10913_v3  ;;  %v5125_v60 = vsub.f32 %v11213_v15, %v5124_v25 }
 0x208   :  { %v11240_v20 = vadd.f32 %v11162_v34, %v2237_v63  ;;  %v2231_v43 = vadd.f32 %v2230_v57, %v11008_v37  ;;  %v8049_v42 = vpop.f32.mrf.mxu1  ;;  %8414 = vmatmul.mubr.msk.f32.gmra.mxu1 %vm244_vm0, %v11171_v33  ;;  %v5106_v63 = vand.u32 4294901760, %v5105_v24 }
 0x209   :  { %v7977_v18 = vpop.f32.mrf.mxu0  ;;  %8379 = vmatmul.mubr.f32.gmra.mxu0 %v5086_v30  ;;  %8453 = vmatprep.mubr.f32.mxu1 %v12438_v32 }
 0x20a   :  { %v11250_v5 = vadd.f32 %v2383_v12, %v2231_v43  ;;  %v2249_v34 = vadd.f32 %v7977_v18, %v11029_v46  ;;  %v2843_v36 = vpop.f32.mrf.mxu1  ;;  %8381 = vmatprep.mubr.f32.mxu0 %v5096_v21  ;;  %v5116_v12 = vand.u32 4294901760, %v5115_v14  ;;  %v12440_v46 = vand.u32 4294901760, %v10965_v54 }
 0x20b   :  { %v2242_v37 = vpop.f32.mrf.mxu0 }
 0x20c   :  { %v11256_v57 = vadd.f32 %v8006_v22, %v2249_v34  ;;  %v2243_v48 = vadd.f32 %v2242_v37, %v11060_v29  ;;  %v8052_v30 = vpop.f32.mrf.mxu1  ;;  %8454 = vmatmul.mubr.f32.vlgmr.msra.gmra.mxu1 %v12439_v8  ;;  %v5126_v29 = vand.u32 4294901760, %v5125_v60  ;;  %v12441_v34 = vand.u32 4294901760, %v10985_v19 }
 0x20d   :  { %v7980_v43 = vpop.f32.mrf.mxu0  ;;  %8382 = vmatmul.mubr.f32.gmra.mxu0 %v5106_v63  ;;  %8456 = vmatprep.mubr.f32.mxu1 %v12440_v46  ;;  %v12443_v60 = vand.u32 4294901760, %v11031_v28 }
 0x20e   :  { %v11263_v21 = vadd.f32 %v2395_v35, %v2243_v48  ;;  %v2261_v24 = vadd.f32 %v7980_v43, %v11080_v0  ;;  %v2855_v18 = vpop.f32.mrf.mxu1  ;;  %8384 = vmatprep.mubr.f32.mxu0 %v5116_v12  ;;  %8504 = vmatpush3.msra.mxu1 %v10639_v16  ;;  %v12442_v0 = vand.u32 4294901760, %v11015_v47 }
 0x20f   :  { %v2254_v22 = vpop.f32.mrf.mxu0  ;;  %8505 = vmatprep.subr.mxu1 %v10689_v38 }
 0x210   :  { %v11268_v32 = vadd.f32 %v8009_v17, %v2261_v24  ;;  %v2255_v8 = vadd.f32 %v2254_v22, %v11101_v7  ;;  %v8055_v14 = vpop.f32.mrf.mxu1  ;;  %8457 = vmatmul.mubr.f32.gmra.mxu1 %v12441_v34  ;;  %v12449_v22 = vld [vmem:[#allocation13_spill] sm:$0xff] }
 0x211   :  { %v8020_v35 = vpop.f32.mrf.mxu0  ;;  %8385 = vmatmul.mubr.f32.gmra.mxu0 %v5126_v29  ;;  %8459 = vmatprep.mubr.f32.mxu1 %v12442_v0 }
 0x212   :  { %v11275_v48 = vadd.f32 %v2407_v45, %v2255_v8  ;;  %v11277_v16 = vadd.f32 %v8049_v42, %v8020_v35  ;;  %v2867_v37 = vpop.f32.mrf.mxu1  ;;  %8424 = vmatprep.mubr.f32.mxu0 %v10913_v3  ;;  %8506 = vmatpush3.msra.mxu1 %v10689_v38  ;;  %v12444_v42 = vand.u32 4294901760, %v11034_v23 }
 0x213   :  { %v2622_v17 = vpop.f32.mrf.mxu0  ;;  %8507 = vmatprep.subr.mxu1 %v10712_v1 }
 0x214   :  { %v11282_v7 = vadd.f32 %v2843_v36, %v2622_v17  ;;  %v8058_v63 = vpop.f32.mrf.mxu1  ;;  %8460 = vmatmul.mubr.f32.gmra.mxu1 %v12443_v60  ;;  %v12445_v36 = vld [vmem:[#allocation11_spill] sm:$0xff] }
 0x215   :  { %v8023_v12 = vpop.f32.mrf.mxu0  ;;  %8425 = vmatmul.mubr.f32.vlgmr.msra.gmra.mxu0 %v10897_v62  ;;  %8462 = vmatprep.mubr.f32.mxu1 %v12444_v42 }
 0x216   :  { %v11289_v45 = vadd.f32 %v8052_v30, %v8023_v12  ;;  %8475 = vmatpush3.msra.mxu0 %v10670_v2  ;;  %v2879_v38 = vpop.f32.mrf.mxu1  ;;  %8427 = vmatprep.mubr.f32.mxu0 %v10965_v54  ;;  %v12446_v2 = vand.u32 4294901760, %v11116_v27 }
 0x217   :  { %v2642_v3 = vpop.f32.mrf.mxu0  ;;  %8476 = vmatprep.subr.mxu0 %v12445_v36  ;;  %8508 = vmatpush3.msra.mxu1 %v10712_v1  ;;  %v12447_v1 = vld [vmem:[#allocation12_spill] sm:$0xff] }
 0x218   :  { %v11295_v43 = vadd.f32 %v2855_v18, %v2642_v3  ;;  %v8061_v46 = vpop.f32.mrf.mxu1  ;;  %8463 = vmatmul.mubr.f32.gmra.mxu1 %v5064_v9  ;;  %8477 = vmatpush3.msra.mxu0 %v12445_v36 }
 0x219   :  { %v8026_v62 = vpop.f32.mrf.mxu0  ;;  %8428 = vmatmul.mubr.f32.gmra.mxu0 %v10985_v19  ;;  %8465 = vmatprep.mubr.f32.mxu1 %v12446_v2  ;;  %v12448_v19 = vand.u32 4294901760, %v11126_v31 }
 0x21a   :  { %v11303_v54 = vadd.f32 %v8055_v14, %v8026_v62  ;;  %v2891_v30 = vpop.f32.mrf.mxu1  ;;  %8430 = vmatprep.mubr.f32.mxu0 %v11015_v47  ;;  %8478 = vmatprep.subr.mxu0 %v12447_v1  ;;  %v12450_v47 = vand.u32 4294901760, %v11133_v44  ;;  %v12454_v62 = vld [vmem:[#allocation15_spill] sm:$0xff] }
 0x21b   :  { %v2662_v24 = vpop.f32.mrf.mxu0  ;;  %8479 = vmatpush3.msra.mxu0 %v12447_v1  ;;  %8509 = vmatprep.subr.mxu1 %v10756_v13 }
 0x21c   :  { %v11309_v9 = vadd.f32 %v2867_v37, %v2662_v24  ;;  %v8064_v18 = vpop.f32.mrf.mxu1  ;;  %8466 = vmatmul.mubr.f32.gmra.mxu1 %v12448_v19  ;;  %8480 = vmatprep.subr.mxu0 %v12449_v22 }
 0x21d   :  { %v8029_v29 = vpop.f32.mrf.mxu0  ;;  %8431 = vmatmul.mubr.f32.gmra.mxu0 %v11031_v28  ;;  %8468 = vmatprep.mubr.f32.mxu1 %v12450_v47  ;;  %v12451_v28 = vand.u32 4294901760, %v11183_v56 }
 0x21e   :  { %v11317_v8 = vadd.f32 %v8058_v63, %v8029_v29  ;;  %v2903_v14 = vpop.f32.mrf.mxu1  ;;  %8433 = vmatprep.mubr.f32.mxu0 %v11034_v23  ;;  %8510 = vmatpush3.msra.mxu1 %v10756_v13  ;;  %v12452_v23 = vand.u32 4294901760, %v11173_v39 }
 0x21f   :  { %v2682_v34 = vpop.f32.mrf.mxu0  ;;  %8481 = vmatpush3.msra.mxu0 %v12449_v22  ;;  %8567 = vmatprep.subr.mxu1 %v12423_v41 }
 0x220   :  { %v11323_v35 = vadd.f32 %v2879_v38, %v2682_v34  ;;  %v8067_v0 = vpop.f32.mrf.mxu1  ;;  %8469 = vmatmul.mubr.f32.gmra.mxu1 %v12451_v28  ;;  %8532 = vmatprep.subr.mxu0 %v12423_v41  ;;  %v12453_v38 = vld [vmem:[#allocation14_spill] sm:$0xff] }
 0x221   :  { %v8032_v37 = vpop.f32.mrf.mxu0  ;;  %8434 = vmatmul.mubr.f32.gmra.mxu0 %v11082_v51  ;;  %8471 = vmatprep.mubr.f32.mxu1 %v12452_v23 }
 0x222   :  { %v11331_v13 = vadd.f32 %v8061_v46, %v8032_v37  ;;  %v2915_v17 = vpop.f32.mrf.mxu1  ;;  %8436 = vmatprep.mubr.f32.mxu0 %v11116_v27 }
 0x223   :  { %v2702_v63 = vpop.f32.mrf.mxu0 }
 0x224   :  { %v11334_v60 = vadd.f32 %v2891_v30, %v2702_v63  ;;  %v8107_v12 = vpop.f32.mrf.mxu1  ;;  %8472 = vmatmul.mubr.f32.gmra.mxu1 %v5124_v25 }
 0x225   :  { %v8035_v42 = vpop.f32.mrf.mxu0  ;;  %8437 = vmatmul.mubr.f32.gmra.mxu0 %v11126_v31  ;;  %8511 = vmatprep.mubr.msk.f32.mxu1 %vm244_vm0, %v12453_v38  ;;  %v12455_v31 = vld [vmem:[#allocation16_spill] sm:$0xff] }
 0x226   :  { %v11341_v51 = vadd.f32 %v8064_v18, %v8035_v42  ;;  %v11343_v3 = vpop.f32.mrf.mxu1  ;;  %8439 = vmatprep.mubr.f32.mxu0 %v11133_v44  ;;  %v12456_v18 = vld [vmem:[#allocation17_spill] sm:$0xff] }
 0x227   :  { %v2722_v27 = vpop.f32.mrf.mxu0 }
 0x228   :  { %v11346_v36 = vadd.f32 %v2903_v14, %v2722_v27  ;;  %v8110_v46 = vpop.f32.mrf.mxu1  ;;  %8512 = vmatmul.mubr.msk.f32.vlgmr.msra.gmra.mxu1 %vm244_vm0, %v12454_v62 }
 0x229   :  { %v8038_v25 = vpop.f32.mrf.mxu0  ;;  %8440 = vmatmul.mubr.f32.gmra.mxu0 %v11183_v56  ;;  %8514 = vmatprep.mubr.msk.f32.mxu1 %vm244_vm0, %v12455_v31  ;;  %v12457_v56 = vld [vmem:[#allocation18_spill] sm:$0xff] }
 0x22a   :  { %v11353_v2 = vadd.f32 %v8067_v0, %v8038_v25  ;;  %v11355_v30 = vpop.f32.mrf.mxu1  ;;  %8442 = vmatprep.mubr.f32.mxu0 %v11173_v39 }
 0x22b   :  { %v2742_v44 = vpop.f32.mrf.mxu0 }
 0x22c   :  { %v11358_v1 = vadd.f32 %v2915_v17, %v2742_v44  ;;  %v8113_v24 = vpop.f32.mrf.mxu1  ;;  %8515 = vmatmul.mubr.msk.f32.gmra.mxu1 %vm244_vm0, %v12456_v18 }
 0x22d   :  { %v8078_v19 = vpop.f32.mrf.mxu0  ;;  %8443 = vmatmul.mubr.f32.gmra.mxu0 %v11213_v15  ;;  %8517 = vmatprep.mubr.msk.f32.mxu1 %vm244_vm0, %v12457_v56  ;;  %v12458_v15 = vld [vmem:[#allocation20_spill] sm:$0xff] }
 0x22e   :  { %v3009_v22 = vadd.f32 %v8078_v19, %v11277_v16  ;;  %v11366_v29 = vpop.f32.mrf.mxu1  ;;  %8482 = vmatprep.mubr.msk.f32.mxu0 %vm244_vm0, %v12453_v38 }
 0x22f   :  { %v3001_v39 = vpop.f32.mrf.mxu0 }
 0x230   :  { %v8116_v47 = vpop.f32.mrf.mxu1  ;;  %8518 = vmatmul.mubr.msk.f32.gmra.mxu1 %vm244_vm0, %v10971_v59  ;;  %v11372_v14 = vadd.f32 %v8107_v12, %v3009_v22 }
 0x231   :  { %v8081_v34 = vpop.f32.mrf.mxu0  ;;  %8483 = vmatmul.mubr.msk.f32.vlgmr.msra.gmra.mxu0 %vm244_vm0, %v12454_v62  ;;  %8520 = vmatprep.mubr.msk.f32.mxu1 %vm244_vm0, %v12458_v15 }
 0x232   :  { %v3023_v16 = vadd.f32 %v8081_v34, %v11289_v45  ;;  %v3217_v0 = vpop.f32.mrf.mxu1  ;;  %8485 = vmatprep.mubr.msk.f32.mxu0 %vm244_vm0, %v12455_v31 }
 0x233   :  { %v3015_v28 = vpop.f32.mrf.mxu0 }
 0x234   :  { %v8119_v37 = vpop.f32.mrf.mxu1  ;;  %8521 = vmatmul.mubr.msk.f32.gmra.mxu1 %vm244_vm0, %v11013_v53  ;;  %v11383_v23 = vadd.f32 %v8110_v46, %v3023_v16 }
 0x235   :  { %v8084_v17 = vpop.f32.mrf.mxu0  ;;  %8486 = vmatmul.mubr.msk.f32.gmra.mxu0 %vm244_vm0, %v12456_v18  ;;  %8523 = vmatprep.mubr.msk.f32.mxu1 %vm244_vm0, %v11040_v49 }
 0x236   :  { %v3037_v45 = vadd.f32 %v8084_v17, %v11303_v54  ;;  %v3233_v63 = vpop.f32.mrf.mxu1  ;;  %8488 = vmatprep.mubr.msk.f32.mxu0 %vm244_vm0, %v12457_v56 }
 0x237   :  { %v3029_v12 = vpop.f32.mrf.mxu0 }
 0x238   :  { %v8122_v42 = vpop.f32.mrf.mxu1  ;;  %8524 = vmatmul.mubr.msk.f32.gmra.mxu1 %vm244_vm0, %v11065_v10  ;;  %v11394_v38 = vadd.f32 %v8113_v24, %v3037_v45 }
 0x239   :  { %v8087_v27 = vpop.f32.mrf.mxu0  ;;  %8489 = vmatmul.mubr.msk.f32.gmra.mxu0 %vm244_vm0, %v10971_v59  ;;  %8526 = vmatprep.mubr.msk.f32.mxu1 %vm244_vm0, %v11051_v50 }
 0x23a   :  { %v3051_v54 = vadd.f32 %v8087_v27, %v11317_v8  ;;  %v3249_v46 = vpop.f32.mrf.mxu1  ;;  %8491 = vmatprep.mubr.msk.f32.mxu0 %vm244_vm0, %v12458_v15 }
 0x23b   :  { %v3043_v62 = vpop.f32.mrf.mxu0 }
 0x23c   :  { %v3044_v25 = vadd.f32 %v3043_v62, %v11323_v35  ;;  %v8125_v31 = vpop.f32.mrf.mxu1  ;;  %8527 = vmatmul.mubr.msk.f32.gmra.mxu1 %vm244_vm0, %v11131_v61  ;;  %v11406_v44 = vadd.f32 %v8116_v47, %v3051_v54 }
 0x23d   :  { %v8090_v24 = vpop.f32.mrf.mxu0  ;;  %8492 = vmatmul.mubr.msk.f32.gmra.mxu0 %vm244_vm0, %v11013_v53  ;;  %8529 = vmatprep.mubr.msk.f32.mxu1 %vm244_vm0, %v11106_v52 }
 0x23e   :  { %v3065_v59 = vadd.f32 %v8090_v24, %v11331_v13  ;;  %v3265_v8 = vpop.f32.mrf.mxu1  ;;  %8494 = vmatprep.mubr.msk.f32.mxu0 %vm244_vm0, %v11040_v49  ;;  %v11415_v35 = vadd.f32 %v3217_v0, %v3044_v25 }
 0x23f   :  { %v3057_v18 = vpop.f32.mrf.mxu0 }
 0x240   :  { %v3058_v19 = vadd.f32 %v3057_v18, %v11334_v60  ;;  %v8165_v56 = vpop.f32.mrf.mxu1  ;;  %8530 = vmatmul.mubr.msk.f32.gmra.mxu1 %vm244_vm0, %v11171_v33  ;;  %v11420_v22 = vadd.f32 %v8119_v37, %v3065_v59 }
 0x241   :  { %v8093_v53 = vpop.f32.mrf.mxu0  ;;  %8495 = vmatmul.mubr.msk.f32.gmra.mxu0 %vm244_vm0, %v11065_v10  ;;  %v3002_v10 = vadd.f32 %v3001_v39, %v11282_v7 }
 0x242   :  { %v3079_v13 = vadd.f32 %v8093_v53, %v11341_v51  ;;  %v3509_v47 = vpop.f32.mrf.mxu1  ;;  %8497 = vmatprep.mubr.msk.f32.mxu0 %vm244_vm0, %v11051_v50  ;;  %v11427_v49 = vadd.f32 %v3233_v63, %v3058_v19 }
 0x243   :  { %v3071_v34 = vpop.f32.mrf.mxu0 }
 0x244   :  { %v3072_v60 = vadd.f32 %v3071_v34, %v11346_v36  ;;  %v8168_v15 = vpop.f32.mrf.mxu1  ;;  %v11430_v16 = vadd.f32 %v8122_v42, %v3079_v13  ;;  %v3016_v42 = vadd.f32 %v3015_v28, %v11295_v43  ;;  %v3030_v43 = vadd.f32 %v3029_v12, %v11309_v9  ;;  %v12459_v28 = vld [vmem:[#allocation19_spill] sm:$0xff] }
 0x245   :  { %v8096_v0 = vpop.f32.mrf.mxu0  ;;  %8498 = vmatmul.mubr.msk.f32.gmra.mxu0 %vm244_vm0, %v11131_v61 }
 0x246   :  { %v3093_v51 = vadd.f32 %v8096_v0, %v11353_v2  ;;  %v3521_v37 = vpop.f32.mrf.mxu1  ;;  %8500 = vmatprep.mubr.msk.f32.mxu0 %vm244_vm0, %v11106_v52  ;;  %v11438_v50 = vadd.f32 %v3249_v46, %v3072_v60  ;;  %v3170_v2 = vadd.f32 %v11343_v3, %v3002_v10  ;;  %v3186_v25 = vadd.f32 %v11355_v30, %v3016_v42 }
 0x247   :  { %v3085_v17 = vpop.f32.mrf.mxu0  ;;  %v3202_v13 = vadd.f32 %v11366_v29, %v3030_v43 }
 0x248   :  { %v3086_v36 = vadd.f32 %v3085_v17, %v11358_v1  ;;  %v8171_v45 = vpop.f32.mrf.mxu1  ;;  %v11441_v63 = vadd.f32 %v8125_v31, %v3093_v51 }
 0x249   :  { %v8136_v27 = vpop.f32.mrf.mxu0  ;;  %8501 = vmatmul.mubr.msk.f32.gmra.mxu0 %vm244_vm0, %v11171_v33  ;;  %vm8840_vm0 = vmmov 0  }
 0x24a   :  { %v3363_v61 = vadd.f32 %v8136_v27, %v11372_v14  ;;  %v3533_v7 = vpop.f32.mrf.mxu1  ;;  %v11448_v52 = vadd.f32 %v3265_v8, %v3086_v36  ;;  %8599 = vmatprep.mubr.msk.f32.mxu1 %vm8840_vm0, %v12423_v41  ;;  %8564 = vmatprep.mubr.msk.f32.mxu0 %vm8840_vm0, %v12423_v41 }
 0x24b   :  { %v3356_v39 = vpop.f32.mrf.mxu0 }
 0x24c   :  { %v3516_v54 = vadd.f32 %v8165_v56, %v3363_v61  ;;  %v3357_v46 = vadd.f32 %v3356_v39, %v3170_v2  ;;  %v8174_v1 = vpop.f32.mrf.mxu1 }
 0x24d   :  { %v8139_v62 = vpop.f32.mrf.mxu0 }
 0x24e   :  { %v11453_v31 = vadd.f32 %v3516_v54, %v12459_v28  ;;  %v3510_v33 = vadd.f32 %v3509_v47, %v3357_v46  ;;  %v3375_v14 = vadd.f32 %v8139_v62, %v11383_v23  ;;  %v3545_v24 = vpop.f32.mrf.mxu1 }
 0x24f   :  { %v3368_v59 = vpop.f32.mrf.mxu0 }
 0x250   :  { %v11457_v3 = vadd.f32 %v3510_v33, %v11144_v26  ;;  %v3528_v8 = vadd.f32 %v8168_v15, %v3375_v14  ;;  %v3369_v18 = vadd.f32 %v3368_v59, %v3186_v25  ;;  %v8177_v19 = vpop.f32.mrf.mxu1 }
 0x251   :  { %v8142_v56 = vpop.f32.mrf.mxu0 }
 0x252   :  { %v11460_v53 = vadd.f32 %v3528_v8, %v11159_v58  ;;  %v3522_v30 = vadd.f32 %v3521_v37, %v3369_v18  ;;  %v3387_v9 = vadd.f32 %v8142_v56, %v11394_v38  ;;  %v3557_v12 = vpop.f32.mrf.mxu1 }
 0x253   :  { %v3380_v47 = vpop.f32.mrf.mxu0 }
 0x254   :  { %v11465_v23 = vadd.f32 %v3522_v30, %v11178_v6  ;;  %v3540_v34 = vadd.f32 %v8171_v45, %v3387_v9  ;;  %v3381_v26 = vadd.f32 %v3380_v47, %v3202_v13  ;;  %v8180_v60 = vpop.f32.mrf.mxu1 }
 0x255   :  { %v8145_v15 = vpop.f32.mrf.mxu0 }
 0x256   :  { %v11468_v0 = vadd.f32 %v3540_v34, %v11194_v40  ;;  %v3534_v10 = vadd.f32 %v3533_v7, %v3381_v26  ;;  %v3399_v58 = vadd.f32 %v8145_v15, %v11406_v44  ;;  %v3569_v51 = vpop.f32.mrf.mxu1 }
 0x257   :  { %v3392_v37 = vpop.f32.mrf.mxu0 }
 0x258   :  { %v11472_v38 = vadd.f32 %v3534_v10, %v11206_v55  ;;  %v3552_v29 = vadd.f32 %v8174_v1, %v3399_v58  ;;  %v3393_v17 = vadd.f32 %v3392_v37, %v11415_v35  ;;  %v8183_v6 = vpop.f32.mrf.mxu1 }
 0x259   :  { %v8148_v36 = vpop.f32.mrf.mxu0 }
 0x25a   :  { %v11476_v45 = vadd.f32 %v3552_v29, %v11222_v4  ;;  %v3546_v42 = vadd.f32 %v3545_v24, %v3393_v17  ;;  %v3411_v40 = vadd.f32 %v8148_v36, %v11420_v22  ;;  %v3581_v27 = vpop.f32.mrf.mxu1  ;;  %v6072_v36 = vld [vmem:[#allocation5 + $0x78] sm:$0xff] }
 0x25b   :  { %v3404_v61 = vpop.f32.mrf.mxu0 }
 0x25c   :  { %v11480_v44 = vadd.f32 %v3546_v42, %v11232_v11  ;;  %v3564_v7 = vadd.f32 %v8177_v19, %v3411_v40  ;;  %v3405_v55 = vadd.f32 %v3404_v61, %v11427_v49  ;;  %v8223_v2 = vpop.f32.mrf.mxu1  ;;  %v11521_v40 = vand.u32 4294901760, %v6072_v36 }
 0x25d   :  { %v8151_v39 = vpop.f32.mrf.mxu0 }
 0x25e   :  { %v11484_v35 = vadd.f32 %v3564_v7, %v11240_v20  ;;  %v3558_v54 = vadd.f32 %v3557_v12, %v3405_v55  ;;  %v3423_v4 = vadd.f32 %v8151_v39, %v11430_v16  ;;  %v4031_v46 = vpop.f32.mrf.mxu1  ;;  %12460 = vst [vmem:[#allocation11_spill] sm:$0xff] %v11521_v40  ;;  %v6071_v7 = vld [vmem:[#allocation5 + $0x70] sm:$0xff]  ;;  %8533 = vmatpush3.msra.mxu0 %v11521_v40 }
 0x25f   :  { %v3416_v1 = vpop.f32.mrf.mxu0  ;;  %v11528_v39 = vand.u32 4294901760, %v6071_v7  ;;  %8534 = vmatprep.subr.mxu0 %v12423_v41 }
 0x260   :  { %v11488_v22 = vadd.f32 %v3558_v54, %v11250_v5  ;;  %v3576_v62 = vadd.f32 %v8180_v60, %v3423_v4  ;;  %v3417_v11 = vadd.f32 %v3416_v1, %v11438_v50  ;;  %v8226_v25 = vpop.f32.mrf.mxu1 }
 0x261   :  { %v8154_v43 = vpop.f32.mrf.mxu0  ;;  %12462 = vst [vmem:[#allocation13_spill] sm:$0xff] %v11528_v39  ;;  %8535 = vmatpush3.msra.mxu0 %v11528_v39 }
 0x262   :  { %v11492_v49 = vadd.f32 %v3576_v62, %v11256_v57  ;;  %v3570_v28 = vadd.f32 %v3569_v51, %v3417_v11  ;;  %v3435_v20 = vadd.f32 %v8154_v43, %v11441_v63  ;;  %v4043_v33 = vpop.f32.mrf.mxu1  ;;  %v11538_v11 = vsub.f32 %v6071_v7, %v11528_v39  ;;  %8536 = vmatprep.subr.mxu0 %v12423_v41 }
 0x263   :  { %v3428_v14 = vpop.f32.mrf.mxu0 }
 0x264   :  { %v11496_v16 = vadd.f32 %v3570_v28, %v11263_v21  ;;  %v3588_v24 = vadd.f32 %v8183_v6, %v3435_v20  ;;  %v3429_v5 = vadd.f32 %v3428_v14, %v11448_v52  ;;  %v8229_v59 = vpop.f32.mrf.mxu1  ;;  %12463 = vst [vmem:[#allocation14_spill] sm:$0xff] %v11538_v11  ;;  %v6069_v20 = vld [vmem:[#allocation5 + $0x60] sm:$0xff] }
 0x265   :  { %v8194_v8 = vpop.f32.mrf.mxu0 }
 0x266   :  { %v11500_v50 = vadd.f32 %v3588_v24, %v11268_v32  ;;  %v3582_v18 = vadd.f32 %v3581_v27, %v3429_v5  ;;  %v11502_v19 = vadd.f32 %v8223_v2, %v8194_v8  ;;  %v4055_v57 = vpop.f32.mrf.mxu1  ;;  %v11526_v2 = vsub.f32 %v6072_v36, %v11521_v40 }
 0x267   :  { %v3810_v56 = vpop.f32.mrf.mxu0  ;;  %v12293_v24 = vand.u32 4294901760, %v11538_v11 }
 0x268   :  { %v11505_v63 = vadd.f32 %v3582_v18, %v11275_v48  ;;  %v11507_v30 = vadd.f32 %v4031_v46, %v3810_v56  ;;  %v8232_v21 = vpop.f32.mrf.mxu1  ;;  %12461 = vst [vmem:[#allocation12_spill] sm:$0xff] %v11526_v2  ;;  %v6070_v46 = vld [vmem:[#allocation5 + $0x68] sm:$0xff]  ;;  %v12295_v62 = vand.u32 4294901760, %v11526_v2 }
 0x269   :  { %v8197_v9 = vpop.f32.mrf.mxu0 }
 0x26a   :  { %v11509_v12 = vadd.f32 %v8226_v25, %v8197_v9  ;;  %v4067_v52 = vpop.f32.mrf.mxu1  ;;  %v11540_v25 = vand.u32 4294901760, %v6070_v46  ;;  %v6175_v14 = vsub.f32 %v11526_v2, %v12295_v62  ;;  %v6182_v9 = vsub.f32 %v11538_v11, %v12293_v24 }
 0x26b   :  { %v3830_v13 = vpop.f32.mrf.mxu0 }
 0x26c   :  { %v11511_v47 = vadd.f32 %v4043_v33, %v3830_v13  ;;  %v8235_v32 = vpop.f32.mrf.mxu1  ;;  %12464 = vst [vmem:[#allocation15_spill] sm:$0xff] %v11540_v25  ;;  %v11553_v5 = vsub.f32 %v6070_v46, %v11540_v25  ;;  %8537 = vmatpush3.msra.mxu0 %v11540_v25 }
 0x26d   :  { %v8200_v34 = vpop.f32.mrf.mxu0  ;;  %8538 = vmatprep.subr.mxu0 %v12423_v41 }
 0x26e   :  { %v11513_v26 = vadd.f32 %v8229_v59, %v8200_v34  ;;  %v4079_v60 = vpop.f32.mrf.mxu1  ;;  %12465 = vst [vmem:[#allocation16_spill] sm:$0xff] %v11553_v5  ;;  %v11555_v59 = vand.u32 4294901760, %v6069_v20 }
 0x26f   :  { %v3850_v15 = vpop.f32.mrf.mxu0 }
 0x270   :  { %v11515_v10 = vadd.f32 %v4055_v57, %v3850_v15  ;;  %v8238_v48 = vpop.f32.mrf.mxu1  ;;  %12466 = vst [vmem:[#allocation17_spill] sm:$0xff] %v11555_v59  ;;  %v6068_v57 = vld [vmem:[#allocation5 + $0x58] sm:$0xff]  ;;  %v11568_v13 = vsub.f32 %v6069_v20, %v11555_v59  ;;  %8539 = vmatpush3.msra.mxu0 %v11555_v59  ;;  %v6067_v15 = vld [vmem:[#allocation5 + $0x50] sm:$0xff] }
 0x271   :  { %v8203_v58 = vpop.f32.mrf.mxu0  ;;  %8540 = vmatprep.subr.mxu0 %v12423_v41  ;;  %v11582_v36 = vand.u32 4294901760, %v6067_v15 }
 0x272   :  { %v11517_v51 = vadd.f32 %v8232_v21, %v8203_v58  ;;  %v4091_v37 = vpop.f32.mrf.mxu1  ;;  %v6176_v21 = vand.u32 4294901760, %v6175_v14  ;;  %12467 = vst [vmem:[#allocation18_spill] sm:$0xff] %v11568_v13  ;;  %v6183_v58 = vand.u32 4294901760, %v6182_v9 }
 0x273   :  { %v3870_v29 = vpop.f32.mrf.mxu0  ;;  %12469 = vst [vmem:[#allocation19_spill] sm:$0xff] %v11582_v36 }
 0x274   :  { %v11519_v17 = vadd.f32 %v4067_v52, %v3870_v29  ;;  %v8241_v6 = vpop.f32.mrf.mxu1  ;;  %v12292_v52 = vand.u32 4294901760, %v11553_v5  ;;  %8568 = vmatpush3.msra.mxu1 %v6176_v21  ;;  %v12290_v29 = vand.u32 4294901760, %v11568_v13  ;;  %v6065_v21 = vld [vmem:[#allocation5 + $0x40] sm:$0xff] }
 0x275   :  { %v8206_v42 = vpop.f32.mrf.mxu0  ;;  %8569 = vmatprep.subr.mxu1 %v12423_v41 }
 0x276   :  { %v11523_v27 = vadd.f32 %v8235_v32, %v8206_v42  ;;  %v4103_v61 = vpop.f32.mrf.mxu1  ;;  %8570 = vmatpush3.msra.mxu1 %v6183_v58  ;;  %v6196_v20 = vsub.f32 %v11568_v13, %v12290_v29 }
 0x277   :  { %v3890_v55 = vpop.f32.mrf.mxu0  ;;  %8571 = vmatprep.subr.mxu1 %v12423_v41 }
 0x278   :  { %v11531_v54 = vadd.f32 %v4079_v60, %v3890_v55  ;;  %v11533_v4 = vpop.f32.mrf.mxu1  ;;  %v11575_v60 = vand.u32 4294901760, %v6068_v57  ;;  %v6066_v55 = vld [vmem:[#allocation5 + $0x48] sm:$0xff] }
 0x279   :  { %v8209_v1 = vpop.f32.mrf.mxu0 }
 0x27a   :  { %v11543_v43 = vadd.f32 %v8238_v48, %v8209_v1  ;;  %v11545_v28 = vpop.f32.mrf.mxu1  ;;  %12468 = vst [vmem:[#allocation20_spill] sm:$0xff] %v11575_v60  ;;  %v11590_v7 = vsub.f32 %v6068_v57, %v11575_v60  ;;  %8541 = vmatpush3.msra.mxu0 %v11575_v60 }
 0x27b   :  { %v3910_v33 = vpop.f32.mrf.mxu0  ;;  %8542 = vmatprep.subr.mxu0 %v12423_v41 }
 0x27c   :  { %v11558_v8 = vadd.f32 %v4091_v37, %v3910_v33  ;;  %v11560_v18 = vpop.f32.mrf.mxu1  ;;  %v6189_v37 = vsub.f32 %v11553_v5, %v12292_v52  ;;  %12470 = vst [vmem:[#allocation21_spill] sm:$0xff] %v11590_v7  ;;  %v11599_v33 = vand.u32 4294901760, %v6066_v55  ;;  %8543 = vmatpush3.msra.mxu0 %v11582_v36 }
 0x27d   :  { %v8212_v56 = vpop.f32.mrf.mxu0  ;;  %8544 = vmatprep.subr.mxu0 %v12423_v41 }
 0x27e   :  { %v11571_v32 = vadd.f32 %v8241_v6, %v8212_v56  ;;  %v11573_v34 = vpop.f32.mrf.mxu1  ;;  %v6190_v1 = vand.u32 4294901760, %v6189_v37  ;;  %12472 = vst [vmem:[#allocation23_spill] sm:$0xff] %v11599_v33  ;;  %v12291_v56 = vand.u32 4294901760, %v11590_v7  ;;  %v11610_v58 = vsub.f32 %v6066_v55, %v11599_v33  ;;  %8545 = vmatpush3.msra.mxu0 %v11599_v33 }
 0x27f   :  { %v3930_v48 = vpop.f32.mrf.mxu0  ;;  %v11612_v37 = vand.u32 4294901760, %v6065_v21  ;;  %8546 = vmatprep.subr.mxu0 %v12423_v41 }
 0x280   :  { %v11584_v6 = vadd.f32 %v4103_v61, %v3930_v48  ;;  %v11586_v42 = vpop.f32.mrf.mxu1  ;;  %v11597_v61 = vsub.f32 %v6067_v15, %v11582_v36  ;;  %8572 = vmatpush3.msra.mxu1 %v6190_v1  ;;  %v6197_v48 = vand.u32 4294901760, %v6196_v20  ;;  %12473 = vst [vmem:[#allocation24_spill] sm:$0xff] %v11610_v58  ;;  %v6203_v1 = vsub.f32 %v11590_v7, %v12291_v56  ;;  %v6064_v20 = vld [vmem:[#allocation5 + $0x38] sm:$0xff] }
 0x281   :  { %v8252_v46 = vpop.f32.mrf.mxu0  ;;  %12474 = vst [vmem:[#allocation25_spill] sm:$0xff] %v11612_v37  ;;  %8573 = vmatprep.subr.mxu1 %v12423_v41  ;;  %8547 = vmatpush3.msra.mxu0 %v11612_v37 }
 0x282   :  { %12471 = vst [vmem:[#allocation22_spill] sm:$0xff] %v11597_v61  ;;  %v4197_v14 = vadd.f32 %v8252_v46, %v11502_v19  ;;  %v11603_v57 = vpop.f32.mrf.mxu1  ;;  %v12294_v15 = vand.u32 4294901760, %v11597_v61  ;;  %8574 = vmatpush3.msra.mxu1 %v6197_v48  ;;  %v6204_v48 = vand.u32 4294901760, %v6203_v1  ;;  %8548 = vmatprep.subr.mxu0 %v12423_v41 }
 0x283   :  { %v4189_v9 = vpop.f32.mrf.mxu0  ;;  %8575 = vmatprep.subr.mxu1 %v12423_v41 }
 0x284   :  { %v4190_v19 = vadd.f32 %v4189_v9, %v11507_v30  ;;  %v11616_v46 = vpop.f32.mrf.mxu1  ;;  %v11619_v29 = vadd.f32 %v11533_v4, %v4197_v14  ;;  %v6210_v30 = vsub.f32 %v11597_v61, %v12294_v15  ;;  %v12300_v9 = vand.u32 4294901760, %v11610_v58  ;;  %v6063_v15 = vld [vmem:[#allocation5 + $0x30] sm:$0xff]  ;;  %8576 = vmatpush3.msra.mxu1 %v6204_v48 }
 0x285   :  { %v8255_v55 = vpop.f32.mrf.mxu0  ;;  %v11631_v4 = vsub.f32 %v6065_v21, %v11612_v37  ;;  %v11633_v14 = vand.u32 4294901760, %v6064_v20  ;;  %8577 = vmatprep.subr.mxu1 %v12423_v41 }
 0x286   :  { %v4211_v56 = vadd.f32 %v8255_v55, %v11509_v12  ;;  %v11637_v52 = vpop.f32.mrf.mxu1  ;;  %v11640_v24 = vadd.f32 %v11545_v28, %v4190_v19  ;;  %v6211_v21 = vand.u32 4294901760, %v6210_v30  ;;  %v6217_v61 = vsub.f32 %v11610_v58, %v12300_v9  ;;  %v6062_v30 = vld [vmem:[#allocation5 + $0x28] sm:$0xff] }
 0x287   :  { %12475 = vst [vmem:[#allocation26_spill] sm:$0xff] %v11631_v4  ;;  %12476 = vst [vmem:[#allocation27_spill] sm:$0xff] %v11633_v14  ;;  %v4203_v62 = vpop.f32.mrf.mxu0  ;;  %v12305_v7 = vand.u32 4294901760, %v11631_v4  ;;  %v11649_v12 = vsub.f32 %v6064_v20, %v11633_v14  ;;  %v11658_v55 = vand.u32 4294901760, %v6063_v15  ;;  %8549 = vmatpush3.msra.mxu0 %v11633_v14  ;;  %v6061_v14 = vld [vmem:[#allocation5 + $0x20] sm:$0xff] }
 0x288   :  { %v4204_v28 = vadd.f32 %v4203_v62, %v11511_v47  ;;  %v11653_v19 = vpop.f32.mrf.mxu1  ;;  %v11656_v1 = vadd.f32 %v11560_v18, %v4211_v56  ;;  %v6218_v20 = vand.u32 4294901760, %v6217_v61  ;;  %v11666_v62 = vand.u32 4294901760, %v6062_v30  ;;  %8550 = vmatprep.subr.mxu0 %v12423_v41  ;;  %8578 = vmatpush3.msra.mxu1 %v6211_v21 }
 0x289   :  { %12477 = vst [vmem:[#allocation28_spill] sm:$0xff] %v11649_v12  ;;  %12478 = vst [vmem:[#allocation29_spill] sm:$0xff] %v11658_v55  ;;  %v8258_v9 = vpop.f32.mrf.mxu0  ;;  %v6224_v58 = vsub.f32 %v11631_v4, %v12305_v7  ;;  %v11676_v61 = vsub.f32 %v6063_v15, %v11658_v55  ;;  %8551 = vmatpush3.msra.mxu0 %v11658_v55  ;;  %8579 = vmatprep.subr.mxu1 %v12423_v41  ;;  %v12481_v4 = vand.u32 4294901760, %v11649_v12  ;;  %v6060_v55 = vld [vmem:[#allocation5 + $0x18] sm:$0xff] }
 0x28a   :  { %12479 = vst [vmem:[#allocation30_spill] sm:$0xff] %v11666_v62  ;;  %v4225_v18 = vadd.f32 %v8258_v9, %v11513_v26  ;;  %v11670_v56 = vpop.f32.mrf.mxu1  ;;  %v11673_v48 = vadd.f32 %v11573_v34, %v4204_v28  ;;  %v11684_v9 = vsub.f32 %v6062_v30, %v11666_v62  ;;  %v11686_v34 = vand.u32 4294901760, %v6061_v14  ;;  %8552 = vmatprep.subr.mxu0 %v12423_v41 }
 0x28b   :  { %12480 = vst [vmem:[#allocation31_spill] sm:$0xff] %v11676_v61  ;;  %v4217_v7 = vpop.f32.mrf.mxu0  ;;  %v6225_v47 = vand.u32 4294901760, %v6224_v58  ;;  %v6231_v26 = vsub.f32 %v11649_v12, %v12481_v4  ;;  %8580 = vmatpush3.msra.mxu1 %v6218_v20  ;;  %v12314_v58 = vand.u32 4294901760, %v11676_v61  ;;  %8553 = vmatpush3.msra.mxu0 %v11666_v62  ;;  %v6058_v62 = vld [vmem:[#allocation5 + $0x8] sm:$0xff] }
 0x28c   :  { %12482 = vst [vmem:[#allocation32_spill] sm:$0xff] %v11684_v9  ;;  %12483 = vst [vmem:[#allocation33_spill] sm:$0xff] %v11686_v34  ;;  %v4218_v15 = vadd.f32 %v4217_v7, %v11515_v10  ;;  %v11690_v21 = vpop.f32.mrf.mxu1  ;;  %v11693_v28 = vadd.f32 %v11586_v42, %v4225_v18  ;;  %8581 = vmatprep.subr.mxu1 %v12423_v41  ;;  %v12321_v12 = vand.u32 4294901760, %v11684_v9  ;;  %v11702_v10 = vand.u32 4294901760, %v6060_v55 }
 0x28d   :  { %v8261_v4 = vpop.f32.mrf.mxu0  ;;  %v6232_v30 = vand.u32 4294901760, %v6231_v26  ;;  %v11700_v37 = vsub.f32 %v6061_v14, %v11686_v34  ;;  %8554 = vmatprep.subr.mxu0 %v12423_v41  ;;  %8582 = vmatpush3.msra.mxu1 %v6225_v47  ;;  %v6238_v18 = vsub.f32 %v11676_v61, %v12314_v58  ;;  %v6059_v26 = vld [vmem:[#allocation5 + $0x10] sm:$0xff] }
 0x28e   :  { %12485 = vst [vmem:[#allocation35_spill] sm:$0xff] %v11702_v10  ;;  %v4239_v42 = vadd.f32 %v8261_v4, %v11517_v51  ;;  %v11706_v7 = vpop.f32.mrf.mxu1  ;;  %v11709_v20 = vadd.f32 %v11603_v57, %v4218_v15  ;;  %8555 = vmatpush3.msra.mxu0 %v11686_v34  ;;  %8583 = vmatprep.subr.mxu1 %v12423_v41  ;;  %v11723_v47 = vand.u32 4294901760, %v6059_v26 }
 0x28f   :  { %12484 = vst [vmem:[#allocation34_spill] sm:$0xff] %v11700_v37  ;;  %v4231_v14 = vpop.f32.mrf.mxu0  ;;  %v6245_v51 = vsub.f32 %v11684_v9, %v12321_v12  ;;  %v12324_v4 = vand.u32 4294901760, %v11700_v37  ;;  %v11721_v57 = vsub.f32 %v6060_v55, %v11702_v10  ;;  %8556 = vmatprep.subr.mxu0 %v12423_v41  ;;  %8584 = vmatpush3.msra.mxu1 %v6232_v30  ;;  %v6239_v34 = vand.u32 4294901760, %v6238_v18 }
 0x290   :  { %12487 = vst [vmem:[#allocation37_spill] sm:$0xff] %v11723_v47  ;;  %v4232_v15 = vadd.f32 %v4231_v14, %v11519_v17  ;;  %v11727_v58 = vpop.f32.mrf.mxu1  ;;  %v11730_v61 = vadd.f32 %v11616_v46, %v4239_v42  ;;  %8557 = vmatpush3.msra.mxu0 %v11702_v10  ;;  %8585 = vmatprep.subr.mxu1 %v12423_v41  ;;  %v11746_v18 = vand.u32 4294901760, %v6058_v62 }
 0x291   :  { %12486 = vst [vmem:[#allocation36_spill] sm:$0xff] %v11721_v57  ;;  %v8264_v12 = vpop.f32.mrf.mxu0  ;;  %v6246_v55 = vand.u32 4294901760, %v6245_v51  ;;  %v6252_v9 = vsub.f32 %v11700_v37, %v12324_v4  ;;  %v11739_v14 = vsub.f32 %v6059_v26, %v11723_v47  ;;  %8558 = vmatprep.subr.mxu0 %v12423_v41  ;;  %8586 = vmatpush3.msra.mxu1 %v6239_v34  ;;  %v6057_v51 = vld [vmem:[#allocation5] sm:$0xff]  ;;  %v12490_v26 = vand.u32 4294901760, %v11721_v57 }
 0x292   :  { %v4253_v46 = vadd.f32 %v8264_v12, %v11523_v27  ;;  %v4453_v30 = vpop.f32.mrf.mxu1  ;;  %v11744_v42 = vadd.f32 %v11637_v52, %v4232_v15  ;;  %12489 = vst [vmem:[#allocation39_spill] sm:$0xff] %v11746_v18  ;;  %8559 = vmatpush3.msra.mxu0 %v11723_v47  ;;  %8587 = vmatprep.subr.mxu1 %v12423_v41  ;;  %v11754_v12 = vand.u32 4294901760, %v6057_v51 }
 0x293   :  { %12488 = vst [vmem:[#allocation38_spill] sm:$0xff] %v11739_v14  ;;  %v4245_v4 = vpop.f32.mrf.mxu0  ;;  %v6253_v17 = vand.u32 4294901760, %v6252_v9  ;;  %v6259_v37 = vsub.f32 %v11721_v57, %v12490_v26  ;;  %v12331_v27 = vand.u32 4294901760, %v11739_v14  ;;  %8560 = vmatprep.subr.mxu0 %v12423_v41  ;;  %8588 = vmatpush3.msra.mxu1 %v6246_v55  ;;  %v11762_v47 = vsub.f32 %v6058_v62, %v11746_v18 }
 0x294   :  { %12491 = vst [vmem:[#allocation40_spill] sm:$0xff] %v11754_v12  ;;  %v4246_v52 = vadd.f32 %v4245_v4, %v11531_v54  ;;  %v8339_v34 = vpop.f32.mrf.mxu1  ;;  %v11759_v15 = vadd.f32 %v11653_v19, %v4253_v46  ;;  %8561 = vmatpush3.msra.mxu0 %v11746_v18  ;;  %8589 = vmatprep.subr.mxu1 %v12423_v41 }
 0x295   :  { %12492 = vst [vmem:[#allocation41_spill] sm:$0xff] %v11762_v47  ;;  %v8267_v9 = vpop.f32.mrf.mxu0  ;;  %v6260_v26 = vand.u32 4294901760, %v6259_v37  ;;  %v6266_v57 = vsub.f32 %v11739_v14, %v12331_v27  ;;  %v11770_v54 = vsub.f32 %v6057_v51, %v11754_v12  ;;  %8562 = vmatprep.subr.mxu0 %v12423_v41  ;;  %8590 = vmatpush3.msra.mxu1 %v6253_v17  ;;  %v12334_v55 = vand.u32 4294901760, %v11762_v47 }
 0x296   :  { %v4267_v19 = vadd.f32 %v8267_v9, %v11543_v43  ;;  %v4697_v4 = vpop.f32.mrf.mxu1  ;;  %v11775_v62 = vadd.f32 %v11670_v56, %v4246_v52  ;;  %8563 = vmatpush3.msra.mxu0 %v11754_v12  ;;  %8591 = vmatprep.subr.mxu1 %v12423_v41 }
 0x297   :  { %12493 = vst [vmem:[#allocation42_spill] sm:$0xff] %v11770_v54  ;;  %v4259_v37 = vpop.f32.mrf.mxu0  ;;  %v6267_v46 = vand.u32 4294901760, %v6266_v57  ;;  %v12337_v51 = vand.u32 4294901760, %v11770_v54  ;;  %8602 = vmatprep.subr.mxu0 %v12423_v41  ;;  %8592 = vmatpush3.msra.mxu1 %v6260_v26  ;;  %v6273_v56 = vsub.f32 %v11762_v47, %v12334_v55 }
 0x298   :  { %v4260_v27 = vadd.f32 %v4259_v37, %v11558_v8  ;;  %v8342_v43 = vpop.f32.mrf.mxu1  ;;  %v11784_v9 = vadd.f32 %v11690_v21, %v4267_v19  ;;  %8593 = vmatprep.subr.mxu1 %v12423_v41 }
 0x299   :  { %v8270_v17 = vpop.f32.mrf.mxu0  ;;  %v6280_v57 = vsub.f32 %v11770_v54, %v12337_v51  ;;  %8594 = vmatpush3.msra.mxu1 %v6267_v46  ;;  %v6274_v21 = vand.u32 4294901760, %v6273_v56 }
 0x29a   :  { %v4281_v52 = vadd.f32 %v8270_v17, %v11571_v32  ;;  %v4709_v14 = vpop.f32.mrf.mxu1  ;;  %v11795_v8 = vadd.f32 %v11706_v7, %v4260_v27  ;;  %8595 = vmatprep.subr.mxu1 %v12423_v41 }
 0x29b   :  { %v4273_v26 = vpop.f32.mrf.mxu0  ;;  %v6281_v19 = vand.u32 4294901760, %v6280_v57  ;;  %8596 = vmatpush3.msra.mxu1 %v6274_v21 }
 0x29c   :  { %v4274_v37 = vadd.f32 %v4273_v26, %v11584_v6  ;;  %v8345_v55 = vpop.f32.mrf.mxu1  ;;  %v11800_v47 = vadd.f32 %v11727_v58, %v4281_v52  ;;  %8597 = vmatprep.subr.mxu1 %v12423_v41 }
 0x29d   :  { %v8310_v51 = vpop.f32.mrf.mxu0  ;;  %8598 = vmatpush3.msra.mxu1 %v6281_v19 }
 0x29e   :  { %v4551_v32 = vadd.f32 %v8310_v51, %v11619_v29  ;;  %v4721_v7 = vpop.f32.mrf.mxu1  ;;  %v11804_v27 = vadd.f32 %v4453_v30, %v4274_v37  ;;  %8637 = vmatprep.subr.mxu1 %v12423_v41 }
 0x29f   :  { %v4544_v46 = vpop.f32.mrf.mxu0 }
 0x2a0   :  { %v4704_v6 = vadd.f32 %v8339_v34, %v4551_v32  ;;  %v4545_v58 = vadd.f32 %v4544_v46, %v11640_v24  ;;  %v8348_v56 = vpop.f32.mrf.mxu1 }
 0x2a1   :  { %v8313_v17 = vpop.f32.mrf.mxu0 }
 0x2a2   :  { %v11813_v29 = vadd.f32 %v4704_v6, %v11453_v31  ;;  %v4698_v30 = vadd.f32 %v4697_v4, %v4545_v58  ;;  %v4563_v51 = vadd.f32 %v8313_v17, %v11656_v1  ;;  %v4733_v57 = vpop.f32.mrf.mxu1 }
 0x2a3   :  { %v4556_v52 = vpop.f32.mrf.mxu0 }
 0x2a4   :  { %v11817_v21 = vadd.f32 %v4698_v30, %v11457_v3  ;;  %v4716_v26 = vadd.f32 %v8342_v43, %v4563_v51  ;;  %v4557_v19 = vadd.f32 %v4556_v52, %v11673_v48  ;;  %v8351_v37 = vpop.f32.mrf.mxu1 }
 0x2a5   :  { %v8316_v34 = vpop.f32.mrf.mxu0 }
 0x2a6   :  { %v11821_v24 = vadd.f32 %v4716_v26, %v11460_v53  ;;  %v4710_v32 = vadd.f32 %v4709_v14, %v4557_v19  ;;  %v4575_v31 = vadd.f32 %v8316_v34, %v11693_v28  ;;  %v4745_v46 = vpop.f32.mrf.mxu1 }
 0x2a7   :  { %v4568_v4 = vpop.f32.mrf.mxu0 }
 0x2a8   :  { %v11825_v1 = vadd.f32 %v4710_v32, %v11465_v23  ;;  %v4728_v6 = vadd.f32 %v8345_v55, %v4575_v31  ;;  %v4569_v3 = vadd.f32 %v4568_v4, %v11709_v20  ;;  %v8354_v58 = vpop.f32.mrf.mxu1 }
 0x2a9   :  { %v8319_v43 = vpop.f32.mrf.mxu0 }
 0x2aa   :  { %12494 = vst [vmem:[#allocation43_spill] sm:$0xff] %v11825_v1  ;;  %v11829_v48 = vadd.f32 %v4728_v6, %v11468_v0  ;;  %v4722_v17 = vadd.f32 %v4721_v7, %v4569_v3  ;;  %v4587_v53 = vadd.f32 %v8319_v43, %v11730_v61  ;;  %v4757_v30 = vpop.f32.mrf.mxu1 }
 0x2ab   :  { %v4580_v14 = vpop.f32.mrf.mxu0 }
 0x2ac   :  { %12495 = vst [vmem:[#allocation44_spill] sm:$0xff] %v11829_v48  ;;  %v11833_v28 = vadd.f32 %v4722_v17, %v11472_v38  ;;  %v4740_v51 = vadd.f32 %v8348_v56, %v4587_v53  ;;  %v4581_v23 = vadd.f32 %v4580_v14, %v11744_v42  ;;  %v8357_v52 = vpop.f32.mrf.mxu1 }
 0x2ad   :  { %v8322_v55 = vpop.f32.mrf.mxu0 }
 0x2ae   :  { %12496 = vst [vmem:[#allocation45_spill] sm:$0xff] %v11833_v28  ;;  %v11837_v20 = vadd.f32 %v4740_v51, %v11476_v45  ;;  %v4734_v26 = vadd.f32 %v4733_v57, %v4581_v23  ;;  %v4599_v0 = vadd.f32 %v8322_v55, %v11759_v15  ;;  %v4769_v19 = vpop.f32.mrf.mxu1 }
 0x2af   :  { %v4592_v7 = vpop.f32.mrf.mxu0 }
 0x2b0   :  { %12497 = vst [vmem:[#allocation46_spill] sm:$0xff] %v11837_v20  ;;  %v11841_v61 = vadd.f32 %v4734_v26, %v11480_v44  ;;  %v4752_v34 = vadd.f32 %v8351_v37, %v4599_v0  ;;  %v4593_v38 = vadd.f32 %v4592_v7, %v11775_v62  ;;  %v11844_v32 = vpop.f32.mrf.mxu1 }
 0x2b1   :  { %v8325_v56 = vpop.f32.mrf.mxu0 }
 0x2b2   :  { %12498 = vst [vmem:[#allocation47_spill] sm:$0xff] %v11841_v61  ;;  %v11847_v42 = vadd.f32 %v4752_v34, %v11484_v35  ;;  %v4746_v31 = vadd.f32 %v4745_v46, %v4593_v38  ;;  %v4611_v45 = vadd.f32 %v8325_v56, %v11784_v9  ;;  %v11850_v57 = vpop.f32.mrf.mxu1 }
 0x2b3   :  { %v4604_v15 = vpop.f32.mrf.mxu0 }
 0x2b4   :  { %12499 = vst [vmem:[#allocation48_spill] sm:$0xff] %v11847_v42  ;;  %v11853_v4 = vadd.f32 %v4746_v31, %v11488_v22  ;;  %v4764_v44 = vadd.f32 %v8354_v58, %v4611_v45  ;;  %v4605_v37 = vadd.f32 %v4604_v15, %v11795_v8  ;;  %v11856_v6 = vpop.f32.mrf.mxu1 }
 0x2b5   :  { %v8328_v62 = vpop.f32.mrf.mxu0 }
 0x2b6   :  { %12500 = vst [vmem:[#allocation49_spill] sm:$0xff] %v11853_v4  ;;  %v11859_v3 = vadd.f32 %v4764_v44, %v11492_v49  ;;  %v4758_v35 = vadd.f32 %v4757_v30, %v4605_v37  ;;  %v4623_v46 = vadd.f32 %v8328_v62, %v11800_v47  ;;  %v11862_v43 = vpop.f32.mrf.mxu1 }
 0x2b7   :  { %v4616_v9 = vpop.f32.mrf.mxu0 }
 0x2b8   :  { %12501 = vst [vmem:[#allocation50_spill] sm:$0xff] %v11859_v3  ;;  %v11865_v17 = vadd.f32 %v4758_v35, %v11496_v16  ;;  %v4776_v22 = vadd.f32 %v8357_v52, %v4623_v46  ;;  %v4617_v58 = vadd.f32 %v4616_v9, %v11804_v27  ;;  %v11868_v53 = vpop.f32.mrf.mxu1 }
 0x2b9   :  { %v8368_v8 = vpop.f32.mrf.mxu0 }
 0x2ba   :  { %12502 = vst [vmem:[#allocation51_spill] sm:$0xff] %v11865_v17  ;;  %v11871_v14 = vadd.f32 %v4776_v22, %v11500_v50  ;;  %v4770_v49 = vadd.f32 %v4769_v19, %v4617_v58  ;;  %v11873_v51 = vpop.f32.mrf.mxu1  ;;  %v5226_v4 = vadd.f32 %v11844_v32, %v8368_v8 }
 0x2bb   :  { %v4998_v30 = vpop.f32.mrf.mxu0 }
 0x2bc   :  { %12503 = vst [vmem:[#allocation52_spill] sm:$0xff] %v11871_v14  ;;  %v11876_v47 = vadd.f32 %v4770_v49, %v11505_v63  ;;  %v11878_v23 = vpop.f32.mrf.mxu1 }
 0x2bd   :  { %v8371_v16 = vpop.f32.mrf.mxu0 }
 0x2be   :  { %12504 = vst [vmem:[#allocation53_spill] sm:$0xff] %v11876_v47  ;;  %v11880_v55 = vpop.f32.mrf.mxu1 }
 0x2bf   :  { %v5018_v52 = vpop.f32.mrf.mxu0 }
 0x2c0   :  { %v11882_v27 = vpop.f32.mrf.mxu1  ;;  %v5232_v48 = vadd.f32 %v11862_v43, %v5018_v52 }
 0x2c1   :  { %v8374_v26 = vpop.f32.mrf.mxu0 }
 0x2c2   :  { %v11884_v0 = vpop.f32.mrf.mxu1 }
 0x2c3   :  { %v5038_v50 = vpop.f32.mrf.mxu0 }
 0x2c4   :  { %v11886_v7 = vpop.f32.mrf.mxu1 }
 0x2c5   :  { %v8377_v19 = vpop.f32.mrf.mxu0 }
 0x2c6   :  { %v11888_v34 = vpop.f32.mrf.mxu1 }
 0x2c7   :  { %v11890_v38 = vpop.f32.mrf.mxu0 }
 0x2c8   :  { %v11892_v63 = vpop.f32.mrf.mxu1 }
 0x2c9   :  { %v8380_v56 = vpop.f32.mrf.mxu0 }
 0x2ca   :  { %v11894_v31 = vpop.f32.mrf.mxu1 }
 0x2cb   :  { %v5078_v45 = vpop.f32.mrf.mxu0 }
 0x2cc   :  { %v8455_v15 = vpop.f32.mrf.mxu1 }
 0x2cd   :  { %v11896_v44 = vpop.f32.mrf.mxu0 }
 0x2ce   :  { %v5545_v37 = vpop.f32.mrf.mxu1 }
 0x2cf   :  { %v11898_v62 = vpop.f32.mrf.mxu0 }
 0x2d0   :  { %v8458_v35 = vpop.f32.mrf.mxu1 }
 0x2d1   :  { %v11900_v46 = vpop.f32.mrf.mxu0 }
 0x2d2   :  { %v5561_v9 = vpop.f32.mrf.mxu1 }
 0x2d3   :  { %v11902_v22 = vpop.f32.mrf.mxu0 }
 0x2d4   :  { %v11904_v58 = vpop.f32.mrf.mxu1 }
 0x2d5   :  { %v8426_v49 = vpop.f32.mrf.mxu0 }
 0x2d6   :  { %v11906_v54 = vpop.f32.mrf.mxu1 }
 0x2d7   :  { %v5377_v12 = vpop.f32.mrf.mxu0 }
 0x2d8   :  { %v11908_v18 = vpop.f32.mrf.mxu1 }
 0x2d9   :  { %v8429_v10 = vpop.f32.mrf.mxu0 }
 0x2da   :  { %v11910_v13 = vpop.f32.mrf.mxu1 }
 0x2db   :  { %12505 = vst [vmem:[#allocation54_spill] sm:$0xff] %v11910_v13  ;;  %v5391_v33 = vpop.f32.mrf.mxu0 }
 0x2dc   :  { %v11912_v5 = vpop.f32.mrf.mxu1  ;;  %v5392_v1 = vadd.f32 %v5391_v33, %v5232_v48  ;;  %v5268_v33 = vadd.f32 %v11884_v0, %v5078_v45 }
 0x2dd   :  { %12506 = vst [vmem:[#allocation55_spill] sm:$0xff] %v11912_v5  ;;  %v8432_v36 = vpop.f32.mrf.mxu0 }
 0x2de   :  { %v11914_v11 = vpop.f32.mrf.mxu1 }
 0x2df   :  { %12507 = vst [vmem:[#allocation56_spill] sm:$0xff] %v11914_v11  ;;  %v5405_v60 = vpop.f32.mrf.mxu0 }
 0x2e0   :  { %v11916_v2 = vpop.f32.mrf.mxu1 }
 0x2e1   :  { %12508 = vst [vmem:[#allocation57_spill] sm:$0xff] %v11916_v2  ;;  %v8435_v59 = vpop.f32.mrf.mxu0  ;;  %v5220_v2 = vadd.f32 %v11850_v57, %v4998_v30  ;;  %v5244_v30 = vadd.f32 %v11873_v51, %v5038_v50 }
 0x2e2   :  { %v11918_v25 = vpop.f32.mrf.mxu1 }
 0x2e3   :  { %12509 = vst [vmem:[#allocation58_spill] sm:$0xff] %v11918_v25  ;;  %v5419_v39 = vpop.f32.mrf.mxu0  ;;  %v5385_v25 = vadd.f32 %v8426_v49, %v5226_v4  ;;  %v5378_v11 = vadd.f32 %v5377_v12, %v5220_v2  ;;  %v5250_v4 = vadd.f32 %v11868_v53, %v8374_v26  ;;  %v5262_v2 = vadd.f32 %v11878_v23, %v8377_v19 }
 0x2e4   :  { %v11920_v41 = vpop.f32.mrf.mxu1  ;;  %v5286_v23 = vadd.f32 %v11886_v7, %v11896_v44 }
 0x2e5   :  { %12510 = vst [vmem:[#allocation59_spill] sm:$0xff] %v11920_v41  ;;  %v11922_v40 = vpop.f32.mrf.mxu0  ;;  %v5238_v41 = vadd.f32 %v11856_v6, %v8371_v16  ;;  %v5554_v32 = vadd.f32 %v8455_v15, %v5385_v25  ;;  %v5546_v57 = vadd.f32 %v5545_v37, %v5378_v11  ;;  %v5274_v25 = vadd.f32 %v11882_v27, %v8380_v56  ;;  %v11952_v11 = vld [vmem:[%s12224_s2] ss:$0 sm:$0xff] }
 0x2e6   :  { %v11924_v47 = vpop.f32.mrf.mxu1  ;;  %v5427_v52 = vadd.f32 %v8435_v59, %v5262_v2 }
 0x2e7   :  { %12511 = vst [vmem:[#allocation60_spill] sm:$0xff] %v11924_v47  ;;  %v11926_v14 = vpop.f32.mrf.mxu0  ;;  %v5399_v13 = vadd.f32 %v8429_v10, %v5238_v41  ;;  %v5256_v41 = vadd.f32 %v11880_v55, %v11890_v38  ;;  %v5413_v10 = vadd.f32 %v8432_v36, %v5250_v4  ;;  %v5280_v55 = vadd.f32 %v11888_v34, %v11898_v62 }
 0x2e8   :  { %12512 = vst [vmem:[#allocation61_spill] sm:$0xff] %v11926_v14  ;;  %v8513_v17 = vpop.f32.mrf.mxu1  ;;  %v5406_v36 = vadd.f32 %v5405_v60, %v5244_v30  ;;  %v5602_v44 = vadd.f32 %v11908_v18, %v5427_v52 }
 0x2e9   :  { %v11928_v3 = vpop.f32.mrf.mxu0  ;;  %v5570_v43 = vadd.f32 %v8458_v35, %v5399_v13  ;;  %v5562_v13 = vadd.f32 %v5561_v9, %v5392_v1  ;;  %v11967_v1 = vadd.f32 %v11894_v31, %v11902_v22  ;;  %v5420_v7 = vadd.f32 %v5419_v39, %v5256_v41  ;;  %v6016_v39 = vld [vmem:[%s12225_s3] sm:$0xff] }
 0x2ea   :  { %12513 = vst [vmem:[#allocation62_spill] sm:$0xff] %v11928_v3  ;;  %v5885_v42 = vpop.f32.mrf.mxu1  ;;  %v5586_v19 = vadd.f32 %v11904_v58, %v5413_v10  ;;  %v5578_v45 = vadd.f32 %v11906_v54, %v5406_v36 }
 0x2eb   :  { %v11931_v61 = vpop.f32.mrf.mxu0 }
 0x2ec   :  { %12514 = vst [vmem:[#allocation63_spill] sm:$0xff] %v11931_v61  ;;  %v8516_v20 = vpop.f32.mrf.mxu1 }
 0x2ed   :  { %v11934_v28 = vpop.f32.mrf.mxu0 }
 0x2ee   :  { %v5897_v47 = vpop.f32.mrf.mxu1 }
 0x2ef   :  { %v11937_v5 = vpop.f32.mrf.mxu0  ;;  %v12515_v37 = vld [vmem:[#allocation61_spill] sm:$0xff] }
 0x2f0   :  { %v8519_v3 = vpop.f32.mrf.mxu1 }
 0x2f1   :  { %v8484_v8 = vpop.f32.mrf.mxu0 }
 0x2f2   :  { %v5739_v61 = vadd.f32 %v8484_v8, %v5554_v32  ;;  %v11940_v14 = vpop.f32.mrf.mxu1  ;;  %v12518_v8 = vld [vmem:[#allocation54_spill] sm:$0xff] }
 0x2f3   :  { %v5732_v6 = vpop.f32.mrf.mxu0 }
 0x2f4   :  { %v5892_v12 = vadd.f32 %v8513_v17, %v5739_v61  ;;  %v5733_v16 = vadd.f32 %v5732_v6, %v5546_v57  ;;  %v8522_v49 = vpop.f32.mrf.mxu1  ;;  %v5594_v57 = vadd.f32 %v12518_v8, %v5420_v7  ;;  %v12524_v7 = vld [vmem:[#allocation46_spill] sm:$0xff] }
 0x2f5   :  { %v8487_v48 = vpop.f32.mrf.mxu0 }
 0x2f6   :  { %v5968_v53 = vadd.f32 %v5892_v12, %v11813_v29  ;;  %v5886_v61 = vadd.f32 %v5885_v42, %v5733_v16  ;;  %v5751_v17 = vadd.f32 %v8487_v48, %v5570_v43  ;;  %v11955_v51 = vpop.f32.mrf.mxu1  ;;  %v5298_v42 = vadd.f32 %v11892_v63, %v11900_v46  ;;  %v6017_v63 = vld [vmem:[%s12225_s3 + $0x8] sm:$0xff]  ;;  %v12517_v46 = vld [vmem:[#allocation62_spill] sm:$0xff]  ;;  %v6018_v12 = vld [vmem:[%s12225_s3 + $0x10] sm:$0xff] }
 0x2f7   :  { %v5744_v27 = vpop.f32.mrf.mxu0  ;;  %v5455_v9 = vadd.f32 %v12517_v46, %v5286_v23  ;;  %v12519_v16 = vld [vmem:[#allocation44_spill] sm:$0xff]  ;;  %v6019_v48 = vld [vmem:[%s12225_s3 + $0x18] sm:$0xff]  ;;  %v12522_v23 = vld [vmem:[#allocation63_spill] sm:$0xff] }
 0x2f8   :  { %v5989_v26 = vadd.f32 %v11952_v11, %v5968_v53  ;;  %v5967_v0 = vadd.f32 %v5886_v61, %v11817_v21  ;;  %v5904_v50 = vadd.f32 %v8516_v20, %v5751_v17  ;;  %v5745_v29 = vadd.f32 %v5744_v27, %v5562_v13  ;;  %v8525_v21 = vpop.f32.mrf.mxu1  ;;  %v12521_v17 = vld [vmem:[#allocation56_spill] sm:$0xff]  ;;  %v12523_v27 = vld [vmem:[#allocation45_spill] sm:$0xff] }
 0x2f9   :  { %v8490_v34 = vpop.f32.mrf.mxu0  ;;  %v5441_v20 = vadd.f32 %v11922_v40, %v5274_v25  ;;  %v12516_v40 = vld [vmem:[#allocation43_spill] sm:$0xff]  ;;  %v5448_v36 = vadd.f32 %v12522_v23, %v5280_v55  ;;  %v12531_v23 = vld [vmem:[#allocation50_spill] sm:$0xff] }
 0x2fa   :  { %v6003_v60 = vmax.f32 %v5989_v26, 0.0  ;;  %v5988_v59 = vadd.f32 %v11952_v11, %v5967_v0  ;;  %v5970_v38 = vadd.f32 %v5904_v50, %v11821_v24  ;;  %v5898_v56 = vadd.f32 %v5897_v47, %v5745_v29  ;;  %v5933_v6 = vpop.f32.mrf.mxu1  ;;  %v12520_v25 = vld [vmem:[#allocation55_spill] sm:$0xff] }
 0x2fb   :  { %v5763_v31 = vadd.f32 %v8490_v34, %v5586_v19  ;;  %v5756_v15 = vpop.f32.mrf.mxu0  ;;  %v5434_v24 = vadd.f32 %v12515_v37, %v5268_v33  ;;  %v5618_v33 = vadd.f32 %v12520_v25, %v5441_v20  ;;  %v6023_v25 = vld [vmem:[%s12225_s3 + $0x38] sm:$0xff] }
 0x2fc   :  { %v6002_v47 = vmax.f32 %v5988_v59, 0.0  ;;  %v5991_v62 = vadd.f32 %v11952_v11, %v5970_v38  ;;  %v5969_v35 = vadd.f32 %v5898_v56, %v12516_v40  ;;  %v5757_v58 = vadd.f32 %v5756_v15, %v5578_v45  ;;  %v8528_v29 = vpop.f32.mrf.mxu1 }
 0x2fd   :  { %v5916_v22 = vadd.f32 %v8519_v3, %v5763_v31  ;;  %v8493_v32 = vpop.f32.mrf.mxu0  ;;  %v6031_v4 = vmul.f32 %v6017_v63, %v6003_v60  ;;  %v5610_v13 = vadd.f32 %v12521_v17, %v5434_v24  ;;  %v12525_v60 = vld [vmem:[#allocation57_spill] sm:$0xff]  ;;  %v5469_v38 = vadd.f32 %v11934_v28, %v5298_v42  ;;  %v6020_v31 = vld [vmem:[%s12225_s3 + $0x20] sm:$0xff]  ;;  %v12526_v42 = vld [vmem:[#allocation47_spill] sm:$0xff] }
 0x2fe   :  { %v6030_v30 = vmul.f32 %v6016_v39, %v6002_v47  ;;  %v5990_v54 = vadd.f32 %v11952_v11, %v5969_v35  ;;  %v5775_v18 = vadd.f32 %v8493_v32, %v5602_v44  ;;  %v6005_v2 = vmax.f32 %v5991_v62, 0.0  ;;  %v6021_v44 = vld [vmem:[%s12225_s3 + $0x28] sm:$0xff]  ;;  %v5945_v46 = vpop.f32.mrf.mxu1 }
 0x2ff   :  { %v5972_v43 = vadd.f32 %v5916_v22, %v12519_v16  ;;  %v5910_v41 = vadd.f32 %v11940_v14, %v5757_v58  ;;  %v5768_v3 = vpop.f32.mrf.mxu0  ;;  %v5634_v59 = vadd.f32 %v12525_v60, %v5455_v9  ;;  %v5462_v40 = vadd.f32 %v11937_v5, %v11967_v1  ;;  %v12528_v9 = vld [vmem:[#allocation48_spill] sm:$0xff]  ;;  %v12530_v5 = vld [vmem:[#allocation49_spill] sm:$0xff]  ;;  %v6025_v60 = vld [vmem:[%s12225_s3 + $0x48] sm:$0xff] }
 0x300   :  { %v6044_v10 = vmax.f32 %v6030_v30, %v6031_v4  ;;  %v6004_v53 = vmax.f32 %v5990_v54, 0.0  ;;  %v5928_v61 = vadd.f32 %v8522_v49, %v5775_v18  ;;  %v5769_v0 = vadd.f32 %v5768_v3, %v5594_v57  ;;  %v12529_v4 = vld [vmem:[#allocation59_spill] sm:$0xff]  ;;  %v6022_v18 = vld [vmem:[%s12225_s3 + $0x30] sm:$0xff] }
 0x301   :  { %v5993_v52 = vadd.f32 %v11952_v11, %v5972_v43  ;;  %v5971_v26 = vadd.f32 %v5910_v41, %v12523_v27  ;;  %v8496_v14 = vpop.f32.mrf.mxu0  ;;  %v6033_v49 = vmul.f32 %v6019_v48, %v6005_v2  ;;  %v5650_v30 = vadd.f32 %v12529_v4, %v5469_v38 }
 0x302   :  { %v6032_v50 = vmul.f32 %v6018_v12, %v6004_v53  ;;  %v5974_v19 = vadd.f32 %v5928_v61, %v12524_v7  ;;  %v5787_v34 = vadd.f32 %v8496_v14, %v5618_v33  ;;  %v5922_v55 = vadd.f32 %v11955_v51, %v5769_v0  ;;  %v12527_v51 = vld [vmem:[#allocation58_spill] sm:$0xff]  ;;  %v8531_v33 = vpop.f32.mrf.mxu1 }
 0x303   :  { %v5992_v56 = vadd.f32 %v11952_v11, %v5971_v26  ;;  %v5780_v20 = vpop.f32.mrf.mxu0  ;;  %v6007_v39 = vmax.f32 %v5993_v52, 0.0  ;;  %v5626_v62 = vadd.f32 %v12527_v51, %v5448_v36  ;;  %v12532_v52 = vld [vmem:[#allocation60_spill] sm:$0xff]  ;;  %v6027_v51 = vld [vmem:[%s12225_s3 + $0x58] sm:$0xff] }
 0x304   :  { %v6045_v63 = vmax.f32 %v6044_v10, %v6032_v50  ;;  %v5940_v45 = vadd.f32 %v8525_v21, %v5787_v34  ;;  %v5781_v15 = vadd.f32 %v5780_v20, %v5610_v13  ;;  %v5995_v28 = vadd.f32 %v11952_v11, %v5974_v19  ;;  %v6024_v13 = vld [vmem:[%s12225_s3 + $0x40] sm:$0xff]  ;;  %v12533_v50 = vld [vmem:[#allocation51_spill] sm:$0xff]  ;;  %v12534_v20 = vld [vmem:[#allocation52_spill] sm:$0xff] }
 0x305   :  { %v6006_v37 = vmax.f32 %v5992_v56, 0.0  ;;  %v5973_v24 = vadd.f32 %v5922_v55, %v12526_v42  ;;  %v8499_v47 = vpop.f32.mrf.mxu0  ;;  %v6035_v54 = vmul.f32 %v6021_v44, %v6007_v39  ;;  %v5642_v27 = vadd.f32 %v12532_v52, %v5462_v40  ;;  %v12552_v52 = vld [vmem:[#allocation29_spill] sm:$0xff] }
 0x306   :  { %v6046_v35 = vmax.f32 %v6045_v63, %v6033_v49  ;;  %v5976_v21 = vadd.f32 %v5940_v45, %v12528_v9  ;;  %v5934_v22 = vadd.f32 %v5933_v6, %v5781_v15  ;;  %v5799_v8 = vadd.f32 %v8499_v47, %v5634_v59  ;;  %v5957_v49 = vpop.f32.mrf.mxu1 }
 0x307   :  { %v6034_v58 = vmul.f32 %v6020_v31, %v6006_v37  ;;  %v5994_v32 = vadd.f32 %v11952_v11, %v5973_v24  ;;  %v5792_v57 = vpop.f32.mrf.mxu0  ;;  %v6009_v43 = vmax.f32 %v5995_v28, 0.0  ;;  %v6026_v31 = vld [vmem:[%s12225_s3 + $0x50] sm:$0xff]  ;;  %v12535_v24 = vld [vmem:[#allocation53_spill] sm:$0xff] }
 0x308   :  { %v5997_v2 = vadd.f32 %v11952_v11, %v5976_v21  ;;  %v5975_v1 = vadd.f32 %v5934_v22, %v12530_v5  ;;  %v5793_v12 = vadd.f32 %v5792_v57, %v5626_v62  ;;  %v5952_v41 = vadd.f32 %v8528_v29, %v5799_v8 }
 0x309   :  { %v6047_v16 = vmax.f32 %v6046_v35, %v6034_v58  ;;  %v6008_v6 = vmax.f32 %v5994_v32, 0.0  ;;  %v8502_v3 = vpop.f32.mrf.mxu0  ;;  %v6037_v19 = vmul.f32 %v6023_v25, %v6009_v43  ;;  %v6029_v32 = vld [vmem:[%s12225_s3 + $0x68] sm:$0xff]  ;;  %v12537_v5 = vmov 0.0   ;;  %v12542_v25 = vld [vmem:[#allocation20_spill] sm:$0xff] }
 0x30a   :  { %v5996_v10 = vadd.f32 %v11952_v11, %v5975_v1  ;;  %v5946_v48 = vadd.f32 %v5945_v46, %v5793_v12  ;;  %v5811_v53 = vadd.f32 %v8502_v3, %v5650_v30  ;;  %v5978_v36 = vadd.f32 %v5952_v41, %v12531_v23  ;;  %v6028_v46 = vld [vmem:[%s12225_s3 + $0x60] sm:$0xff]  ;;  %v12538_v12 = vld [vmem:[#allocation13_spill] sm:$0xff]  ;;  %v12539_v43 = vld [vmem:[#allocation15_spill] sm:$0xff] }
 0x30b   :  { %v6036_v61 = vmul.f32 %v6022_v18, %v6008_v6  ;;  %v6048_v17 = vmax.f32 %v6047_v16, %v6035_v54  ;;  %v5804_v26 = vpop.f32.mrf.mxu0  ;;  %v6011_v0 = vmax.f32 %v5997_v2, 0.0  ;;  %v12536_v2 = vld [vmem:[#allocation11_spill] sm:$0xff]  ;;  %v12540_v41 = vld [vmem:[#allocation17_spill] sm:$0xff]  ;;  %v12541_v3 = vld [vmem:[#allocation12_spill] sm:$0xff] }
 0x30c   :  { %v6010_v14 = vmax.f32 %v5996_v10, 0.0  ;;  %v5977_v29 = vadd.f32 %v5946_v48, %v12533_v50  ;;  %v5964_v7 = vadd.f32 %v8531_v33, %v5811_v53  ;;  %v5999_v59 = vadd.f32 %v11952_v11, %v5978_v36  ;;  %v12543_v33 = vld [vmem:[#allocation14_spill] sm:$0xff]  ;;  %v12544_v10 = vld [vmem:[#allocation19_spill] sm:$0xff]  ;;  %v12545_v48 = vld [vmem:[#allocation16_spill] sm:$0xff] }
 0x30d   :  { %v6049_v34 = vmax.f32 %v6048_v17, %v6036_v61  ;;  %v5805_v38 = vadd.f32 %v5804_v26, %v5642_v27  ;;  %v6039_v15 = vmul.f32 %v6025_v60, %v6011_v0  ;;  %v12546_v53 = vld [vmem:[#allocation23_spill] sm:$0xff]  ;;  %v12547_v61 = vld [vmem:[#allocation18_spill] sm:$0xff]  ;;  %v12548_v17 = vld [vmem:[#allocation25_spill] sm:$0xff] }
 0x30e   :  { %v6038_v56 = vmul.f32 %v6024_v13, %v6010_v14  ;;  %v5998_v55 = vadd.f32 %v11952_v11, %v5977_v29  ;;  %v5980_v63 = vadd.f32 %v5964_v7, %v12534_v20  ;;  %v6013_v28 = vmax.f32 %v5999_v59, 0.0  ;;  %v12549_v13 = vld [vmem:[#allocation21_spill] sm:$0xff]  ;;  %v12550_v23 = vld [vmem:[#allocation27_spill] sm:$0xff]  ;;  %v12551_v36 = vld [vmem:[#allocation22_spill] sm:$0xff] }
 0x30f   :  { %v6050_v39 = vmax.f32 %v6049_v34, %v6037_v19  ;;  %v5958_v45 = vadd.f32 %v5957_v49, %v5805_v38  ;;  %v12553_v27 = vld [vmem:[#allocation24_spill] sm:$0xff]  ;;  %v12554_v26 = vld [vmem:[#allocation30_spill] sm:$0xff]  ;;  %v12556_v14 = vld [vmem:[#allocation33_spill] sm:$0xff] }
 0x310   :  { %v6012_v44 = vmax.f32 %v5998_v55, 0.0  ;;  %v6001_v42 = vadd.f32 %v11952_v11, %v5980_v63  ;;  %v6041_v9 = vmul.f32 %v6027_v51, %v6013_v28  ;;  %v12555_v0 = vld [vmem:[#allocation26_spill] sm:$0xff]  ;;  %v12557_v50 = vld [vmem:[#allocation28_spill] sm:$0xff]  ;;  %v12558_v29 = vld [vmem:[#allocation35_spill] sm:$0xff]  ;;  %v12569_v63 = vand.u32 4294901760, %v12541_v3 }
 0x311   :  { %v6051_v37 = vmax.f32 %v6050_v39, %v6038_v56  ;;  %v5979_v47 = vadd.f32 %v5958_v45, %v12535_v24  ;;  %v12559_v7 = vld [vmem:[#allocation31_spill] sm:$0xff]  ;;  %v12560_v19 = vld [vmem:[#allocation37_spill] sm:$0xff]  ;;  %v12561_v34 = vld [vmem:[#allocation32_spill] sm:$0xff]  ;;  %v12570_v39 = vand.u32 4294901760, %v12543_v33  ;;  %v12572_v45 = vand.u32 4294901760, %v12547_v61 }
 0x312   :  { %v6040_v62 = vmul.f32 %v6026_v31, %v6012_v44  ;;  %v6015_v22 = vmax.f32 %v6001_v42, 0.0  ;;  %v12562_v60 = vld [vmem:[#allocation39_spill] sm:$0xff]  ;;  %v12563_v59 = vld [vmem:[#allocation34_spill] sm:$0xff]  ;;  %v12564_v38 = vld [vmem:[#allocation40_spill] sm:$0xff]  ;;  %v12571_v31 = vand.u32 4294901760, %v12545_v48  ;;  %v12574_v44 = vand.u32 4294901760, %v12551_v36 }
 0x313   :  { %v6052_v40 = vmax.f32 %v6051_v37, %v6039_v15  ;;  %v6000_v35 = vadd.f32 %v11952_v11, %v5979_v47  ;;  %v12565_v49 = vld [vmem:[#allocation36_spill] sm:$0xff]  ;;  %v12566_v56 = vld [vmem:[#allocation38_spill] sm:$0xff]  ;;  %v12567_v55 = vld [vmem:[#allocation41_spill] sm:$0xff]  ;;  %v12573_v15 = vand.u32 4294901760, %v12549_v13  ;;  %v12575_v37 = vand.u32 4294901760, %v12553_v27 }
 0x314   :  { %v6043_v4 = vmul.f32 %v6029_v32, %v6015_v22  ;;  %v12568_v20 = vld [vmem:[#allocation42_spill] sm:$0xff]  ;;  %v12576_v28 = vand.u32 4294901760, %v12555_v0  ;;  %v12577_v42 = vand.u32 4294901760, %v12557_v50  ;;  %v12578_v24 = vand.u32 4294901760, %v12559_v7 }
 0x315   :  { %v6053_v21 = vmax.f32 %v6052_v40, %v6040_v62  ;;  %v6014_v58 = vmax.f32 %v6000_v35, 0.0  ;;  %v12579_v47 = vand.u32 4294901760, %v12561_v34  ;;  %v12580_v51 = vand.u32 4294901760, %v12563_v59 }
 0x316   :  { %v12581_v62 = vand.u32 4294901760, %v12565_v49  ;;  %v12582_v40 = vand.u32 4294901760, %v12566_v56  ;;  %v12583_v35 = vand.u32 4294901760, %v12567_v55 }
 0x317   :  { %v6042_v8 = vmul.f32 %v6028_v46, %v6014_v58  ;;  %v6054_v57 = vmax.f32 %v6053_v21, %v6041_v9  ;;  %v12584_v46 = vand.u32 4294901760, %v12568_v20 }
 0x319   :  { %v6055_v30 = vmax.f32 %v6054_v57, %v6042_v8 }
 0x31b   :  { %v6056_v54 = vmax.f32 %v6055_v30, %v6043_v4  ;;  %v7019_v30 = vld [vmem:[%s12227_s5] ss:$0 sm:$0xff] }
 0x31d   :  { %v12055_v18 = vand.u32 4294901760, %v6056_v54 }
 0x31f   :  { %v12058_v11 = vsub.f32 %v6056_v54, %v12055_v18  ;;  %8600 = vmatmul.mubr.f32.vlgmr.msra.gmra.mxu1 %v12055_v18 }
 0x320   :  { %8638 = vmatpush3.msra.mxu1 %v12536_v2  ;;  %8669 = vmatprep.mubr.msk.f32.mxu1 %vm8840_vm0, %v12537_v5 }
 0x321   :  { %v6163_v1 = vand.u32 4294901760, %v12058_v11  ;;  %8639 = vmatprep.subr.mxu1 %v12537_v5 }
 0x322   :  { %8640 = vmatpush3.msra.mxu1 %v12538_v12 }
 0x323   :  { %8641 = vmatprep.subr.mxu1 %v12537_v5  ;;  %v6164_v16 = vsub.f32 %v12058_v11, %v6163_v1 }
 0x324   :  { %8642 = vmatpush3.msra.mxu1 %v12539_v43 }
 0x325   :  { %8643 = vmatprep.subr.mxu1 %v12537_v5  ;;  %v6165_v6 = vand.u32 4294901760, %v6164_v16 }
 0x326   :  { %8644 = vmatpush3.msra.mxu1 %v12540_v41 }
 0x327   :  { %8645 = vmatprep.subr.mxu1 %v12537_v5  ;;  %8565 = vmatmul.mubr.f32.vlgmr.msra.gmra.mxu0 %v6165_v6 }
 0x328   :  { %8603 = vmatpush3.msra.mxu0 %v12541_v3  ;;  %8646 = vmatpush3.msra.mxu1 %v12542_v25 }
 0x329   :  { %8604 = vmatprep.subr.mxu0 %v12537_v5  ;;  %8647 = vmatprep.subr.mxu1 %v12537_v5 }
 0x32a   :  { %8605 = vmatpush3.msra.mxu0 %v12543_v33  ;;  %8648 = vmatpush3.msra.mxu1 %v12544_v10 }
 0x32b   :  { %8606 = vmatprep.subr.mxu0 %v12537_v5  ;;  %8649 = vmatprep.subr.mxu1 %v12537_v5 }
 0x32c   :  { %8607 = vmatpush3.msra.mxu0 %v12545_v48  ;;  %8650 = vmatpush3.msra.mxu1 %v12546_v53 }
 0x32d   :  { %8608 = vmatprep.subr.mxu0 %v12537_v5  ;;  %8651 = vmatprep.subr.mxu1 %v12537_v5 }
 0x32e   :  { %8609 = vmatpush3.msra.mxu0 %v12547_v61  ;;  %8652 = vmatpush3.msra.mxu1 %v12548_v17 }
 0x32f   :  { %8610 = vmatprep.subr.mxu0 %v12537_v5  ;;  %8653 = vmatprep.subr.mxu1 %v12537_v5 }
 0x330   :  { %8611 = vmatpush3.msra.mxu0 %v12549_v13  ;;  %8654 = vmatpush3.msra.mxu1 %v12550_v23 }
 0x331   :  { %8612 = vmatprep.subr.mxu0 %v12537_v5  ;;  %8655 = vmatprep.subr.mxu1 %v12537_v5 }
 0x332   :  { %8613 = vmatpush3.msra.mxu0 %v12551_v36  ;;  %8656 = vmatpush3.msra.mxu1 %v12552_v52 }
 0x333   :  { %8614 = vmatprep.subr.mxu0 %v12537_v5  ;;  %8657 = vmatprep.subr.mxu1 %v12537_v5 }
 0x334   :  { %8615 = vmatpush3.msra.mxu0 %v12553_v27  ;;  %8658 = vmatpush3.msra.mxu1 %v12554_v26 }
 0x335   :  { %8616 = vmatprep.subr.mxu0 %v12537_v5  ;;  %8659 = vmatprep.subr.mxu1 %v12537_v5 }
 0x336   :  { %8617 = vmatpush3.msra.mxu0 %v12555_v0  ;;  %8660 = vmatpush3.msra.mxu1 %v12556_v14 }
 0x337   :  { %8618 = vmatprep.subr.mxu0 %v12537_v5  ;;  %8661 = vmatprep.subr.mxu1 %v12537_v5 }
 0x338   :  { %8619 = vmatpush3.msra.mxu0 %v12557_v50  ;;  %8662 = vmatpush3.msra.mxu1 %v12558_v29 }
 0x339   :  { %8620 = vmatprep.subr.mxu0 %v12537_v5  ;;  %8663 = vmatprep.subr.mxu1 %v12537_v5 }
 0x33a   :  { %8621 = vmatpush3.msra.mxu0 %v12559_v7  ;;  %8664 = vmatpush3.msra.mxu1 %v12560_v19 }
 0x33b   :  { %8622 = vmatprep.subr.mxu0 %v12537_v5  ;;  %8665 = vmatprep.subr.mxu1 %v12537_v5 }
 0x33c   :  { %8623 = vmatpush3.msra.mxu0 %v12561_v34  ;;  %8666 = vmatpush3.msra.mxu1 %v12562_v60 }
 0x33d   :  { %8624 = vmatprep.subr.mxu0 %v12537_v5  ;;  %8667 = vmatprep.subr.mxu1 %v12537_v5 }
 0x33e   :  { %8625 = vmatpush3.msra.mxu0 %v12563_v59  ;;  %8668 = vmatpush3.msra.mxu1 %v12564_v38 }
 0x33f   :  { %8626 = vmatprep.subr.mxu0 %v12537_v5  ;;  %8670 = vmatmul.mubr.f32.vlgmr.msra.gmra.mxu1 %v6163_v1 }
 0x340   :  { %8707 = vmatprep.subr.mxu1 %v12537_v5  ;;  %8627 = vmatpush3.msra.mxu0 %v12565_v49 }
 0x341   :  { %8708 = vmatpush3.msra.mxu1 %v12536_v2  ;;  %8628 = vmatprep.subr.mxu0 %v12537_v5 }
 0x342   :  { %8709 = vmatprep.subr.mxu1 %v12537_v5  ;;  %8629 = vmatpush3.msra.mxu0 %v12566_v56 }
 0x343   :  { %8710 = vmatpush3.msra.mxu1 %v12538_v12  ;;  %8630 = vmatprep.subr.mxu0 %v12537_v5 }
 0x344   :  { %8711 = vmatprep.subr.mxu1 %v12537_v5  ;;  %8631 = vmatpush3.msra.mxu0 %v12567_v55 }
 0x345   :  { %8712 = vmatpush3.msra.mxu1 %v12539_v43  ;;  %8632 = vmatprep.subr.mxu0 %v12537_v5 }
 0x346   :  { %8713 = vmatprep.subr.mxu1 %v12537_v5  ;;  %8633 = vmatpush3.msra.mxu0 %v12568_v20 }
 0x347   :  { %8634 = vmatprep.mubr.msk.f32.mxu0 %vm8840_vm0, %v12537_v5  ;;  %8714 = vmatpush3.msra.mxu1 %v12540_v41 }
 0x348   :  { %8635 = vmatmul.mubr.f32.vlgmr.msra.gmra.mxu0 %v12058_v11  ;;  %8672 = vmatprep.subr.mxu0 %v12537_v5 }
 0x349   :  { %8715 = vmatprep.subr.mxu1 %v12537_v5  ;;  %8673 = vmatpush3.msra.mxu0 %v12569_v63 }
 0x34a   :  { %8716 = vmatpush3.msra.mxu1 %v12542_v25  ;;  %8674 = vmatprep.subr.mxu0 %v12537_v5 }
 0x34b   :  { %8717 = vmatprep.subr.mxu1 %v12537_v5  ;;  %8675 = vmatpush3.msra.mxu0 %v12570_v39 }
 0x34c   :  { %8718 = vmatpush3.msra.mxu1 %v12544_v10  ;;  %8676 = vmatprep.subr.mxu0 %v12537_v5 }
 0x34d   :  { %8719 = vmatprep.subr.mxu1 %v12537_v5  ;;  %8677 = vmatpush3.msra.mxu0 %v12571_v31 }
 0x34e   :  { %8720 = vmatpush3.msra.mxu1 %v12546_v53  ;;  %8678 = vmatprep.subr.mxu0 %v12537_v5 }
 0x34f   :  { %8721 = vmatprep.subr.mxu1 %v12537_v5  ;;  %8679 = vmatpush3.msra.mxu0 %v12572_v45 }
 0x350   :  { %8722 = vmatpush3.msra.mxu1 %v12548_v17  ;;  %8680 = vmatprep.subr.mxu0 %v12537_v5 }
 0x351   :  { %8723 = vmatprep.subr.mxu1 %v12537_v5  ;;  %8681 = vmatpush3.msra.mxu0 %v12573_v15 }
 0x352   :  { %8724 = vmatpush3.msra.mxu1 %v12550_v23  ;;  %8682 = vmatprep.subr.mxu0 %v12537_v5 }
 0x353   :  { %8725 = vmatprep.subr.mxu1 %v12537_v5  ;;  %8683 = vmatpush3.msra.mxu0 %v12574_v44 }
 0x354   :  { %8726 = vmatpush3.msra.mxu1 %v12552_v52  ;;  %8684 = vmatprep.subr.mxu0 %v12537_v5 }
 0x355   :  { %8727 = vmatprep.subr.mxu1 %v12537_v5  ;;  %8685 = vmatpush3.msra.mxu0 %v12575_v37 }
 0x356   :  { %8728 = vmatpush3.msra.mxu1 %v12554_v26  ;;  %8686 = vmatprep.subr.mxu0 %v12537_v5 }
 0x357   :  { %8729 = vmatprep.subr.mxu1 %v12537_v5  ;;  %8687 = vmatpush3.msra.mxu0 %v12576_v28 }
 0x358   :  { %8730 = vmatpush3.msra.mxu1 %v12556_v14  ;;  %8688 = vmatprep.subr.mxu0 %v12537_v5 }
 0x359   :  { %8731 = vmatprep.subr.mxu1 %v12537_v5  ;;  %8689 = vmatpush3.msra.mxu0 %v12577_v42 }
 0x35a   :  { %8732 = vmatpush3.msra.mxu1 %v12558_v29  ;;  %8690 = vmatprep.subr.mxu0 %v12537_v5 }
 0x35b   :  { %8733 = vmatprep.subr.mxu1 %v12537_v5  ;;  %8691 = vmatpush3.msra.mxu0 %v12578_v24 }
 0x35c   :  { %8734 = vmatpush3.msra.mxu1 %v12560_v19  ;;  %8692 = vmatprep.subr.mxu0 %v12537_v5 }
 0x35d   :  { %8735 = vmatprep.subr.mxu1 %v12537_v5  ;;  %8693 = vmatpush3.msra.mxu0 %v12579_v47 }
 0x35e   :  { %8736 = vmatpush3.msra.mxu1 %v12562_v60  ;;  %8694 = vmatprep.subr.mxu0 %v12537_v5 }
 0x35f   :  { %8737 = vmatprep.subr.mxu1 %v12537_v5  ;;  %8695 = vmatpush3.msra.mxu0 %v12580_v51 }
 0x360   :  { %8738 = vmatpush3.msra.mxu1 %v12564_v38  ;;  %8739 = vmatprep.mubr.msk.f32.mxu1 %vm8840_vm0, %v12537_v5 }
 0x361   :  { %8696 = vmatprep.subr.mxu0 %v12537_v5  ;;  %8740 = vmatmul.mubr.f32.vlgmr.msra.gmra.mxu1 %v12055_v18 }
 0x362   :  { %8697 = vmatpush3.msra.mxu0 %v12581_v62  ;;  %8704 = vmatprep.mubr.msk.f32.mxu0 %vm8840_vm0, %v12537_v5 }
 0x363   :  { %8698 = vmatprep.subr.mxu0 %v12537_v5 }
 0x364   :  { %8699 = vmatpush3.msra.mxu0 %v12582_v40 }
 0x365   :  { %8700 = vmatprep.subr.mxu0 %v12537_v5 }
 0x366   :  { %8701 = vmatpush3.msra.mxu0 %v12583_v35 }
 0x367   :  { %8702 = vmatprep.subr.mxu0 %v12537_v5 }
 0x368   :  { %8703 = vmatpush3.msra.mxu0 %v12584_v46 }
 0x369   :  { %8705 = vmatmul.mubr.f32.vlgmr.msra.gmra.mxu0 %v12055_v18 }
 0x3df   :  { %v6318_v9 = vpop.f32.mrf.mxu1 }
 0x3e1   :  { %v8601_v21 = vpop.f32.mrf.mxu1 }
 0x3e7   :  { %v6167_v22 = vpop.f32.mrf.mxu0 }
 0x3e8   :  { %v6168_v54 = vadd.f32 %v7019_v30, %v6167_v22 }
 0x3e9   :  { %v8566_v58 = vpop.f32.mrf.mxu0 }
 0x3ea   :  { %v6319_v2 = vadd.f32 %v6318_v9, %v6168_v54 }
 0x3ff   :  { %v6511_v32 = vpop.f32.mrf.mxu1 }
 0x401   :  { %v8671_v8 = vpop.f32.mrf.mxu1 }
 0x408   :  { %v6422_v57 = vpop.f32.mrf.mxu0 }
 0x409   :  { %v6423_v1 = vadd.f32 %v6422_v57, %v6319_v2 }
 0x40a   :  { %v8636_v4 = vpop.f32.mrf.mxu0 }
 0x40b   :  { %v6512_v12 = vadd.f32 %v6511_v32, %v6423_v1 }
 0x421   :  { %v6717_v11 = vpop.f32.mrf.mxu1 }
 0x423   :  { %v8741_v5 = vpop.f32.mrf.mxu1 }
 0x429   :  { %v6630_v16 = vpop.f32.mrf.mxu0 }
 0x42a   :  { %v6631_v18 = vadd.f32 %v6630_v16, %v6512_v12 }
 0x42b   :  { %v8706_v43 = vpop.f32.mrf.mxu0 }
 0x42c   :  { %v6718_v6 = vadd.f32 %v6717_v11, %v6631_v18 }
 0x42e   :  { %6721 = vst [vmem:[#allocation7] sm:$0xff] %v6718_v6 }
 0x42f   :  { %8815 = shalt.err (!%p8812_p0)
}
 0x430   :  { %6731 = dma.vmem_to_hbm [thread:$0]  %s6729_s4, 128, %s12228_s6, [#allocation4]  }
 0x431   :  { %8828 = dma.done.wait [#allocation4], 128  }
 0x432   :  { %8829 = vsyncadd [#allocation4], 4294967168 }
 0x433   :  { %6735 = vsyncpa [#allocation3], 1 }
 0x434   :  { %6736 = vsyncpa [#allocation6], 1 }
 0x435   :  { %6737 = vsyncpa [#allocation4], 1 }

</bundles_post_ra>
